<compile_context>
chip_gen: v7x
topology: tpu7x:2x2x1
jax: 0.10.0
libtpu: 0.0.40
codegen_flags: <defaults>
</compile_context>

<pallas_src>
import functools

import numpy as np
import jax
import jax.numpy as jnp
from jax import lax
from jax.experimental import pallas as pl
from jax.experimental.pallas import tpu as pltpu

LEAKY_SLOPE = 0.2
KSIZE = 3
PAD = 1
MIN_CH = 8                     # pad conv1's 3 input channels to 8 per image
TAPS = tuple((dh, dw) for dh in (-1, 0, 1) for dw in (-1, 0, 1))   # k = kh*3+kw


# ------------------------------ fused kernel -------------------------------- #

def _fused_disc_loss_kernel(x_ref, w1_ref, b1_ref,
                            s2_ref, w2_ref, b2_ref,
                            s3_ref, w3_ref, b3_ref,
                            wfc1_ref, bfc1_ref, wfc2_ref, bfc2_ref,
                            loss_ref, *, gan_type, batch, height, width):
    f32 = jnp.float32
    hw = height * width

    def leaky(v):
        return jnp.where(v >= 0.0, v, LEAKY_SLOPE * v)

    # --- layer 1 (stride 1): 3x3 taps via XLU lane rolls + ONE im2col matmul ---
    x = x_ref[...]                                        # (Cf, H*W) f32, batch-fused
    lane = lax.broadcasted_iota(jnp.int32, x.shape, 1)    # position index p = h*W + w
    col = lane & (width - 1)                              # w index (W is a power of 2)
    taps = []
    for dh, dw in TAPS:
        d = dh * width + dw
        t = x if d == 0 else pltpu.roll(x, (-d) % hw, 1)  # t[:, p] = x[:, p + d]
        conds = []
        if dh == -1:
            conds.append(lane >= width)
        elif dh == 1:
            conds.append(lane < (height - 1) * width)
        if dw == -1:
            conds.append(col >= 1)
        elif dw == 1:
            conds.append(col <= width - 2)
        if conds:
            m = conds[0]
            for extra in conds[1:]:
                m = jnp.logical_and(m, extra)
            t = jnp.where(m, t, 0.0)                      # zero padding at the edges
        taps.append(t)
    a1 = jnp.concatenate(taps, axis=0)                    # (9*Cf, H*W)
    y = leaky(jnp.dot(w1_ref[...], a1, preferred_element_type=f32) + b1_ref[...])

    # --- layers 2/3 (stride 2): transposed 0/1 shift matrices + ONE matmul ----
    def conv_strided(y_in, s_ref, w_ref, b_ref):
        shifted = [jnp.dot(y_in, s_ref[k].astype(f32), preferred_element_type=f32)
                   for k in range(s_ref.shape[0])]        # 9 x (Cin_f, Ho*Wo), independent
        a = jnp.concatenate(shifted, axis=0)              # (9*Cin_f, Ho*Wo)
        return leaky(jnp.dot(w_ref[...], a, preferred_element_type=f32) + b_ref[...])

    y = conv_strided(y, s2_ref, w2_ref, b2_ref)           # (2*16, 64)
    y = conv_strided(y, s3_ref, w3_ref, b3_ref)           # (2*32, 16)

    # --- per-image fc1 (shared weights, VPU multiply-reduce), fc2, gen loss ---
    npos = wfc1_ref.shape[0]                              # 16 positions
    cpi = wfc1_ref.shape[1]                               # 32 channels per image
    nout = wfc1_ref.shape[2]                              # 32 hidden units
    total = None
    for b in range(batch):                                # batch=2, unrolled
        yb = y[b * cpi:(b + 1) * cpi, :]                  # (C, P) = (32, 16)
        acc = jnp.zeros((cpi, nout), f32)                 # (C, N)
        for p in range(npos):                             # ~32 VPU vreg ops total
            acc = acc + yb[:, p:p + 1] * wfc1_ref[p]
        hb = jnp.sum(acc, axis=0, keepdims=True)          # (1, N): reduce over channels
        hb = leaky(hb + bfc1_ref[...])
        logit = jnp.sum(hb * wfc2_ref[...], axis=1, keepdims=True) + bfc2_ref[...]
        if gan_type == "GAN":
            # BCE-with-logits vs all-ones labels: stable softplus(-x).
            nl = -logit
            per = jnp.maximum(nl, 0.0) + jnp.log(1.0 + jnp.exp(-jnp.abs(nl)))
        else:                                             # 'WGAN' / 'WGAN_GP': -D(fake)
            per = -logit
        total = per if total is None else total + per

    loss_ref[...] = total * (1.0 / batch)


# ------------------------- host-side constant builders ----------------------- #

def _shift_matrices_T(hi, wi, stride):
    """Transposed 0/1 tap-selection matrices (9, Hi*Wi, Ho*Wo); exact in bf16."""
    ho = (hi + 2 * PAD - KSIZE) // stride + 1
    wo = (wi + 2 * PAD - KSIZE) // stride + 1
    m = np.zeros((KSIZE * KSIZE, hi * wi, ho * wo), np.float32)
    for kh in range(KSIZE):
        for kw in range(KSIZE):
            k = kh * KSIZE + kw
            for oh in range(ho):
                ih = oh * stride + kh - PAD
                if ih < 0 or ih >= hi:
                    continue
                for ow in range(wo):
                    iw = ow * stride + kw - PAD
                    if iw < 0 or iw >= wi:
                        continue
                    m[k, ih * wi + iw, oh * wo + ow] = 1.0
    return jnp.asarray(m, jnp.bfloat16), (ho, wo)


def _fused_conv_weight_T(w_np, batch):
    """(9, cin, cout) per-image -> transposed block-diag (B*cout, 9*B*cin)."""
    k, cin, cout = w_np.shape
    wf = np.zeros((k, batch * cin, batch * cout), np.float32)
    for b in range(batch):
        wf[:, b * cin:(b + 1) * cin, b * cout:(b + 1) * cout] = w_np
    # rows = fused output channel n, cols ordered tap-major / channel-minor.
    return jnp.asarray(wf.transpose(2, 0, 1).reshape(batch * cout, k * batch * cin))


def init_adversarial_params(key, batch=2, in_ch=3, height=16, width=16):
    cfg = [(in_ch, 8, 1), (8, 16, 2), (16, 32, 2)]       # (Cin, Cout, stride)
    keys = jax.random.split(key, len(cfg) + 2)
    params = {}
    hi, wi = height, width
    for idx, ((cin, cout, stride), k) in enumerate(zip(cfg, keys[:len(cfg)])):
        w = np.asarray(jax.random.normal(k, (KSIZE, KSIZE, cin, cout), jnp.float32))
        w = w * (1.0 / np.sqrt(KSIZE * KSIZE * cin))
        cin_pad = max(cin, MIN_CH)
        if cin_pad != cin:
            w = np.concatenate(
                [w, np.zeros((KSIZE, KSIZE, cin_pad - cin, cout), np.float32)], axis=2)
        w = w.reshape(KSIZE * KSIZE, cin_pad, cout)        # (9, cin_pad, cout)
        params[f"w{idx + 1}t"] = _fused_conv_weight_T(w, batch)
        params[f"b{idx + 1}t"] = jnp.zeros((batch * cout, 1), jnp.float32)
        if stride == 1:
            ho, wo = hi, wi                                # layer 1 uses in-kernel rolls
        else:
            params[f"s{idx + 1}t"], (ho, wo) = _shift_matrices_T(hi, wi, stride)
        hi, wi = ho, wo
    feat_pos, feat_ch = hi * wi, cfg[-1][1]                # 16 positions, 32 channels
    feat_dim = feat_pos * feat_ch                          # 512
    k1, k2 = keys[-2], keys[-1]
    wfc1 = np.asarray(jax.random.normal(k1, (feat_dim, 32), jnp.float32))
    wfc1 = wfc1 / np.sqrt(float(feat_dim))
    # fc1 consumes the position-major / channel-minor (NHWC-style) flatten;
    # kernel layout is (position, channel, out) and the weights are shared
    # across the batch (weights are synthetic, so the convention is internal).
    params["wfc1"] = jnp.asarray(wfc1.reshape(feat_pos, feat_ch, 32))
    params["bfc1"] = jnp.zeros((1, 32), jnp.float32)
    wfc2 = np.asarray(jax.random.normal(k2, (32, 1), jnp.float32)) / np.sqrt(32.0)
    params["wfc2"] = jnp.asarray(wfc2.reshape(1, 32))
    params["bfc2"] = jnp.zeros((1, 1), jnp.float32)
    return params


# --------------------------------- wrapper ----------------------------------- #

@functools.partial(jax.jit, static_argnames=("gan_type",))
def adversarial_generator_loss(params, fake_nchw, real_nchw, *, gan_type="GAN"):
    if gan_type not in ("GAN", "WGAN", "WGAN_GP"):
        raise ValueError(f"unsupported gan_type: {gan_type!r}")
    # TODO(synk): the gan_k discriminator-update loop (zero_grad/backward/step,
    # .item() accumulation, WGAN-GP autograd gradient penalty, WGAN weight
    # clamping, scheduler) is training-time state mutation with no forward-kernel
    # equivalent; only the returned generator loss is computed here.
    del real_nchw                                          # only used by the D-update loop
    bsz, c, h, w = fake_nchw.shape
    if w & (w - 1):
        raise ValueError("width must be a power of two for the in-kernel tap masks")
    cin_pad = max(c, MIN_CH)
    cin_fused = params["w1t"].shape[1] // (KSIZE * KSIZE)
    if cin_fused != bsz * cin_pad or params["s2t"].shape[1] != h * w:
        raise ValueError("params were built for a different batch / input shape")

    x = fake_nchw.astype(jnp.float32)
    if cin_pad != c:
        x = jnp.pad(x, ((0, 0), (0, cin_pad - c), (0, 0), (0, 0)))
    x_t = x.reshape(bsz * cin_pad, h * w)                  # (fused channels, positions)

    args = (x_t, params["w1t"], params["b1t"],
            params["s2t"], params["w2t"], params["b2t"],
            params["s3t"], params["w3t"], params["b3t"],
            params["wfc1"], params["bfc1"], params["wfc2"], params["bfc2"])

    hw1, hw2, hw3 = h * w, params["s2t"].shape[2], params["s3t"].shape[2]
    c1, c2, c3 = (params["w1t"].shape[0], params["w2t"].shape[0],
                  params["w3t"].shape[0])
    flops = 2 * (c1 * params["w1t"].shape[1] * hw1
                 + KSIZE * KSIZE * c1 * hw1 * hw2 + c2 * params["w2t"].shape[1] * hw2
                 + KSIZE * KSIZE * c2 * hw2 * hw3 + c3 * params["w3t"].shape[1] * hw3
                 + bsz * params["wfc1"].size + bsz * params["wfc2"].size)
    bytes_accessed = sum(int(np.prod(a.shape)) * a.dtype.itemsize for a in args) + 4

    kernel = functools.partial(_fused_disc_loss_kernel, gan_type=gan_type,
                               batch=bsz, height=h, width=w)
    loss = pl.pallas_call(
        kernel,
        out_shape=jax.ShapeDtypeStruct((1, 1), jnp.float32),
        in_specs=[pl.BlockSpec(memory_space=pltpu.MemorySpace.VMEM) for _ in args],
        out_specs=pl.BlockSpec(memory_space=pltpu.MemorySpace.VMEM),
        cost_estimate=pl.CostEstimate(flops=int(flops), transcendentals=2 * bsz,
                                      bytes_accessed=int(bytes_accessed)),
        compiler_params=pltpu.CompilerParams(),            # grid-less, single core
    )(*args)
    return loss[0, 0]


# ----------------------------------- main ------------------------------------ #

if __name__ == "__main__":
    key = jax.random.PRNGKey(0)
    kp, kf, kr = jax.random.split(key, 3)
    params = init_adversarial_params(kp, batch=2, in_ch=3, height=16, width=16)
    fake = jax.random.normal(kf, (2, 3, 16, 16), jnp.float32)
    real = jax.random.normal(kr, (2, 3, 16, 16), jnp.float32)

    loss_g = adversarial_generator_loss(params, fake, real, gan_type="GAN")
    jax.block_until_ready(loss_g)
    print("KERNEL_OK")
</pallas_src>

<mosaic_0001>
module attributes {stable_mosaic.version = 11 : i64} {
  func.func @_fused_disc_loss_kernel(%arg0: memref<16x256xf32, #tpu.memory_space<vmem>>, %arg1: memref<16x144xf32, #tpu.memory_space<vmem>>, %arg2: memref<16x1xf32, #tpu.memory_space<vmem>>, %arg3: memref<9x256x64xbf16, #tpu.memory_space<vmem>>, %arg4: memref<32x144xf32, #tpu.memory_space<vmem>>, %arg5: memref<32x1xf32, #tpu.memory_space<vmem>>, %arg6: memref<9x64x16xbf16, #tpu.memory_space<vmem>>, %arg7: memref<64x288xf32, #tpu.memory_space<vmem>>, %arg8: memref<64x1xf32, #tpu.memory_space<vmem>>, %arg9: memref<16x32x32xf32, #tpu.memory_space<vmem>>, %arg10: memref<1x32xf32, #tpu.memory_space<vmem>>, %arg11: memref<1x32xf32, #tpu.memory_space<vmem>>, %arg12: memref<1x1xf32, #tpu.memory_space<vmem>>, %arg13: memref<1x1xf32, #tpu.memory_space<vmem>>) attributes {dimension_semantics = [], scalar_prefetch = 0 : i64, scratch_operands = 0 : i64, tpu.core_type = #tpu.core_type<tc>} {
    %c0 = arith.constant 0 : index
    %c0_0 = arith.constant 0 : index
    %0 = vector.load %arg0[%c0, %c0_0] : memref<16x256xf32, #tpu.memory_space<vmem>>, vector<16x256xf32>
    %1 = tpu.iota {dimensions = array<i32: 1>} : vector<16x256xi32>
    %c15_i32 = arith.constant 15 : i32
    %2 = vector.broadcast %c15_i32 : i32 to vector<16x256xi32>
    %3 = arith.andi %1, %2 : vector<16x256xi32>
    %c17_i32 = arith.constant 17 : i32
    %4 = tpu.dynamic_rotate %0 by %c17_i32 dim 1 : vector<16x256xf32>, i32 -> vector<16x256xf32>
    %c16_i32 = arith.constant 16 : i32
    %5 = vector.broadcast %c16_i32 : i32 to vector<16x256xi32>
    %6 = arith.cmpi sge, %1, %5 : vector<16x256xi32>
    %c1_i32 = arith.constant 1 : i32
    %7 = vector.broadcast %c1_i32 : i32 to vector<16x256xi32>
    %8 = arith.cmpi sge, %3, %7 : vector<16x256xi32>
    %9 = arith.andi %6, %8 : vector<16x256xi1>
    %cst = arith.constant 0.000000e+00 : f32
    %10 = vector.broadcast %cst : f32 to vector<16x256xf32>
    %11 = arith.select %9, %4, %10 : vector<16x256xi1>, vector<16x256xf32>
    %c16_i32_1 = arith.constant 16 : i32
    %12 = tpu.dynamic_rotate %0 by %c16_i32_1 dim 1 : vector<16x256xf32>, i32 -> vector<16x256xf32>
    %c16_i32_2 = arith.constant 16 : i32
    %13 = vector.broadcast %c16_i32_2 : i32 to vector<16x256xi32>
    %14 = arith.cmpi sge, %1, %13 : vector<16x256xi32>
    %cst_3 = arith.constant 0.000000e+00 : f32
    %15 = vector.broadcast %cst_3 : f32 to vector<16x256xf32>
    %16 = arith.select %14, %12, %15 : vector<16x256xi1>, vector<16x256xf32>
    %c15_i32_4 = arith.constant 15 : i32
    %17 = tpu.dynamic_rotate %0 by %c15_i32_4 dim 1 : vector<16x256xf32>, i32 -> vector<16x256xf32>
    %c16_i32_5 = arith.constant 16 : i32
    %18 = vector.broadcast %c16_i32_5 : i32 to vector<16x256xi32>
    %19 = arith.cmpi sge, %1, %18 : vector<16x256xi32>
    %c14_i32 = arith.constant 14 : i32
    %20 = vector.broadcast %c14_i32 : i32 to vector<16x256xi32>
    %21 = arith.cmpi sle, %3, %20 : vector<16x256xi32>
    %22 = arith.andi %19, %21 : vector<16x256xi1>
    %cst_6 = arith.constant 0.000000e+00 : f32
    %23 = vector.broadcast %cst_6 : f32 to vector<16x256xf32>
    %24 = arith.select %22, %17, %23 : vector<16x256xi1>, vector<16x256xf32>
    %c1_i32_7 = arith.constant 1 : i32
    %25 = tpu.dynamic_rotate %0 by %c1_i32_7 dim 1 : vector<16x256xf32>, i32 -> vector<16x256xf32>
    %c1_i32_8 = arith.constant 1 : i32
    %26 = vector.broadcast %c1_i32_8 : i32 to vector<16x256xi32>
    %27 = arith.cmpi sge, %3, %26 : vector<16x256xi32>
    %cst_9 = arith.constant 0.000000e+00 : f32
    %28 = vector.broadcast %cst_9 : f32 to vector<16x256xf32>
    %29 = arith.select %27, %25, %28 : vector<16x256xi1>, vector<16x256xf32>
    %c255_i32 = arith.constant 255 : i32
    %30 = tpu.dynamic_rotate %0 by %c255_i32 dim 1 : vector<16x256xf32>, i32 -> vector<16x256xf32>
    %c14_i32_10 = arith.constant 14 : i32
    %31 = vector.broadcast %c14_i32_10 : i32 to vector<16x256xi32>
    %32 = arith.cmpi sle, %3, %31 : vector<16x256xi32>
    %cst_11 = arith.constant 0.000000e+00 : f32
    %33 = vector.broadcast %cst_11 : f32 to vector<16x256xf32>
    %34 = arith.select %32, %30, %33 : vector<16x256xi1>, vector<16x256xf32>
    %c241_i32 = arith.constant 241 : i32
    %35 = tpu.dynamic_rotate %0 by %c241_i32 dim 1 : vector<16x256xf32>, i32 -> vector<16x256xf32>
    %c240_i32 = arith.constant 240 : i32
    %36 = vector.broadcast %c240_i32 : i32 to vector<16x256xi32>
    %37 = arith.cmpi slt, %1, %36 : vector<16x256xi32>
    %c1_i32_12 = arith.constant 1 : i32
    %38 = vector.broadcast %c1_i32_12 : i32 to vector<16x256xi32>
    %39 = arith.cmpi sge, %3, %38 : vector<16x256xi32>
    %40 = arith.andi %37, %39 : vector<16x256xi1>
    %cst_13 = arith.constant 0.000000e+00 : f32
    %41 = vector.broadcast %cst_13 : f32 to vector<16x256xf32>
    %42 = arith.select %40, %35, %41 : vector<16x256xi1>, vector<16x256xf32>
    %c240_i32_14 = arith.constant 240 : i32
    %43 = tpu.dynamic_rotate %0 by %c240_i32_14 dim 1 : vector<16x256xf32>, i32 -> vector<16x256xf32>
    %c240_i32_15 = arith.constant 240 : i32
    %44 = vector.broadcast %c240_i32_15 : i32 to vector<16x256xi32>
    %45 = arith.cmpi slt, %1, %44 : vector<16x256xi32>
    %cst_16 = arith.constant 0.000000e+00 : f32
    %46 = vector.broadcast %cst_16 : f32 to vector<16x256xf32>
    %47 = arith.select %45, %43, %46 : vector<16x256xi1>, vector<16x256xf32>
    %c239_i32 = arith.constant 239 : i32
    %48 = tpu.dynamic_rotate %0 by %c239_i32 dim 1 : vector<16x256xf32>, i32 -> vector<16x256xf32>
    %c240_i32_17 = arith.constant 240 : i32
    %49 = vector.broadcast %c240_i32_17 : i32 to vector<16x256xi32>
    %50 = arith.cmpi slt, %1, %49 : vector<16x256xi32>
    %c14_i32_18 = arith.constant 14 : i32
    %51 = vector.broadcast %c14_i32_18 : i32 to vector<16x256xi32>
    %52 = arith.cmpi sle, %3, %51 : vector<16x256xi32>
    %53 = arith.andi %50, %52 : vector<16x256xi1>
    %cst_19 = arith.constant 0.000000e+00 : f32
    %54 = vector.broadcast %cst_19 : f32 to vector<16x256xf32>
    %55 = arith.select %53, %48, %54 : vector<16x256xi1>, vector<16x256xf32>
    %56 = tpu.concatenate %11, %16, %24, %29, %0, %34, %42, %47, %55 in 0 : vector<16x256xf32>, vector<16x256xf32>, vector<16x256xf32>, vector<16x256xf32>, vector<16x256xf32>, vector<16x256xf32>, vector<16x256xf32>, vector<16x256xf32>, vector<16x256xf32> -> vector<144x256xf32>
    %c0_20 = arith.constant 0 : index
    %c0_21 = arith.constant 0 : index
    %57 = vector.load %arg1[%c0_20, %c0_21] : memref<16x144xf32, #tpu.memory_space<vmem>>, vector<16x144xf32>
    %cst_22 = arith.constant dense<0.000000e+00> : vector<16x256xf32>
    %58 = tpu.matmul %57, %56, %cst_22 {dimension_numbers = #tpu.dot_dimension_numbers<[1], [0], [0], [1], [0, 0, 1, 1], [], []>} : vector<16x144xf32>, vector<144x256xf32>, vector<16x256xf32> -> vector<16x256xf32>
    %c0_23 = arith.constant 0 : index
    %c0_24 = arith.constant 0 : index
    %59 = vector.load %arg2[%c0_23, %c0_24] : memref<16x1xf32, #tpu.memory_space<vmem>>, vector<16x1xf32>
    %60 = vector.broadcast %59 : vector<16x1xf32> to vector<16x256xf32>
    %61 = arith.addf %58, %60 : vector<16x256xf32>
    %cst_25 = arith.constant 0.000000e+00 : f32
    %62 = vector.broadcast %cst_25 : f32 to vector<16x256xf32>
    %63 = arith.cmpf oge, %61, %62 : vector<16x256xf32>
    %cst_26 = arith.constant 2.000000e-01 : f32
    %64 = vector.broadcast %cst_26 : f32 to vector<16x256xf32>
    %65 = arith.mulf %64, %61 : vector<16x256xf32>
    %66 = arith.select %63, %61, %65 : vector<16x256xi1>, vector<16x256xf32>
    %c0_27 = arith.constant 0 : index
    %c0_28 = arith.constant 0 : index
    %c0_29 = arith.constant 0 : index
    %67 = vector.load %arg3[%c0_27, %c0_28, %c0_29] : memref<9x256x64xbf16, #tpu.memory_space<vmem>>, vector<1x256x64xbf16>
    %68 = vector.shape_cast %67 : vector<1x256x64xbf16> to vector<256x64xbf16>
    %69 = arith.extf %68 : vector<256x64xbf16> to vector<256x64xf32>
    %cst_30 = arith.constant dense<0.000000e+00> : vector<16x64xf32>
    %70 = tpu.matmul %66, %69, %cst_30 {dimension_numbers = #tpu.dot_dimension_numbers<[1], [0], [0], [1], [0, 0, 1, 1], [], []>} : vector<16x256xf32>, vector<256x64xf32>, vector<16x64xf32> -> vector<16x64xf32>
    %c1 = arith.constant 1 : index
    %c0_31 = arith.constant 0 : index
    %c0_32 = arith.constant 0 : index
    %71 = vector.load %arg3[%c1, %c0_31, %c0_32] : memref<9x256x64xbf16, #tpu.memory_space<vmem>>, vector<1x256x64xbf16>
    %72 = vector.shape_cast %71 : vector<1x256x64xbf16> to vector<256x64xbf16>
    %73 = arith.extf %72 : vector<256x64xbf16> to vector<256x64xf32>
    %cst_33 = arith.constant dense<0.000000e+00> : vector<16x64xf32>
    %74 = tpu.matmul %66, %73, %cst_33 {dimension_numbers = #tpu.dot_dimension_numbers<[1], [0], [0], [1], [0, 0, 1, 1], [], []>} : vector<16x256xf32>, vector<256x64xf32>, vector<16x64xf32> -> vector<16x64xf32>
    %c2 = arith.constant 2 : index
    %c0_34 = arith.constant 0 : index
    %c0_35 = arith.constant 0 : index
    %75 = vector.load %arg3[%c2, %c0_34, %c0_35] : memref<9x256x64xbf16, #tpu.memory_space<vmem>>, vector<1x256x64xbf16>
    %76 = vector.shape_cast %75 : vector<1x256x64xbf16> to vector<256x64xbf16>
    %77 = arith.extf %76 : vector<256x64xbf16> to vector<256x64xf32>
    %cst_36 = arith.constant dense<0.000000e+00> : vector<16x64xf32>
    %78 = tpu.matmul %66, %77, %cst_36 {dimension_numbers = #tpu.dot_dimension_numbers<[1], [0], [0], [1], [0, 0, 1, 1], [], []>} : vector<16x256xf32>, vector<256x64xf32>, vector<16x64xf32> -> vector<16x64xf32>
    %c3 = arith.constant 3 : index
    %c0_37 = arith.constant 0 : index
    %c0_38 = arith.constant 0 : index
    %79 = vector.load %arg3[%c3, %c0_37, %c0_38] : memref<9x256x64xbf16, #tpu.memory_space<vmem>>, vector<1x256x64xbf16>
    %80 = vector.shape_cast %79 : vector<1x256x64xbf16> to vector<256x64xbf16>
    %81 = arith.extf %80 : vector<256x64xbf16> to vector<256x64xf32>
    %cst_39 = arith.constant dense<0.000000e+00> : vector<16x64xf32>
    %82 = tpu.matmul %66, %81, %cst_39 {dimension_numbers = #tpu.dot_dimension_numbers<[1], [0], [0], [1], [0, 0, 1, 1], [], []>} : vector<16x256xf32>, vector<256x64xf32>, vector<16x64xf32> -> vector<16x64xf32>
    %c4 = arith.constant 4 : index
    %c0_40 = arith.constant 0 : index
    %c0_41 = arith.constant 0 : index
    %83 = vector.load %arg3[%c4, %c0_40, %c0_41] : memref<9x256x64xbf16, #tpu.memory_space<vmem>>, vector<1x256x64xbf16>
    %84 = vector.shape_cast %83 : vector<1x256x64xbf16> to vector<256x64xbf16>
    %85 = arith.extf %84 : vector<256x64xbf16> to vector<256x64xf32>
    %cst_42 = arith.constant dense<0.000000e+00> : vector<16x64xf32>
    %86 = tpu.matmul %66, %85, %cst_42 {dimension_numbers = #tpu.dot_dimension_numbers<[1], [0], [0], [1], [0, 0, 1, 1], [], []>} : vector<16x256xf32>, vector<256x64xf32>, vector<16x64xf32> -> vector<16x64xf32>
    %c5 = arith.constant 5 : index
    %c0_43 = arith.constant 0 : index
    %c0_44 = arith.constant 0 : index
    %87 = vector.load %arg3[%c5, %c0_43, %c0_44] : memref<9x256x64xbf16, #tpu.memory_space<vmem>>, vector<1x256x64xbf16>
    %88 = vector.shape_cast %87 : vector<1x256x64xbf16> to vector<256x64xbf16>
    %89 = arith.extf %88 : vector<256x64xbf16> to vector<256x64xf32>
    %cst_45 = arith.constant dense<0.000000e+00> : vector<16x64xf32>
    %90 = tpu.matmul %66, %89, %cst_45 {dimension_numbers = #tpu.dot_dimension_numbers<[1], [0], [0], [1], [0, 0, 1, 1], [], []>} : vector<16x256xf32>, vector<256x64xf32>, vector<16x64xf32> -> vector<16x64xf32>
    %c6 = arith.constant 6 : index
    %c0_46 = arith.constant 0 : index
    %c0_47 = arith.constant 0 : index
    %91 = vector.load %arg3[%c6, %c0_46, %c0_47] : memref<9x256x64xbf16, #tpu.memory_space<vmem>>, vector<1x256x64xbf16>
    %92 = vector.shape_cast %91 : vector<1x256x64xbf16> to vector<256x64xbf16>
    %93 = arith.extf %92 : vector<256x64xbf16> to vector<256x64xf32>
    %cst_48 = arith.constant dense<0.000000e+00> : vector<16x64xf32>
    %94 = tpu.matmul %66, %93, %cst_48 {dimension_numbers = #tpu.dot_dimension_numbers<[1], [0], [0], [1], [0, 0, 1, 1], [], []>} : vector<16x256xf32>, vector<256x64xf32>, vector<16x64xf32> -> vector<16x64xf32>
    %c7 = arith.constant 7 : index
    %c0_49 = arith.constant 0 : index
    %c0_50 = arith.constant 0 : index
    %95 = vector.load %arg3[%c7, %c0_49, %c0_50] : memref<9x256x64xbf16, #tpu.memory_space<vmem>>, vector<1x256x64xbf16>
    %96 = vector.shape_cast %95 : vector<1x256x64xbf16> to vector<256x64xbf16>
    %97 = arith.extf %96 : vector<256x64xbf16> to vector<256x64xf32>
    %cst_51 = arith.constant dense<0.000000e+00> : vector<16x64xf32>
    %98 = tpu.matmul %66, %97, %cst_51 {dimension_numbers = #tpu.dot_dimension_numbers<[1], [0], [0], [1], [0, 0, 1, 1], [], []>} : vector<16x256xf32>, vector<256x64xf32>, vector<16x64xf32> -> vector<16x64xf32>
    %c8 = arith.constant 8 : index
    %c0_52 = arith.constant 0 : index
    %c0_53 = arith.constant 0 : index
    %99 = vector.load %arg3[%c8, %c0_52, %c0_53] : memref<9x256x64xbf16, #tpu.memory_space<vmem>>, vector<1x256x64xbf16>
    %100 = vector.shape_cast %99 : vector<1x256x64xbf16> to vector<256x64xbf16>
    %101 = arith.extf %100 : vector<256x64xbf16> to vector<256x64xf32>
    %cst_54 = arith.constant dense<0.000000e+00> : vector<16x64xf32>
    %102 = tpu.matmul %66, %101, %cst_54 {dimension_numbers = #tpu.dot_dimension_numbers<[1], [0], [0], [1], [0, 0, 1, 1], [], []>} : vector<16x256xf32>, vector<256x64xf32>, vector<16x64xf32> -> vector<16x64xf32>
    %103 = tpu.concatenate %70, %74, %78, %82, %86, %90, %94, %98, %102 in 0 : vector<16x64xf32>, vector<16x64xf32>, vector<16x64xf32>, vector<16x64xf32>, vector<16x64xf32>, vector<16x64xf32>, vector<16x64xf32>, vector<16x64xf32>, vector<16x64xf32> -> vector<144x64xf32>
    %c0_55 = arith.constant 0 : index
    %c0_56 = arith.constant 0 : index
    %104 = vector.load %arg4[%c0_55, %c0_56] : memref<32x144xf32, #tpu.memory_space<vmem>>, vector<32x144xf32>
    %cst_57 = arith.constant dense<0.000000e+00> : vector<32x64xf32>
    %105 = tpu.matmul %104, %103, %cst_57 {dimension_numbers = #tpu.dot_dimension_numbers<[1], [0], [0], [1], [0, 0, 1, 1], [], []>} : vector<32x144xf32>, vector<144x64xf32>, vector<32x64xf32> -> vector<32x64xf32>
    %c0_58 = arith.constant 0 : index
    %c0_59 = arith.constant 0 : index
    %106 = vector.load %arg5[%c0_58, %c0_59] : memref<32x1xf32, #tpu.memory_space<vmem>>, vector<32x1xf32>
    %107 = vector.broadcast %106 : vector<32x1xf32> to vector<32x64xf32>
    %108 = arith.addf %105, %107 : vector<32x64xf32>
    %cst_60 = arith.constant 0.000000e+00 : f32
    %109 = vector.broadcast %cst_60 : f32 to vector<32x64xf32>
    %110 = arith.cmpf oge, %108, %109 : vector<32x64xf32>
    %cst_61 = arith.constant 2.000000e-01 : f32
    %111 = vector.broadcast %cst_61 : f32 to vector<32x64xf32>
    %112 = arith.mulf %111, %108 : vector<32x64xf32>
    %113 = arith.select %110, %108, %112 : vector<32x64xi1>, vector<32x64xf32>
    %c0_62 = arith.constant 0 : index
    %c0_63 = arith.constant 0 : index
    %c0_64 = arith.constant 0 : index
    %114 = vector.load %arg6[%c0_62, %c0_63, %c0_64] : memref<9x64x16xbf16, #tpu.memory_space<vmem>>, vector<1x64x16xbf16>
    %115 = vector.shape_cast %114 : vector<1x64x16xbf16> to vector<64x16xbf16>
    %116 = arith.extf %115 : vector<64x16xbf16> to vector<64x16xf32>
    %cst_65 = arith.constant dense<0.000000e+00> : vector<32x16xf32>
    %117 = tpu.matmul %113, %116, %cst_65 {dimension_numbers = #tpu.dot_dimension_numbers<[1], [0], [0], [1], [0, 0, 1, 1], [], []>} : vector<32x64xf32>, vector<64x16xf32>, vector<32x16xf32> -> vector<32x16xf32>
    %c1_66 = arith.constant 1 : index
    %c0_67 = arith.constant 0 : index
    %c0_68 = arith.constant 0 : index
    %118 = vector.load %arg6[%c1_66, %c0_67, %c0_68] : memref<9x64x16xbf16, #tpu.memory_space<vmem>>, vector<1x64x16xbf16>
    %119 = vector.shape_cast %118 : vector<1x64x16xbf16> to vector<64x16xbf16>
    %120 = arith.extf %119 : vector<64x16xbf16> to vector<64x16xf32>
    %cst_69 = arith.constant dense<0.000000e+00> : vector<32x16xf32>
    %121 = tpu.matmul %113, %120, %cst_69 {dimension_numbers = #tpu.dot_dimension_numbers<[1], [0], [0], [1], [0, 0, 1, 1], [], []>} : vector<32x64xf32>, vector<64x16xf32>, vector<32x16xf32> -> vector<32x16xf32>
    %c2_70 = arith.constant 2 : index
    %c0_71 = arith.constant 0 : index
    %c0_72 = arith.constant 0 : index
    %122 = vector.load %arg6[%c2_70, %c0_71, %c0_72] : memref<9x64x16xbf16, #tpu.memory_space<vmem>>, vector<1x64x16xbf16>
    %123 = vector.shape_cast %122 : vector<1x64x16xbf16> to vector<64x16xbf16>
    %124 = arith.extf %123 : vector<64x16xbf16> to vector<64x16xf32>
    %cst_73 = arith.constant dense<0.000000e+00> : vector<32x16xf32>
    %125 = tpu.matmul %113, %124, %cst_73 {dimension_numbers = #tpu.dot_dimension_numbers<[1], [0], [0], [1], [0, 0, 1, 1], [], []>} : vector<32x64xf32>, vector<64x16xf32>, vector<32x16xf32> -> vector<32x16xf32>
    %c3_74 = arith.constant 3 : index
    %c0_75 = arith.constant 0 : index
    %c0_76 = arith.constant 0 : index
    %126 = vector.load %arg6[%c3_74, %c0_75, %c0_76] : memref<9x64x16xbf16, #tpu.memory_space<vmem>>, vector<1x64x16xbf16>
    %127 = vector.shape_cast %126 : vector<1x64x16xbf16> to vector<64x16xbf16>
    %128 = arith.extf %127 : vector<64x16xbf16> to vector<64x16xf32>
    %cst_77 = arith.constant dense<0.000000e+00> : vector<32x16xf32>
    %129 = tpu.matmul %113, %128, %cst_77 {dimension_numbers = #tpu.dot_dimension_numbers<[1], [0], [0], [1], [0, 0, 1, 1], [], []>} : vector<32x64xf32>, vector<64x16xf32>, vector<32x16xf32> -> vector<32x16xf32>
    %c4_78 = arith.constant 4 : index
    %c0_79 = arith.constant 0 : index
    %c0_80 = arith.constant 0 : index
    %130 = vector.load %arg6[%c4_78, %c0_79, %c0_80] : memref<9x64x16xbf16, #tpu.memory_space<vmem>>, vector<1x64x16xbf16>
    %131 = vector.shape_cast %130 : vector<1x64x16xbf16> to vector<64x16xbf16>
    %132 = arith.extf %131 : vector<64x16xbf16> to vector<64x16xf32>
    %cst_81 = arith.constant dense<0.000000e+00> : vector<32x16xf32>
    %133 = tpu.matmul %113, %132, %cst_81 {dimension_numbers = #tpu.dot_dimension_numbers<[1], [0], [0], [1], [0, 0, 1, 1], [], []>} : vector<32x64xf32>, vector<64x16xf32>, vector<32x16xf32> -> vector<32x16xf32>
    %c5_82 = arith.constant 5 : index
    %c0_83 = arith.constant 0 : index
    %c0_84 = arith.constant 0 : index
    %134 = vector.load %arg6[%c5_82, %c0_83, %c0_84] : memref<9x64x16xbf16, #tpu.memory_space<vmem>>, vector<1x64x16xbf16>
    %135 = vector.shape_cast %134 : vector<1x64x16xbf16> to vector<64x16xbf16>
    %136 = arith.extf %135 : vector<64x16xbf16> to vector<64x16xf32>
    %cst_85 = arith.constant dense<0.000000e+00> : vector<32x16xf32>
    %137 = tpu.matmul %113, %136, %cst_85 {dimension_numbers = #tpu.dot_dimension_numbers<[1], [0], [0], [1], [0, 0, 1, 1], [], []>} : vector<32x64xf32>, vector<64x16xf32>, vector<32x16xf32> -> vector<32x16xf32>
    %c6_86 = arith.constant 6 : index
    %c0_87 = arith.constant 0 : index
    %c0_88 = arith.constant 0 : index
    %138 = vector.load %arg6[%c6_86, %c0_87, %c0_88] : memref<9x64x16xbf16, #tpu.memory_space<vmem>>, vector<1x64x16xbf16>
    %139 = vector.shape_cast %138 : vector<1x64x16xbf16> to vector<64x16xbf16>
    %140 = arith.extf %139 : vector<64x16xbf16> to vector<64x16xf32>
    %cst_89 = arith.constant dense<0.000000e+00> : vector<32x16xf32>
    %141 = tpu.matmul %113, %140, %cst_89 {dimension_numbers = #tpu.dot_dimension_numbers<[1], [0], [0], [1], [0, 0, 1, 1], [], []>} : vector<32x64xf32>, vector<64x16xf32>, vector<32x16xf32> -> vector<32x16xf32>
    %c7_90 = arith.constant 7 : index
    %c0_91 = arith.constant 0 : index
    %c0_92 = arith.constant 0 : index
    %142 = vector.load %arg6[%c7_90, %c0_91, %c0_92] : memref<9x64x16xbf16, #tpu.memory_space<vmem>>, vector<1x64x16xbf16>
    %143 = vector.shape_cast %142 : vector<1x64x16xbf16> to vector<64x16xbf16>
    %144 = arith.extf %143 : vector<64x16xbf16> to vector<64x16xf32>
    %cst_93 = arith.constant dense<0.000000e+00> : vector<32x16xf32>
    %145 = tpu.matmul %113, %144, %cst_93 {dimension_numbers = #tpu.dot_dimension_numbers<[1], [0], [0], [1], [0, 0, 1, 1], [], []>} : vector<32x64xf32>, vector<64x16xf32>, vector<32x16xf32> -> vector<32x16xf32>
    %c8_94 = arith.constant 8 : index
    %c0_95 = arith.constant 0 : index
    %c0_96 = arith.constant 0 : index
    %146 = vector.load %arg6[%c8_94, %c0_95, %c0_96] : memref<9x64x16xbf16, #tpu.memory_space<vmem>>, vector<1x64x16xbf16>
    %147 = vector.shape_cast %146 : vector<1x64x16xbf16> to vector<64x16xbf16>
    %148 = arith.extf %147 : vector<64x16xbf16> to vector<64x16xf32>
    %cst_97 = arith.constant dense<0.000000e+00> : vector<32x16xf32>
    %149 = tpu.matmul %113, %148, %cst_97 {dimension_numbers = #tpu.dot_dimension_numbers<[1], [0], [0], [1], [0, 0, 1, 1], [], []>} : vector<32x64xf32>, vector<64x16xf32>, vector<32x16xf32> -> vector<32x16xf32>
    %150 = tpu.concatenate %117, %121, %125, %129, %133, %137, %141, %145, %149 in 0 : vector<32x16xf32>, vector<32x16xf32>, vector<32x16xf32>, vector<32x16xf32>, vector<32x16xf32>, vector<32x16xf32>, vector<32x16xf32>, vector<32x16xf32>, vector<32x16xf32> -> vector<288x16xf32>
    %c0_98 = arith.constant 0 : index
    %c0_99 = arith.constant 0 : index
    %151 = vector.load %arg7[%c0_98, %c0_99] : memref<64x288xf32, #tpu.memory_space<vmem>>, vector<64x288xf32>
    %cst_100 = arith.constant dense<0.000000e+00> : vector<64x16xf32>
    %152 = tpu.matmul %151, %150, %cst_100 {dimension_numbers = #tpu.dot_dimension_numbers<[1], [0], [0], [1], [0, 0, 1, 1], [], []>} : vector<64x288xf32>, vector<288x16xf32>, vector<64x16xf32> -> vector<64x16xf32>
    %c0_101 = arith.constant 0 : index
    %c0_102 = arith.constant 0 : index
    %153 = vector.load %arg8[%c0_101, %c0_102] : memref<64x1xf32, #tpu.memory_space<vmem>>, vector<64x1xf32>
    %154 = vector.broadcast %153 : vector<64x1xf32> to vector<64x16xf32>
    %155 = arith.addf %152, %154 : vector<64x16xf32>
    %cst_103 = arith.constant 0.000000e+00 : f32
    %156 = vector.broadcast %cst_103 : f32 to vector<64x16xf32>
    %157 = arith.cmpf oge, %155, %156 : vector<64x16xf32>
    %cst_104 = arith.constant 2.000000e-01 : f32
    %158 = vector.broadcast %cst_104 : f32 to vector<64x16xf32>
    %159 = arith.mulf %158, %155 : vector<64x16xf32>
    %160 = arith.select %157, %155, %159 : vector<64x16xi1>, vector<64x16xf32>
    %161 = vector.extract_strided_slice %160 {offsets = [0, 0], sizes = [32, 16], strides = [1, 1]} : vector<64x16xf32> to vector<32x16xf32>
    %cst_105 = arith.constant 0.000000e+00 : f32
    %162 = vector.broadcast %cst_105 : f32 to vector<32x32xf32>
    %163 = vector.extract_strided_slice %161 {offsets = [0, 0], sizes = [32, 1], strides = [1, 1]} : vector<32x16xf32> to vector<32x1xf32>
    %c0_106 = arith.constant 0 : index
    %c0_107 = arith.constant 0 : index
    %c0_108 = arith.constant 0 : index
    %164 = vector.load %arg9[%c0_106, %c0_107, %c0_108] : memref<16x32x32xf32, #tpu.memory_space<vmem>>, vector<1x32x32xf32>
    %165 = vector.shape_cast %164 : vector<1x32x32xf32> to vector<32x32xf32>
    %166 = vector.broadcast %163 : vector<32x1xf32> to vector<32x32xf32>
    %167 = arith.mulf %166, %165 : vector<32x32xf32>
    %168 = arith.addf %162, %167 : vector<32x32xf32>
    %169 = vector.extract_strided_slice %161 {offsets = [0, 1], sizes = [32, 1], strides = [1, 1]} : vector<32x16xf32> to vector<32x1xf32>
    %c1_109 = arith.constant 1 : index
    %c0_110 = arith.constant 0 : index
    %c0_111 = arith.constant 0 : index
    %170 = vector.load %arg9[%c1_109, %c0_110, %c0_111] : memref<16x32x32xf32, #tpu.memory_space<vmem>>, vector<1x32x32xf32>
    %171 = vector.shape_cast %170 : vector<1x32x32xf32> to vector<32x32xf32>
    %172 = vector.broadcast %169 : vector<32x1xf32> to vector<32x32xf32>
    %173 = arith.mulf %172, %171 : vector<32x32xf32>
    %174 = arith.addf %168, %173 : vector<32x32xf32>
    %175 = vector.extract_strided_slice %161 {offsets = [0, 2], sizes = [32, 1], strides = [1, 1]} : vector<32x16xf32> to vector<32x1xf32>
    %c2_112 = arith.constant 2 : index
    %c0_113 = arith.constant 0 : index
    %c0_114 = arith.constant 0 : index
    %176 = vector.load %arg9[%c2_112, %c0_113, %c0_114] : memref<16x32x32xf32, #tpu.memory_space<vmem>>, vector<1x32x32xf32>
    %177 = vector.shape_cast %176 : vector<1x32x32xf32> to vector<32x32xf32>
    %178 = vector.broadcast %175 : vector<32x1xf32> to vector<32x32xf32>
    %179 = arith.mulf %178, %177 : vector<32x32xf32>
    %180 = arith.addf %174, %179 : vector<32x32xf32>
    %181 = vector.extract_strided_slice %161 {offsets = [0, 3], sizes = [32, 1], strides = [1, 1]} : vector<32x16xf32> to vector<32x1xf32>
    %c3_115 = arith.constant 3 : index
    %c0_116 = arith.constant 0 : index
    %c0_117 = arith.constant 0 : index
    %182 = vector.load %arg9[%c3_115, %c0_116, %c0_117] : memref<16x32x32xf32, #tpu.memory_space<vmem>>, vector<1x32x32xf32>
    %183 = vector.shape_cast %182 : vector<1x32x32xf32> to vector<32x32xf32>
    %184 = vector.broadcast %181 : vector<32x1xf32> to vector<32x32xf32>
    %185 = arith.mulf %184, %183 : vector<32x32xf32>
    %186 = arith.addf %180, %185 : vector<32x32xf32>
    %187 = vector.extract_strided_slice %161 {offsets = [0, 4], sizes = [32, 1], strides = [1, 1]} : vector<32x16xf32> to vector<32x1xf32>
    %c4_118 = arith.constant 4 : index
    %c0_119 = arith.constant 0 : index
    %c0_120 = arith.constant 0 : index
    %188 = vector.load %arg9[%c4_118, %c0_119, %c0_120] : memref<16x32x32xf32, #tpu.memory_space<vmem>>, vector<1x32x32xf32>
    %189 = vector.shape_cast %188 : vector<1x32x32xf32> to vector<32x32xf32>
    %190 = vector.broadcast %187 : vector<32x1xf32> to vector<32x32xf32>
    %191 = arith.mulf %190, %189 : vector<32x32xf32>
    %192 = arith.addf %186, %191 : vector<32x32xf32>
    %193 = vector.extract_strided_slice %161 {offsets = [0, 5], sizes = [32, 1], strides = [1, 1]} : vector<32x16xf32> to vector<32x1xf32>
    %c5_121 = arith.constant 5 : index
    %c0_122 = arith.constant 0 : index
    %c0_123 = arith.constant 0 : index
    %194 = vector.load %arg9[%c5_121, %c0_122, %c0_123] : memref<16x32x32xf32, #tpu.memory_space<vmem>>, vector<1x32x32xf32>
    %195 = vector.shape_cast %194 : vector<1x32x32xf32> to vector<32x32xf32>
    %196 = vector.broadcast %193 : vector<32x1xf32> to vector<32x32xf32>
    %197 = arith.mulf %196, %195 : vector<32x32xf32>
    %198 = arith.addf %192, %197 : vector<32x32xf32>
    %199 = vector.extract_strided_slice %161 {offsets = [0, 6], sizes = [32, 1], strides = [1, 1]} : vector<32x16xf32> to vector<32x1xf32>
    %c6_124 = arith.constant 6 : index
    %c0_125 = arith.constant 0 : index
    %c0_126 = arith.constant 0 : index
    %200 = vector.load %arg9[%c6_124, %c0_125, %c0_126] : memref<16x32x32xf32, #tpu.memory_space<vmem>>, vector<1x32x32xf32>
    %201 = vector.shape_cast %200 : vector<1x32x32xf32> to vector<32x32xf32>
    %202 = vector.broadcast %199 : vector<32x1xf32> to vector<32x32xf32>
    %203 = arith.mulf %202, %201 : vector<32x32xf32>
    %204 = arith.addf %198, %203 : vector<32x32xf32>
    %205 = vector.extract_strided_slice %161 {offsets = [0, 7], sizes = [32, 1], strides = [1, 1]} : vector<32x16xf32> to vector<32x1xf32>
    %c7_127 = arith.constant 7 : index
    %c0_128 = arith.constant 0 : index
    %c0_129 = arith.constant 0 : index
    %206 = vector.load %arg9[%c7_127, %c0_128, %c0_129] : memref<16x32x32xf32, #tpu.memory_space<vmem>>, vector<1x32x32xf32>
    %207 = vector.shape_cast %206 : vector<1x32x32xf32> to vector<32x32xf32>
    %208 = vector.broadcast %205 : vector<32x1xf32> to vector<32x32xf32>
    %209 = arith.mulf %208, %207 : vector<32x32xf32>
    %210 = arith.addf %204, %209 : vector<32x32xf32>
    %211 = vector.extract_strided_slice %161 {offsets = [0, 8], sizes = [32, 1], strides = [1, 1]} : vector<32x16xf32> to vector<32x1xf32>
    %c8_130 = arith.constant 8 : index
    %c0_131 = arith.constant 0 : index
    %c0_132 = arith.constant 0 : index
    %212 = vector.load %arg9[%c8_130, %c0_131, %c0_132] : memref<16x32x32xf32, #tpu.memory_space<vmem>>, vector<1x32x32xf32>
    %213 = vector.shape_cast %212 : vector<1x32x32xf32> to vector<32x32xf32>
    %214 = vector.broadcast %211 : vector<32x1xf32> to vector<32x32xf32>
    %215 = arith.mulf %214, %213 : vector<32x32xf32>
    %216 = arith.addf %210, %215 : vector<32x32xf32>
    %217 = vector.extract_strided_slice %161 {offsets = [0, 9], sizes = [32, 1], strides = [1, 1]} : vector<32x16xf32> to vector<32x1xf32>
    %c9 = arith.constant 9 : index
    %c0_133 = arith.constant 0 : index
    %c0_134 = arith.constant 0 : index
    %218 = vector.load %arg9[%c9, %c0_133, %c0_134] : memref<16x32x32xf32, #tpu.memory_space<vmem>>, vector<1x32x32xf32>
    %219 = vector.shape_cast %218 : vector<1x32x32xf32> to vector<32x32xf32>
    %220 = vector.broadcast %217 : vector<32x1xf32> to vector<32x32xf32>
    %221 = arith.mulf %220, %219 : vector<32x32xf32>
    %222 = arith.addf %216, %221 : vector<32x32xf32>
    %223 = vector.extract_strided_slice %161 {offsets = [0, 10], sizes = [32, 1], strides = [1, 1]} : vector<32x16xf32> to vector<32x1xf32>
    %c10 = arith.constant 10 : index
    %c0_135 = arith.constant 0 : index
    %c0_136 = arith.constant 0 : index
    %224 = vector.load %arg9[%c10, %c0_135, %c0_136] : memref<16x32x32xf32, #tpu.memory_space<vmem>>, vector<1x32x32xf32>
    %225 = vector.shape_cast %224 : vector<1x32x32xf32> to vector<32x32xf32>
    %226 = vector.broadcast %223 : vector<32x1xf32> to vector<32x32xf32>
    %227 = arith.mulf %226, %225 : vector<32x32xf32>
    %228 = arith.addf %222, %227 : vector<32x32xf32>
    %229 = vector.extract_strided_slice %161 {offsets = [0, 11], sizes = [32, 1], strides = [1, 1]} : vector<32x16xf32> to vector<32x1xf32>
    %c11 = arith.constant 11 : index
    %c0_137 = arith.constant 0 : index
    %c0_138 = arith.constant 0 : index
    %230 = vector.load %arg9[%c11, %c0_137, %c0_138] : memref<16x32x32xf32, #tpu.memory_space<vmem>>, vector<1x32x32xf32>
    %231 = vector.shape_cast %230 : vector<1x32x32xf32> to vector<32x32xf32>
    %232 = vector.broadcast %229 : vector<32x1xf32> to vector<32x32xf32>
    %233 = arith.mulf %232, %231 : vector<32x32xf32>
    %234 = arith.addf %228, %233 : vector<32x32xf32>
    %235 = vector.extract_strided_slice %161 {offsets = [0, 12], sizes = [32, 1], strides = [1, 1]} : vector<32x16xf32> to vector<32x1xf32>
    %c12 = arith.constant 12 : index
    %c0_139 = arith.constant 0 : index
    %c0_140 = arith.constant 0 : index
    %236 = vector.load %arg9[%c12, %c0_139, %c0_140] : memref<16x32x32xf32, #tpu.memory_space<vmem>>, vector<1x32x32xf32>
    %237 = vector.shape_cast %236 : vector<1x32x32xf32> to vector<32x32xf32>
    %238 = vector.broadcast %235 : vector<32x1xf32> to vector<32x32xf32>
    %239 = arith.mulf %238, %237 : vector<32x32xf32>
    %240 = arith.addf %234, %239 : vector<32x32xf32>
    %241 = vector.extract_strided_slice %161 {offsets = [0, 13], sizes = [32, 1], strides = [1, 1]} : vector<32x16xf32> to vector<32x1xf32>
    %c13 = arith.constant 13 : index
    %c0_141 = arith.constant 0 : index
    %c0_142 = arith.constant 0 : index
    %242 = vector.load %arg9[%c13, %c0_141, %c0_142] : memref<16x32x32xf32, #tpu.memory_space<vmem>>, vector<1x32x32xf32>
    %243 = vector.shape_cast %242 : vector<1x32x32xf32> to vector<32x32xf32>
    %244 = vector.broadcast %241 : vector<32x1xf32> to vector<32x32xf32>
    %245 = arith.mulf %244, %243 : vector<32x32xf32>
    %246 = arith.addf %240, %245 : vector<32x32xf32>
    %247 = vector.extract_strided_slice %161 {offsets = [0, 14], sizes = [32, 1], strides = [1, 1]} : vector<32x16xf32> to vector<32x1xf32>
    %c14 = arith.constant 14 : index
    %c0_143 = arith.constant 0 : index
    %c0_144 = arith.constant 0 : index
    %248 = vector.load %arg9[%c14, %c0_143, %c0_144] : memref<16x32x32xf32, #tpu.memory_space<vmem>>, vector<1x32x32xf32>
    %249 = vector.shape_cast %248 : vector<1x32x32xf32> to vector<32x32xf32>
    %250 = vector.broadcast %247 : vector<32x1xf32> to vector<32x32xf32>
    %251 = arith.mulf %250, %249 : vector<32x32xf32>
    %252 = arith.addf %246, %251 : vector<32x32xf32>
    %253 = vector.extract_strided_slice %161 {offsets = [0, 15], sizes = [32, 1], strides = [1, 1]} : vector<32x16xf32> to vector<32x1xf32>
    %c15 = arith.constant 15 : index
    %c0_145 = arith.constant 0 : index
    %c0_146 = arith.constant 0 : index
    %254 = vector.load %arg9[%c15, %c0_145, %c0_146] : memref<16x32x32xf32, #tpu.memory_space<vmem>>, vector<1x32x32xf32>
    %255 = vector.shape_cast %254 : vector<1x32x32xf32> to vector<32x32xf32>
    %256 = vector.broadcast %253 : vector<32x1xf32> to vector<32x32xf32>
    %257 = arith.mulf %256, %255 : vector<32x32xf32>
    %258 = arith.addf %252, %257 : vector<32x32xf32>
    %cst_147 = arith.constant dense<0.000000e+00> : vector<32xf32>
    %259 = vector.multi_reduction <add>, %258, %cst_147 [0] : vector<32x32xf32> to vector<32xf32>
    %260 = vector.shape_cast %259 : vector<32xf32> to vector<1x32xf32>
    %c0_148 = arith.constant 0 : index
    %c0_149 = arith.constant 0 : index
    %261 = vector.load %arg10[%c0_148, %c0_149] : memref<1x32xf32, #tpu.memory_space<vmem>>, vector<1x32xf32>
    %262 = arith.addf %260, %261 : vector<1x32xf32>
    %cst_150 = arith.constant 0.000000e+00 : f32
    %263 = vector.broadcast %cst_150 : f32 to vector<1x32xf32>
    %264 = arith.cmpf oge, %262, %263 : vector<1x32xf32>
    %cst_151 = arith.constant 2.000000e-01 : f32
    %265 = vector.broadcast %cst_151 : f32 to vector<1x32xf32>
    %266 = arith.mulf %265, %262 : vector<1x32xf32>
    %267 = arith.select %264, %262, %266 : vector<1x32xi1>, vector<1x32xf32>
    %c0_152 = arith.constant 0 : index
    %c0_153 = arith.constant 0 : index
    %268 = vector.load %arg11[%c0_152, %c0_153] : memref<1x32xf32, #tpu.memory_space<vmem>>, vector<1x32xf32>
    %269 = arith.mulf %267, %268 : vector<1x32xf32>
    %cst_154 = arith.constant dense<0.000000e+00> : vector<1xf32>
    %270 = vector.multi_reduction <add>, %269, %cst_154 [1] : vector<1x32xf32> to vector<1xf32>
    %271 = vector.shape_cast %270 : vector<1xf32> to vector<1x1xf32>
    %c0_155 = arith.constant 0 : index
    %c0_156 = arith.constant 0 : index
    %272 = vector.load %arg12[%c0_155, %c0_156] : memref<1x1xf32, #tpu.memory_space<vmem>>, vector<1x1xf32>
    %273 = arith.addf %271, %272 : vector<1x1xf32>
    %cst_157 = arith.constant 0.000000e+00 : f32
    %274 = vector.broadcast %cst_157 : f32 to vector<1x1xf32>
    %275 = arith.subf %274, %273 : vector<1x1xf32>
    %cst_158 = arith.constant 0.000000e+00 : f32
    %276 = vector.broadcast %cst_158 : f32 to vector<1x1xf32>
    %277 = arith.maximumf %275, %276 : vector<1x1xf32>
    %278 = math.absf %275 : vector<1x1xf32>
    %cst_159 = arith.constant 0.000000e+00 : f32
    %279 = vector.broadcast %cst_159 : f32 to vector<1x1xf32>
    %280 = arith.subf %279, %278 : vector<1x1xf32>
    %281 = math.exp %280 : vector<1x1xf32>
    %cst_160 = arith.constant 1.000000e+00 : f32
    %282 = vector.broadcast %cst_160 : f32 to vector<1x1xf32>
    %283 = arith.addf %282, %281 : vector<1x1xf32>
    %284 = math.log %283 : vector<1x1xf32>
    %285 = arith.addf %277, %284 : vector<1x1xf32>
    %286 = vector.extract_strided_slice %160 {offsets = [32, 0], sizes = [32, 16], strides = [1, 1]} : vector<64x16xf32> to vector<32x16xf32>
    %cst_161 = arith.constant 0.000000e+00 : f32
    %287 = vector.broadcast %cst_161 : f32 to vector<32x32xf32>
    %288 = vector.extract_strided_slice %286 {offsets = [0, 0], sizes = [32, 1], strides = [1, 1]} : vector<32x16xf32> to vector<32x1xf32>
    %c0_162 = arith.constant 0 : index
    %c0_163 = arith.constant 0 : index
    %c0_164 = arith.constant 0 : index
    %289 = vector.load %arg9[%c0_162, %c0_163, %c0_164] : memref<16x32x32xf32, #tpu.memory_space<vmem>>, vector<1x32x32xf32>
    %290 = vector.shape_cast %289 : vector<1x32x32xf32> to vector<32x32xf32>
    %291 = vector.broadcast %288 : vector<32x1xf32> to vector<32x32xf32>
    %292 = arith.mulf %291, %290 : vector<32x32xf32>
    %293 = arith.addf %287, %292 : vector<32x32xf32>
    %294 = vector.extract_strided_slice %286 {offsets = [0, 1], sizes = [32, 1], strides = [1, 1]} : vector<32x16xf32> to vector<32x1xf32>
    %c1_165 = arith.constant 1 : index
    %c0_166 = arith.constant 0 : index
    %c0_167 = arith.constant 0 : index
    %295 = vector.load %arg9[%c1_165, %c0_166, %c0_167] : memref<16x32x32xf32, #tpu.memory_space<vmem>>, vector<1x32x32xf32>
    %296 = vector.shape_cast %295 : vector<1x32x32xf32> to vector<32x32xf32>
    %297 = vector.broadcast %294 : vector<32x1xf32> to vector<32x32xf32>
    %298 = arith.mulf %297, %296 : vector<32x32xf32>
    %299 = arith.addf %293, %298 : vector<32x32xf32>
    %300 = vector.extract_strided_slice %286 {offsets = [0, 2], sizes = [32, 1], strides = [1, 1]} : vector<32x16xf32> to vector<32x1xf32>
    %c2_168 = arith.constant 2 : index
    %c0_169 = arith.constant 0 : index
    %c0_170 = arith.constant 0 : index
    %301 = vector.load %arg9[%c2_168, %c0_169, %c0_170] : memref<16x32x32xf32, #tpu.memory_space<vmem>>, vector<1x32x32xf32>
    %302 = vector.shape_cast %301 : vector<1x32x32xf32> to vector<32x32xf32>
    %303 = vector.broadcast %300 : vector<32x1xf32> to vector<32x32xf32>
    %304 = arith.mulf %303, %302 : vector<32x32xf32>
    %305 = arith.addf %299, %304 : vector<32x32xf32>
    %306 = vector.extract_strided_slice %286 {offsets = [0, 3], sizes = [32, 1], strides = [1, 1]} : vector<32x16xf32> to vector<32x1xf32>
    %c3_171 = arith.constant 3 : index
    %c0_172 = arith.constant 0 : index
    %c0_173 = arith.constant 0 : index
    %307 = vector.load %arg9[%c3_171, %c0_172, %c0_173] : memref<16x32x32xf32, #tpu.memory_space<vmem>>, vector<1x32x32xf32>
    %308 = vector.shape_cast %307 : vector<1x32x32xf32> to vector<32x32xf32>
    %309 = vector.broadcast %306 : vector<32x1xf32> to vector<32x32xf32>
    %310 = arith.mulf %309, %308 : vector<32x32xf32>
    %311 = arith.addf %305, %310 : vector<32x32xf32>
    %312 = vector.extract_strided_slice %286 {offsets = [0, 4], sizes = [32, 1], strides = [1, 1]} : vector<32x16xf32> to vector<32x1xf32>
    %c4_174 = arith.constant 4 : index
    %c0_175 = arith.constant 0 : index
    %c0_176 = arith.constant 0 : index
    %313 = vector.load %arg9[%c4_174, %c0_175, %c0_176] : memref<16x32x32xf32, #tpu.memory_space<vmem>>, vector<1x32x32xf32>
    %314 = vector.shape_cast %313 : vector<1x32x32xf32> to vector<32x32xf32>
    %315 = vector.broadcast %312 : vector<32x1xf32> to vector<32x32xf32>
    %316 = arith.mulf %315, %314 : vector<32x32xf32>
    %317 = arith.addf %311, %316 : vector<32x32xf32>
    %318 = vector.extract_strided_slice %286 {offsets = [0, 5], sizes = [32, 1], strides = [1, 1]} : vector<32x16xf32> to vector<32x1xf32>
    %c5_177 = arith.constant 5 : index
    %c0_178 = arith.constant 0 : index
    %c0_179 = arith.constant 0 : index
    %319 = vector.load %arg9[%c5_177, %c0_178, %c0_179] : memref<16x32x32xf32, #tpu.memory_space<vmem>>, vector<1x32x32xf32>
    %320 = vector.shape_cast %319 : vector<1x32x32xf32> to vector<32x32xf32>
    %321 = vector.broadcast %318 : vector<32x1xf32> to vector<32x32xf32>
    %322 = arith.mulf %321, %320 : vector<32x32xf32>
    %323 = arith.addf %317, %322 : vector<32x32xf32>
    %324 = vector.extract_strided_slice %286 {offsets = [0, 6], sizes = [32, 1], strides = [1, 1]} : vector<32x16xf32> to vector<32x1xf32>
    %c6_180 = arith.constant 6 : index
    %c0_181 = arith.constant 0 : index
    %c0_182 = arith.constant 0 : index
    %325 = vector.load %arg9[%c6_180, %c0_181, %c0_182] : memref<16x32x32xf32, #tpu.memory_space<vmem>>, vector<1x32x32xf32>
    %326 = vector.shape_cast %325 : vector<1x32x32xf32> to vector<32x32xf32>
    %327 = vector.broadcast %324 : vector<32x1xf32> to vector<32x32xf32>
    %328 = arith.mulf %327, %326 : vector<32x32xf32>
    %329 = arith.addf %323, %328 : vector<32x32xf32>
    %330 = vector.extract_strided_slice %286 {offsets = [0, 7], sizes = [32, 1], strides = [1, 1]} : vector<32x16xf32> to vector<32x1xf32>
    %c7_183 = arith.constant 7 : index
    %c0_184 = arith.constant 0 : index
    %c0_185 = arith.constant 0 : index
    %331 = vector.load %arg9[%c7_183, %c0_184, %c0_185] : memref<16x32x32xf32, #tpu.memory_space<vmem>>, vector<1x32x32xf32>
    %332 = vector.shape_cast %331 : vector<1x32x32xf32> to vector<32x32xf32>
    %333 = vector.broadcast %330 : vector<32x1xf32> to vector<32x32xf32>
    %334 = arith.mulf %333, %332 : vector<32x32xf32>
    %335 = arith.addf %329, %334 : vector<32x32xf32>
    %336 = vector.extract_strided_slice %286 {offsets = [0, 8], sizes = [32, 1], strides = [1, 1]} : vector<32x16xf32> to vector<32x1xf32>
    %c8_186 = arith.constant 8 : index
    %c0_187 = arith.constant 0 : index
    %c0_188 = arith.constant 0 : index
    %337 = vector.load %arg9[%c8_186, %c0_187, %c0_188] : memref<16x32x32xf32, #tpu.memory_space<vmem>>, vector<1x32x32xf32>
    %338 = vector.shape_cast %337 : vector<1x32x32xf32> to vector<32x32xf32>
    %339 = vector.broadcast %336 : vector<32x1xf32> to vector<32x32xf32>
    %340 = arith.mulf %339, %338 : vector<32x32xf32>
    %341 = arith.addf %335, %340 : vector<32x32xf32>
    %342 = vector.extract_strided_slice %286 {offsets = [0, 9], sizes = [32, 1], strides = [1, 1]} : vector<32x16xf32> to vector<32x1xf32>
    %c9_189 = arith.constant 9 : index
    %c0_190 = arith.constant 0 : index
    %c0_191 = arith.constant 0 : index
    %343 = vector.load %arg9[%c9_189, %c0_190, %c0_191] : memref<16x32x32xf32, #tpu.memory_space<vmem>>, vector<1x32x32xf32>
    %344 = vector.shape_cast %343 : vector<1x32x32xf32> to vector<32x32xf32>
    %345 = vector.broadcast %342 : vector<32x1xf32> to vector<32x32xf32>
    %346 = arith.mulf %345, %344 : vector<32x32xf32>
    %347 = arith.addf %341, %346 : vector<32x32xf32>
    %348 = vector.extract_strided_slice %286 {offsets = [0, 10], sizes = [32, 1], strides = [1, 1]} : vector<32x16xf32> to vector<32x1xf32>
    %c10_192 = arith.constant 10 : index
    %c0_193 = arith.constant 0 : index
    %c0_194 = arith.constant 0 : index
    %349 = vector.load %arg9[%c10_192, %c0_193, %c0_194] : memref<16x32x32xf32, #tpu.memory_space<vmem>>, vector<1x32x32xf32>
    %350 = vector.shape_cast %349 : vector<1x32x32xf32> to vector<32x32xf32>
    %351 = vector.broadcast %348 : vector<32x1xf32> to vector<32x32xf32>
    %352 = arith.mulf %351, %350 : vector<32x32xf32>
    %353 = arith.addf %347, %352 : vector<32x32xf32>
    %354 = vector.extract_strided_slice %286 {offsets = [0, 11], sizes = [32, 1], strides = [1, 1]} : vector<32x16xf32> to vector<32x1xf32>
    %c11_195 = arith.constant 11 : index
    %c0_196 = arith.constant 0 : index
    %c0_197 = arith.constant 0 : index
    %355 = vector.load %arg9[%c11_195, %c0_196, %c0_197] : memref<16x32x32xf32, #tpu.memory_space<vmem>>, vector<1x32x32xf32>
    %356 = vector.shape_cast %355 : vector<1x32x32xf32> to vector<32x32xf32>
    %357 = vector.broadcast %354 : vector<32x1xf32> to vector<32x32xf32>
    %358 = arith.mulf %357, %356 : vector<32x32xf32>
    %359 = arith.addf %353, %358 : vector<32x32xf32>
    %360 = vector.extract_strided_slice %286 {offsets = [0, 12], sizes = [32, 1], strides = [1, 1]} : vector<32x16xf32> to vector<32x1xf32>
    %c12_198 = arith.constant 12 : index
    %c0_199 = arith.constant 0 : index
    %c0_200 = arith.constant 0 : index
    %361 = vector.load %arg9[%c12_198, %c0_199, %c0_200] : memref<16x32x32xf32, #tpu.memory_space<vmem>>, vector<1x32x32xf32>
    %362 = vector.shape_cast %361 : vector<1x32x32xf32> to vector<32x32xf32>
    %363 = vector.broadcast %360 : vector<32x1xf32> to vector<32x32xf32>
    %364 = arith.mulf %363, %362 : vector<32x32xf32>
    %365 = arith.addf %359, %364 : vector<32x32xf32>
    %366 = vector.extract_strided_slice %286 {offsets = [0, 13], sizes = [32, 1], strides = [1, 1]} : vector<32x16xf32> to vector<32x1xf32>
    %c13_201 = arith.constant 13 : index
    %c0_202 = arith.constant 0 : index
    %c0_203 = arith.constant 0 : index
    %367 = vector.load %arg9[%c13_201, %c0_202, %c0_203] : memref<16x32x32xf32, #tpu.memory_space<vmem>>, vector<1x32x32xf32>
    %368 = vector.shape_cast %367 : vector<1x32x32xf32> to vector<32x32xf32>
    %369 = vector.broadcast %366 : vector<32x1xf32> to vector<32x32xf32>
    %370 = arith.mulf %369, %368 : vector<32x32xf32>
    %371 = arith.addf %365, %370 : vector<32x32xf32>
    %372 = vector.extract_strided_slice %286 {offsets = [0, 14], sizes = [32, 1], strides = [1, 1]} : vector<32x16xf32> to vector<32x1xf32>
    %c14_204 = arith.constant 14 : index
    %c0_205 = arith.constant 0 : index
    %c0_206 = arith.constant 0 : index
    %373 = vector.load %arg9[%c14_204, %c0_205, %c0_206] : memref<16x32x32xf32, #tpu.memory_space<vmem>>, vector<1x32x32xf32>
    %374 = vector.shape_cast %373 : vector<1x32x32xf32> to vector<32x32xf32>
    %375 = vector.broadcast %372 : vector<32x1xf32> to vector<32x32xf32>
    %376 = arith.mulf %375, %374 : vector<32x32xf32>
    %377 = arith.addf %371, %376 : vector<32x32xf32>
    %378 = vector.extract_strided_slice %286 {offsets = [0, 15], sizes = [32, 1], strides = [1, 1]} : vector<32x16xf32> to vector<32x1xf32>
    %c15_207 = arith.constant 15 : index
    %c0_208 = arith.constant 0 : index
    %c0_209 = arith.constant 0 : index
    %379 = vector.load %arg9[%c15_207, %c0_208, %c0_209] : memref<16x32x32xf32, #tpu.memory_space<vmem>>, vector<1x32x32xf32>
    %380 = vector.shape_cast %379 : vector<1x32x32xf32> to vector<32x32xf32>
    %381 = vector.broadcast %378 : vector<32x1xf32> to vector<32x32xf32>
    %382 = arith.mulf %381, %380 : vector<32x32xf32>
    %383 = arith.addf %377, %382 : vector<32x32xf32>
    %cst_210 = arith.constant dense<0.000000e+00> : vector<32xf32>
    %384 = vector.multi_reduction <add>, %383, %cst_210 [0] : vector<32x32xf32> to vector<32xf32>
    %385 = vector.shape_cast %384 : vector<32xf32> to vector<1x32xf32>
    %c0_211 = arith.constant 0 : index
    %c0_212 = arith.constant 0 : index
    %386 = vector.load %arg10[%c0_211, %c0_212] : memref<1x32xf32, #tpu.memory_space<vmem>>, vector<1x32xf32>
    %387 = arith.addf %385, %386 : vector<1x32xf32>
    %cst_213 = arith.constant 0.000000e+00 : f32
    %388 = vector.broadcast %cst_213 : f32 to vector<1x32xf32>
    %389 = arith.cmpf oge, %387, %388 : vector<1x32xf32>
    %cst_214 = arith.constant 2.000000e-01 : f32
    %390 = vector.broadcast %cst_214 : f32 to vector<1x32xf32>
    %391 = arith.mulf %390, %387 : vector<1x32xf32>
    %392 = arith.select %389, %387, %391 : vector<1x32xi1>, vector<1x32xf32>
    %c0_215 = arith.constant 0 : index
    %c0_216 = arith.constant 0 : index
    %393 = vector.load %arg11[%c0_215, %c0_216] : memref<1x32xf32, #tpu.memory_space<vmem>>, vector<1x32xf32>
    %394 = arith.mulf %392, %393 : vector<1x32xf32>
    %cst_217 = arith.constant dense<0.000000e+00> : vector<1xf32>
    %395 = vector.multi_reduction <add>, %394, %cst_217 [1] : vector<1x32xf32> to vector<1xf32>
    %396 = vector.shape_cast %395 : vector<1xf32> to vector<1x1xf32>
    %c0_218 = arith.constant 0 : index
    %c0_219 = arith.constant 0 : index
    %397 = vector.load %arg12[%c0_218, %c0_219] : memref<1x1xf32, #tpu.memory_space<vmem>>, vector<1x1xf32>
    %398 = arith.addf %396, %397 : vector<1x1xf32>
    %cst_220 = arith.constant 0.000000e+00 : f32
    %399 = vector.broadcast %cst_220 : f32 to vector<1x1xf32>
    %400 = arith.subf %399, %398 : vector<1x1xf32>
    %cst_221 = arith.constant 0.000000e+00 : f32
    %401 = vector.broadcast %cst_221 : f32 to vector<1x1xf32>
    %402 = arith.maximumf %400, %401 : vector<1x1xf32>
    %403 = math.absf %400 : vector<1x1xf32>
    %cst_222 = arith.constant 0.000000e+00 : f32
    %404 = vector.broadcast %cst_222 : f32 to vector<1x1xf32>
    %405 = arith.subf %404, %403 : vector<1x1xf32>
    %406 = math.exp %405 : vector<1x1xf32>
    %cst_223 = arith.constant 1.000000e+00 : f32
    %407 = vector.broadcast %cst_223 : f32 to vector<1x1xf32>
    %408 = arith.addf %407, %406 : vector<1x1xf32>
    %409 = math.log %408 : vector<1x1xf32>
    %410 = arith.addf %402, %409 : vector<1x1xf32>
    %411 = arith.addf %285, %410 : vector<1x1xf32>
    %cst_224 = arith.constant 5.000000e-01 : f32
    %412 = vector.broadcast %cst_224 : f32 to vector<1x1xf32>
    %413 = arith.mulf %411, %412 : vector<1x1xf32>
    %c0_225 = arith.constant 0 : index
    %c0_226 = arith.constant 0 : index
    %414 = vector.load %arg13[%c0_225, %c0_226] : memref<1x1xf32, #tpu.memory_space<vmem>>, vector<1x1xf32>
    tpu.vector_store %arg13[%c0_225, %c0_226], %413 {strides = array<i32>} : memref<1x1xf32, #tpu.memory_space<vmem>>, vector<1x1xf32>,
    return
  }
}

</mosaic_0001>

<bundles_post_ra>
// kernel: adversarial_generator_loss.1
= control target key start
LH: loop header
LB: loop body
LE: loop exit
PB: predicated region body
PF: predicated region fallthrough
CT: control target
= control target key end

     0   :  { %s8911_s0 = inlined_call_operand.vmem [shape: f32[16,256], index: 0, kind: input, shape index: {}]   ;;  %s8912_s1 = inlined_call_operand.vmem [shape: f32[16,144], index: 1, kind: input, shape index: {}]   ;;  %s8913_s2 = inlined_call_operand.vmem [shape: f32[16,1], index: 2, kind: input, shape index: {}]   ;;  %s8914_s3 = inlined_call_operand.vmem [shape: bf16[9,256,64], index: 3, kind: input, shape index: {}]   ;;  %s8915_s4 = inlined_call_operand.vmem [shape: f32[32,144], index: 4, kind: input, shape index: {}]   ;;  %s8916_s5 = inlined_call_operand.vmem [shape: f32[32,1], index: 5, kind: input, shape index: {}]   ;;  %s8917_s6 = inlined_call_operand.vmem [shape: bf16[9,64,16], index: 6, kind: input, shape index: {}]   ;;  %s8918_s7 = inlined_call_operand.vmem [shape: f32[64,288], index: 7, kind: input, shape index: {}]   ;;  %s8919_s8 = inlined_call_operand.vmem [shape: f32[64,1], index: 8, kind: input, shape index: {}]   ;;  %s8920_s9 = inlined_call_operand.vmem [shape: f32[16,32,32], index: 9, kind: input, shape index: {}]   ;;  %s8921_s10 = inlined_call_operand.vmem [shape: f32[1,32], index: 10, kind: input, shape index: {}]   ;;  %s8922_s11 = inlined_call_operand.vmem [shape: f32[1,32], index: 11, kind: input, shape index: {}]   ;;  %s8923_s12 = inlined_call_operand.<no memory space> [shape: f32[1,1], index: 12, kind: input, shape index: {}]   ;;  %s8924_s13 = inlined_call_operand.hbm [shape: f32[1,1], index: 13, kind: output, shape index: {}]  }
   0x1   :  { %v18_v0 = vstv %s8923_s12 }
   0x2   :  { %19 = vst [vmem:[#allocation2] sm:$0x1] %v18_v0 }
   0x3   :  { %v6925_v1 = vld [vmem:[%s8911_s0] sm:$0xff]  ;;  %v6930_v2 = vld [vmem:[%s8911_s0 + $0x10] sm:$0xff]  ;;  %v6935_v3 = vld [vmem:[%s8911_s0 + $0x8] sm:$0xff] }
   0x4   :  { %v6603_v4 = vpack.i.bf16 %v6930_v2, %v6925_v1  ;;  %v6942_v5 = vld [vmem:[%s8911_s0 + $0x18] sm:$0xff] }
   0x5   :  { %20 = vsyncpa [#allocation4], 0  ;;  %s6823_s17 = smov 16   ;;  %s6824_s18 = smov 17   ;;  %v6608_v6 = vpack.i.bf16 %v6942_v5, %v6935_v3  ;;  %v6037_v7 = vpack.c.bf16 %v6942_v5, %v6935_v3  ;;  %v6039_v8 = vpack.c.bf16 %v6930_v2, %v6925_v1  ;;  %v209_v9 = vld [vmem:[%s8912_s1 + $0x8] sm:$0xff]  ;;  %vm224_vm0 = vcmask 130048  }
   0x6   :  { %6604 = vrot.lane.b32.xlu1 %v6603_v4, %s6823_s17  ;;  %6594 = vrot.lane.b32.xlu0 %v6603_v4, %s6824_s18  ;;  %s6825_s19 = smov 15   ;;  %s6826_s0 = smov 1   ;;  %v212_v10 = vld [vmem:[%s8913_s2] sm:$0xff]  ;;  %v8936_v11 = vmov 0   ;;  %v213_v12 = vld [vmem:[%s8913_s2 + $0x8] sm:$0xff]  ;;  %v51_v38 = vlaneseq }
   0x7   :  { %s6827_s20 = smov 127   ;;  %s6828_s21 = smov 113   ;;  %3950 = vmatprep.mubr.msk.f32.mxu0 %vm224_vm0, %v209_v9  ;;  %6673 = vset.pattern.permute.xlu0 %v8936_v11  ;;  %v1588_v13 = vld [vmem:[%s8916_s5 + $0x8] sm:$0xff]  ;;  %v1587_v14 = vld [vmem:[%s8916_s5] sm:$0xff]  ;;  %v1590_v18 = vld [vmem:[%s8916_s5 + $0x18] sm:$0xff] }
   0x8   :  { %s6829_s22 = smov 112   ;;  %s6830_s23 = smov 111   ;;  %6674 = vset.pattern.permute.xlu1 %v8936_v11  ;;  %v5107_v15 = vld [vmem:[%s8914_s3 + $0x40] sm:$0xff]   ;;  %v5108_v17 = vld [vmem:[%s8914_s3 + $0x48] sm:$0xff]   ;;  %v1589_v20 = vld [vmem:[%s8916_s5 + $0x10] sm:$0xff]  ;;  %v7037_v39 = vand.u32 127, %v51_v38 }
   0x9   :  { %6065 = vmatprep.subr.bf16.mxu1 %v5107_v15  ;;  %v4381_v16 = vld [vmem:[%s8914_s3] sm:$0xff]   ;;  %v5100_v19 = vld [vmem:[%s8914_s3 + $0x8] sm:$0xff]   ;;  %v5109_v21 = vld [vmem:[%s8914_s3 + $0x50] sm:$0xff]  }
   0xa   :  { %6609 = vrot.lane.b32.xlu1 %v6608_v6, %s6823_s17  ;;  %6599 = vrot.lane.b32.xlu0 %v6608_v6, %s6824_s18  ;;  %v2675_v22 = vld [vmem:[%s8919_s8 + $0x8] sm:$0xff]  ;;  %v5101_v23 = vld [vmem:[%s8914_s3 + $0x10] sm:$0xff]   ;;  %v7040_v40 = vadd.s32 128, %v7037_v39  ;;  %v54_v41 = vand.u32 15, %v7037_v39  ;;  %vm69_vm1 = vcmp.ge.s32.totalorder %v7037_v39, 16  ;;  %vm87_vm3 = vcmp.lt.s32.totalorder %v7037_v39, 16 }
   0xb   :  { %6067 = vmatpush3.bf16.msra.mxu1 %v4381_v16  ;;  %v2674_v24 = vld [vmem:[%s8919_s8] sm:$0xff]  ;;  %v5110_v25 = vld [vmem:[%s8914_s3 + $0x58] sm:$0xff]   ;;  %v2676_v28 = vld [vmem:[%s8919_s8 + $0x10] sm:$0xff]  ;;  %vm64_vm4 = vcmp.lt.s32.totalorder %v7037_v39, 17  ;;  %vm104_vm7 = vcmp.lt.s32.totalorder %v7037_v39, 15  ;;  %vm125_vm13 = vcmp.lt.s32.totalorder %v7037_v39, 1 }
   0xc   :  { %6069 = vmatprep.subr.bf16.mxu1 %v5108_v17  ;;  %v2677_v26 = vld [vmem:[%s8919_s8 + $0x18] sm:$0xff]  ;;  %v5111_v29 = vld [vmem:[%s8914_s3 + $0x60] sm:$0xff]   ;;  %v2679_v30 = vld [vmem:[%s8919_s8 + $0x28] sm:$0xff]  ;;  %v55_v44 = vand.u32 15, %v7040_v40  ;;  %vm7045_vm2 = vcmp.ge.s32.totalorder %v54_v41, 1  ;;  %vm7095_vm11 = vcmp.le.s32.totalorder %v54_v41, 14 }
   0xd   :  { %v5102_v27 = vld [vmem:[%s8914_s3 + $0x18] sm:$0xff]   ;;  %v5103_v31 = vld [vmem:[%s8914_s3 + $0x20] sm:$0xff]   ;;  %v5112_v33 = vld [vmem:[%s8914_s3 + $0x68] sm:$0xff]  }
   0xe   :  { %6619 = vrot.lane.b32.xlu1 %v6608_v6, %s6825_s19  ;;  %6614 = vrot.lane.b32.xlu0 %v6603_v4, %s6825_s19  ;;  %v2678_v32 = vld [vmem:[%s8919_s8 + $0x20] sm:$0xff]  ;;  %v2681_v34 = vld [vmem:[%s8919_s8 + $0x38] sm:$0xff]  ;;  %vm7051_vm5 = vcmp.ge.s32.totalorder %v55_v44, 1  ;;  %vm7059_vm6 = vmand %vm69_vm1, %vm7045_vm2  ;;  %vm7064_vm8 = vcmp.le.s32.totalorder %v55_v44, 14 }
   0xf   :  { %6071 = vmatpush3.bf16.msra.mxu1 %v5100_v19  ;;  %v5104_v35 = vld [vmem:[%s8914_s3 + $0x28] sm:$0xff]   ;;  %v2680_v36 = vld [vmem:[%s8919_s8 + $0x30] sm:$0xff]  ;;  %vm6015_vm9 = vmpackc.low %vm7051_vm5, %vm7051_vm5 }
  0x10   :  { %6073 = vmatprep.subr.bf16.mxu1 %v5109_v21  ;;  %v5113_v37 = vld [vmem:[%s8914_s3 + $0x70] sm:$0xff]   ;;  %vm6018_vm10 = vmpackc.low %vm7059_vm6, %vm7059_vm6  ;;  %vm159_vm6 = vcmp.lt.s32.totalorder %v7037_v39, 113  ;;  %v208_v45 = vld [vmem:[%s8912_s1] sm:$0xff] }
  0x11   :  { %vm7104_vm12 = vmpackc.low %vm69_vm1, %vm69_vm1  ;;  %v211_v58 = vld [vmem:[%s8912_s1 + $0x18] sm:$0xff] }
  0x12   :  { %6629 = vrot.lane.b32.xlu1 %v6608_v6, %s6826_s0  ;;  %6624 = vrot.lane.b32.xlu0 %v6603_v4, %s6826_s0  ;;  %vm6026_vm14 = vmpackc.low %vm7064_vm8, %vm7064_vm8 }
  0x13   :  { %6075 = vmatpush3.bf16.msra.mxu1 %v5101_v23  ;;  %vm7122_vm15 = vmand %vm69_vm1, %vm7095_vm11 }
  0x14   :  { %6077 = vmatprep.subr.bf16.mxu1 %v5110_v25  ;;  %vm6029_vm1 = vmpackc.low %vm7122_vm15, %vm7122_vm15 }
  0x16   :  { %6639 = vrot.lane.b32.xlu1 %v6608_v6, %s6827_s20  ;;  %6634 = vrot.lane.b32.xlu0 %v6603_v4, %s6827_s20 }
  0x17   :  { %6079 = vmatpush3.bf16.msra.mxu1 %v5102_v27 }
  0x18   :  { %6081 = vmatprep.subr.bf16.mxu1 %v5111_v29 }
  0x1a   :  { %6649 = vrot.lane.b32.xlu1 %v6608_v6, %s6828_s21  ;;  %6644 = vrot.lane.b32.xlu0 %v6603_v4, %s6828_s21 }
  0x1b   :  { %6083 = vmatpush3.bf16.msra.mxu1 %v5103_v31 }
  0x1c   :  { %6085 = vmatprep.subr.bf16.mxu1 %v5112_v33 }
  0x1e   :  { %6659 = vrot.lane.b32.xlu1 %v6608_v6, %s6829_s22  ;;  %6654 = vrot.lane.b32.xlu0 %v6603_v4, %s6829_s22 }
  0x1f   :  { %6087 = vmatpush3.bf16.msra.mxu1 %v5104_v35 }
  0x20   :  { %6089 = vmatprep.subr.bf16.mxu1 %v5113_v37 }
  0x22   :  { %6669 = vrot.lane.b32.xlu1 %v6608_v6, %s6830_s23  ;;  %6664 = vrot.lane.b32.xlu0 %v6603_v4, %s6830_s23 }
  0x26   :  { %216 = vperm.xlu0 %6673, %v212_v10   ;;  %221 = vperm.xlu1 %6674, %v213_v12  }
  0x2a   :  { %1598 = vperm.xlu0 %6673, %v1588_v13   ;;  %1593 = vperm.xlu1 %6674, %v1587_v14  }
  0x2e   :  { %1608 = vperm.xlu0 %6673, %v1590_v18   ;;  %1603 = vperm.xlu1 %6674, %v1589_v20   ;;  %v210_v18 = vld [vmem:[%s8912_s1 + $0x10] sm:$0xff] }
  0x32   :  { %2689 = vperm.xlu0 %6673, %v2675_v22   ;;  %2684 = vperm.xlu1 %6674, %v2674_v24  }
  0x36   :  { %2699 = vperm.xlu0 %6673, %v2677_v26   ;;  %2694 = vperm.xlu1 %6674, %v2676_v28  }
  0x3a   :  { %2709 = vperm.xlu0 %6673, %v2679_v30   ;;  %2704 = vperm.xlu1 %6674, %v2678_v32   ;;  %v5140_v32 = vld [vmem:[%s8914_s3 + $0x148] sm:$0xff]  }
  0x3e   :  { %2719 = vperm.xlu0 %6673, %v2681_v34   ;;  %2714 = vperm.xlu1 %6674, %v2680_v36  }
  0x78   :  { %v6605_v42 = vpop.permute.xlu1 %6604  ;;  %v6595_v43 = vpop.permute.xlu0 %6594 }
  0x79   :  { %v6607_v46 = vunpack.i.h.bf16 %v6605_v42  ;;  %v6606_v47 = vunpack.i.l.bf16 %v6605_v42  ;;  %v6597_v48 = vunpack.i.h.bf16 %v6595_v43  ;;  %v6596_v49 = vunpack.i.l.bf16 %v6595_v43 }
  0x7c   :  { %v6610_v50 = vpop.permute.xlu1 %6609  ;;  %v6600_v51 = vpop.permute.xlu0 %6599 }
  0x7d   :  { %v6612_v53 = vunpack.i.h.bf16 %v6610_v50  ;;  %v6611_v54 = vunpack.i.l.bf16 %v6610_v50  ;;  %v6602_v55 = vunpack.i.h.bf16 %v6600_v51  ;;  %v6601_v56 = vunpack.i.l.bf16 %v6600_v51 }
  0x7f   :  { %v90_v59 = vsel %vm87_vm3, %v6611_v54, %v6606_v47  ;;  %v91_v60 = vsel %vm87_vm3, %v6612_v53, %v6607_v46  ;;  %v65_v61 = vsel %vm64_vm4, %v6596_v49, %v6601_v56  ;;  %v66_v62 = vsel %vm64_vm4, %v6597_v48, %v6602_v55 }
  0x80   :  { %v6014_v63 = vpack.c.bf16 %v66_v62, %v65_v61  ;;  %v67_v0 = vsel %vm64_vm4, %v6601_v56, %v6596_v49  ;;  %v68_v4 = vsel %vm64_vm4, %v6602_v55, %v6597_v48  ;;  %v6620_v6 = vpop.permute.xlu1 %6619  ;;  %v6615_v9 = vpop.permute.xlu0 %6614  ;;  %v88_v10 = vsel %vm87_vm3, %v6606_v47, %v6611_v54  ;;  %vm6035_vm4 = vmpackc.low %vm7045_vm2, %vm7045_vm2 }
  0x81   :  { %v6017_v12 = vpack.c.bf16 %v68_v4, %v67_v0  ;;  %v6622_v13 = vunpack.i.h.bf16 %v6620_v6  ;;  %v6621_v14 = vunpack.i.l.bf16 %v6620_v6  ;;  %v6617_v15 = vunpack.i.h.bf16 %v6615_v9 }
  0x82   :  { %6016 = vmatprep.subr.msk.bf16.mxu0 %vm6015_vm9, %v6014_v63  ;;  %v6616_v16 = vunpack.i.l.bf16 %v6615_v9  ;;  %v89_v17 = vsel %vm87_vm3, %v6607_v46, %v6612_v53  ;;  %v6022_v25 = vpack.c.bf16 %v91_v60, %v90_v59  ;;  %vm142_vm3 = vcmp.lt.s32.totalorder %v7037_v39, 127 }
  0x83   :  { %6019 = vmatpush1.bf16.msk.msra.mxu0 %vm6018_vm10, %v6017_v12  ;;  %v106_v19 = vsel %vm104_vm7, %v6617_v15, %v6622_v13  ;;  %v6020_v20 = vpack.c.bf16 %v89_v17, %v88_v10  ;;  %v108_v22 = vsel %vm104_vm7, %v6622_v13, %v6617_v15 }
  0x84   :  { %v105_v23 = vsel %vm104_vm7, %v6616_v16, %v6621_v14  ;;  %v107_v24 = vsel %vm104_vm7, %v6621_v14, %v6616_v16  ;;  %v6630_v26 = vpop.permute.xlu1 %6629  ;;  %v6625_v27 = vpop.permute.xlu0 %6624  ;;  %vm165_vm7 = vcmp.lt.s32.totalorder %v7040_v40, 240  ;;  %v5139_v40 = vld [vmem:[%s8914_s3 + $0x140] sm:$0xff]  }
  0x85   :  { %6021 = vmatprep.subr.bf16.mxu0 %v6020_v20  ;;  %v6632_v28 = vunpack.i.h.bf16 %v6630_v26  ;;  %v6631_v29 = vunpack.i.l.bf16 %v6630_v26  ;;  %v6627_v30 = vunpack.i.h.bf16 %v6625_v27  ;;  %v6626_v31 = vunpack.i.l.bf16 %v6625_v27  ;;  %vm7180_vm10 = vmand %vm165_vm7, %vm7051_vm5 }
  0x86   :  { %v6025_v33 = vpack.c.bf16 %v106_v19, %v105_v23  ;;  %v6028_v36 = vpack.c.bf16 %v108_v22, %v107_v24  ;;  %vm6045_vm5 = vmpackc.low %vm7095_vm11, %vm7095_vm11 }
  0x87   :  { %6024 = vmatpush1.bf16.msk.msra.mxu0 %vm7104_vm12, %v6022_v25  ;;  %v127_v34 = vsel %vm125_vm13, %v6627_v30, %v6632_v28  ;;  %v126_v35 = vsel %vm125_vm13, %v6626_v31, %v6631_v29  ;;  %v129_v37 = vsel %vm125_vm13, %v6632_v28, %v6627_v30  ;;  %v128_v38 = vsel %vm125_vm13, %v6631_v29, %v6626_v31  ;;  %vm6048_vm12 = vmpackc.low %vm7180_vm10, %vm7180_vm10  ;;  %v5131_v31 = vld [vmem:[%s8914_s3 + $0x100] sm:$0xff]  }
  0x88   :  { %6027 = vmatprep.subr.msk.bf16.mxu0 %vm6026_vm14, %v6025_v33  ;;  %v6031_v41 = vpack.c.bf16 %v127_v34, %v126_v35  ;;  %v6640_v42 = vpop.permute.xlu1 %6639  ;;  %v6635_v43 = vpop.permute.xlu0 %6634  ;;  %v6034_v49 = vpack.c.bf16 %v129_v37, %v128_v38  ;;  %vm197_vm13 = vcmp.lt.s32.totalorder %v7037_v39, 111  ;;  %vm203_vm15 = vmand %vm165_vm7, %vm7064_vm8  ;;  %v5132_v33 = vld [vmem:[%s8914_s3 + $0x108] sm:$0xff]   ;;  %v5141_v34 = vld [vmem:[%s8914_s3 + $0x150] sm:$0xff]   ;;  %vm2722_vm10 = vcmask 261120  }
  0x89   :  { %v6642_v44 = vunpack.i.h.bf16 %v6640_v42  ;;  %v6641_v46 = vunpack.i.l.bf16 %v6640_v42  ;;  %v6637_v47 = vunpack.i.h.bf16 %v6635_v43  ;;  %v6636_v48 = vunpack.i.l.bf16 %v6635_v43  ;;  %v5133_v35 = vld [vmem:[%s8914_s3 + $0x110] sm:$0xff]   ;;  %v5134_v37 = vld [vmem:[%s8914_s3 + $0x118] sm:$0xff]   ;;  %v5143_v38 = vld [vmem:[%s8914_s3 + $0x160] sm:$0xff]  }
  0x8a   :  { %v5144_v42 = vld [vmem:[%s8914_s3 + $0x168] sm:$0xff]  }
  0x8b   :  { %6030 = vmatpush1.bf16.msk.msra.mxu0 %vm6029_vm1, %v6028_v36  ;;  %v146_v50 = vsel %vm142_vm3, %v6642_v44, %v6637_v47  ;;  %v145_v51 = vsel %vm142_vm3, %v6641_v46, %v6636_v48  ;;  %v144_v60 = vsel %vm142_vm3, %v6637_v47, %v6642_v44  ;;  %v143_v61 = vsel %vm142_vm3, %v6636_v48, %v6641_v46  ;;  %vm6059_vm1 = vmpackc.low %vm203_vm15, %vm203_vm15  ;;  %v5142_v36 = vld [vmem:[%s8914_s3 + $0x158] sm:$0xff]   ;;  %v5136_v43 = vld [vmem:[%s8914_s3 + $0x128] sm:$0xff]  }
  0x8c   :  { %6033 = vmatprep.subr.msk.bf16.mxu0 %vm6015_vm9, %v6031_v41  ;;  %v6650_v53 = vpop.permute.xlu1 %6649  ;;  %v6645_v54 = vpop.permute.xlu0 %6644  ;;  %vm180_vm9 = vcmp.lt.s32.totalorder %v7037_v39, 112  ;;  %v6041_v0 = vpack.c.bf16 %v146_v50, %v145_v51  ;;  %v5135_v41 = vld [vmem:[%s8914_s3 + $0x120] sm:$0xff]   ;;  %v5145_v44 = vld [vmem:[%s8914_s3 + $0x170] sm:$0xff]   ;;  %v5114_v48 = vld [vmem:[%s8914_s3 + $0x78] sm:$0xff]  }
  0x8d   :  { %v6652_v55 = vunpack.i.h.bf16 %v6650_v53  ;;  %v6651_v56 = vunpack.i.l.bf16 %v6650_v53  ;;  %v6647_v57 = vunpack.i.h.bf16 %v6645_v54  ;;  %v6646_v59 = vunpack.i.l.bf16 %v6645_v54  ;;  %v5105_v46 = vld [vmem:[%s8914_s3 + $0x30] sm:$0xff]   ;;  %v5106_v50 = vld [vmem:[%s8914_s3 + $0x38] sm:$0xff]   ;;  %v5123_v53 = vld [vmem:[%s8914_s3 + $0xc0] sm:$0xff]  }
  0x8e   :  { %v5137_v47 = vld [vmem:[%s8914_s3 + $0x130] sm:$0xff]   ;;  %6091 = vmatpush3.bf16.msra.mxu1 %v5105_v46  ;;  %v5138_v51 = vld [vmem:[%s8914_s3 + $0x138] sm:$0xff]   ;;  %v5171_v54 = vld [vmem:[%s8914_s3 + $0x240] sm:$0xff]  }
  0x8f   :  { %6036 = vmatpush1.bf16.msk.msra.mxu0 %vm6035_vm4, %v6034_v49  ;;  %v163_v62 = vsel %vm159_vm6, %v6652_v55, %v6647_v57  ;;  %v162_v63 = vsel %vm159_vm6, %v6651_v56, %v6646_v59  ;;  %v161_v5 = vsel %vm159_vm6, %v6647_v57, %v6652_v55  ;;  %v160_v14 = vsel %vm159_vm6, %v6646_v59, %v6651_v56  ;;  %v5146_v49 = vld [vmem:[%s8914_s3 + $0x178] sm:$0xff]   ;;  %v5196_v46 = vld [vmem:[%s8914_s3 + $0x308] sm:$0xff]  }
  0x90   :  { %6038 = vmatprep.subr.bf16.mxu0 %v6037_v7  ;;  %v6660_v4 = vpop.permute.xlu1 %6659  ;;  %v6655_v6 = vpop.permute.xlu0 %6654  ;;  %v6044_v7 = vpack.c.bf16 %v144_v60, %v143_v61  ;;  %v6050_v21 = vpack.c.bf16 %v161_v5, %v160_v14  ;;  %6093 = vmatprep.subr.bf16.mxu1 %v5114_v48  ;;  %v5172_v14 = vld [vmem:[%s8914_s3 + $0x248] sm:$0xff]   ;;  %v5205_v48 = vld [vmem:[%s8914_s3 + $0x350] sm:$0xff]  }
  0x91   :  { %v6662_v9 = vunpack.i.h.bf16 %v6660_v4  ;;  %v6661_v10 = vunpack.i.l.bf16 %v6660_v4  ;;  %v6657_v12 = vunpack.i.h.bf16 %v6655_v6  ;;  %v6656_v13 = vunpack.i.l.bf16 %v6655_v6 }
  0x92   :  { %6095 = vmatpush3.bf16.msra.mxu1 %v5106_v50  ;;  %v5197_v50 = vld [vmem:[%s8914_s3 + $0x310] sm:$0xff]  }
  0x93   :  { %6040 = vmatpush1.bf16.msra.mxu0 %v6039_v8  ;;  %v184_v1 = vsel %vm180_vm9, %v6662_v9, %v6657_v12  ;;  %v183_v2 = vsel %vm180_vm9, %v6661_v10, %v6656_v13  ;;  %v6047_v8 = vpack.c.bf16 %v163_v62, %v162_v63  ;;  %v181_v23 = vsel %vm180_vm9, %v6656_v13, %v6661_v10  ;;  %v5163_v13 = vld [vmem:[%s8914_s3 + $0x200] sm:$0xff]  }
  0x94   :  { %6043 = vmatprep.subr.msk.bf16.mxu0 %vm6026_vm14, %v6041_v0  ;;  %v6670_v52 = vpop.permute.xlu1 %6669  ;;  %v6665_v15 = vpop.permute.xlu0 %6664  ;;  %v6053_v22 = vpack.c.bf16 %v184_v1, %v183_v2  ;;  %v182_v24 = vsel %vm180_vm9, %v6657_v12, %v6662_v9  ;;  %vm6054_vm14 = vmpackc.low %vm165_vm7, %vm165_vm7  ;;  %6097 = vmatprep.subr.bf16.mxu1 %v5123_v53  ;;  %v5115_v12 = vld [vmem:[%s8914_s3 + $0x80] sm:$0xff]   ;;  %v5206_v53 = vld [vmem:[%s8914_s3 + $0x358] sm:$0xff]  }
  0x95   :  { %v6672_v16 = vunpack.i.h.bf16 %v6670_v52  ;;  %v6671_v17 = vunpack.i.l.bf16 %v6670_v52  ;;  %v6667_v19 = vunpack.i.h.bf16 %v6665_v15  ;;  %v6666_v20 = vunpack.i.l.bf16 %v6665_v15  ;;  %v5116_v52 = vld [vmem:[%s8914_s3 + $0x88] sm:$0xff]  }
  0x96   :  { %v6056_v27 = vpack.c.bf16 %v182_v24, %v181_v23  ;;  %v5164_v15 = vld [vmem:[%s8914_s3 + $0x208] sm:$0xff]   ;;  %v5118_v23 = vld [vmem:[%s8914_s3 + $0x98] sm:$0xff]  }
  0x97   :  { %6046 = vmatpush1.bf16.msk.msra.mxu0 %vm6045_vm5, %v6044_v7  ;;  %v201_v25 = vsel %vm197_vm13, %v6672_v16, %v6667_v19  ;;  %v200_v26 = vsel %vm197_vm13, %v6671_v17, %v6666_v20  ;;  %v199_v39 = vsel %vm197_vm13, %v6667_v19, %v6672_v16  ;;  %v198_v28 = vsel %vm197_vm13, %v6666_v20, %v6671_v17  ;;  %v5124_v7 = vld [vmem:[%s8914_s3 + $0xc8] sm:$0xff]   ;;  %v5125_v16 = vld [vmem:[%s8914_s3 + $0xd0] sm:$0xff]   ;;  %v5166_v24 = vld [vmem:[%s8914_s3 + $0x218] sm:$0xff]  }
  0x98   :  { %6049 = vmatprep.subr.msk.bf16.mxu0 %vm6048_vm12, %v6047_v8  ;;  %v6058_v29 = vpack.c.bf16 %v201_v25, %v200_v26  ;;  %v6061_v30 = vpack.c.bf16 %v199_v39, %v198_v28  ;;  %v5173_v17 = vld [vmem:[%s8914_s3 + $0x250] sm:$0xff]   ;;  %v5127_v25 = vld [vmem:[%s8914_s3 + $0xe0] sm:$0xff]   ;;  %v5128_v28 = vld [vmem:[%s8914_s3 + $0xe8] sm:$0xff]  }
  0x99   :  { %v5117_v19 = vld [vmem:[%s8914_s3 + $0x90] sm:$0xff]   ;;  %v5175_v26 = vld [vmem:[%s8914_s3 + $0x260] sm:$0xff]  }
  0x9a   :  { %v5165_v20 = vld [vmem:[%s8914_s3 + $0x210] sm:$0xff]   ;;  %v5167_v39 = vld [vmem:[%s8914_s3 + $0x220] sm:$0xff]  }
  0x9b   :  { %6052 = vmatpush1.bf16.msk.msra.mxu0 %vm6035_vm4, %v6050_v21  ;;  %v5126_v21 = vld [vmem:[%s8914_s3 + $0xd8] sm:$0xff]   ;;  %vm1736_vm4 = vcmask 523264  }
  0x9c   :  { %6055 = vmatprep.subr.msk.bf16.mxu0 %vm6054_vm14, %v6053_v22  ;;  %v5174_v22 = vld [vmem:[%s8914_s3 + $0x258] sm:$0xff]  }
  0x9f   :  { %6057 = vmatpush1.bf16.msra.mxu0 %v6056_v27  ;;  %v5119_v27 = vld [vmem:[%s8914_s3 + $0xa0] sm:$0xff]  }
  0xa0   :  { %6060 = vmatprep.subr.msk.bf16.mxu0 %vm6059_vm1, %v6058_v29  ;;  %v5176_v29 = vld [vmem:[%s8914_s3 + $0x268] sm:$0xff]  }
  0xa3   :  { %6063 = vmatpush1.bf16.msk.msra.mxu0 %vm6045_vm5, %v6061_v30  ;;  %v5120_v30 = vld [vmem:[%s8914_s3 + $0xa8] sm:$0xff]  }
  0xa4   :  { %6129 = vmatprep.subr.bf16.mxu0 %v5139_v40  ;;  %v5168_v40 = vld [vmem:[%s8914_s3 + $0x228] sm:$0xff]  }
  0xa5   :  { %v217_v55 = vpop.permute.xlu0 %216  ;;  %v222_v61 = vpop.permute.xlu1 %221 }
  0xa6   :  { %296 = vmatmul.mubr.f32.vlgmr.msra.gmra.mrb[0].mxu0 %v208_v45  ;;  %v5129_v45 = vld [vmem:[%s8914_s3 + $0xf0] sm:$0xff]  }
  0xa7   :  { %3951 = vmatprep.mubr.msk.f32.mxu0 %vm224_vm0, %v211_v58  ;;  %6131 = vmatpush3.bf16.msra.mxu0 %v5131_v31  ;;  %v5177_v58 = vld [vmem:[%s8914_s3 + $0x270] sm:$0xff]  }
  0xa8   :  { %6133 = vmatprep.subr.bf16.mxu0 %v5140_v32  ;;  %v5121_v31 = vld [vmem:[%s8914_s3 + $0xb0] sm:$0xff]  }
  0xa9   :  { %v5169_v32 = vld [vmem:[%s8914_s3 + $0x230] sm:$0xff]  }
  0xaa   :  { %302 = vmatmul.mubr.f32.gmra.mrb[2].mxu0 %v210_v18  ;;  %v5130_v18 = vld [vmem:[%s8914_s3 + $0xf8] sm:$0xff]  }
  0xab   :  { %6135 = vmatpush3.bf16.msra.mxu0 %v5132_v33  ;;  %v5178_v33 = vld [vmem:[%s8914_s3 + $0x278] sm:$0xff]  }
  0xac   :  { %6137 = vmatprep.subr.bf16.mxu0 %v5141_v34  ;;  %v5122_v34 = vld [vmem:[%s8914_s3 + $0xb8] sm:$0xff]  }
  0xaf   :  { %6139 = vmatpush3.bf16.msra.mxu0 %v5133_v35  ;;  %v5170_v35 = vld [vmem:[%s8914_s3 + $0x238] sm:$0xff]  }
  0xb0   :  { %6141 = vmatprep.subr.bf16.mxu0 %v5142_v36  ;;  %v5155_v36 = vld [vmem:[%s8914_s3 + $0x1c0] sm:$0xff]  }
  0xb3   :  { %6143 = vmatpush3.bf16.msra.mxu0 %v5134_v37  ;;  %v5203_v37 = vld [vmem:[%s8914_s3 + $0x340] sm:$0xff]  }
  0xb4   :  { %6145 = vmatprep.subr.bf16.mxu0 %v5143_v38  ;;  %v5147_v38 = vld [vmem:[%s8914_s3 + $0x180] sm:$0xff]  }
  0xb7   :  { %6147 = vmatpush3.bf16.msra.mxu0 %v5135_v41  ;;  %v5195_v41 = vld [vmem:[%s8914_s3 + $0x300] sm:$0xff]  }
  0xb8   :  { %6149 = vmatprep.subr.bf16.mxu0 %v5144_v42  ;;  %v5156_v42 = vld [vmem:[%s8914_s3 + $0x1c8] sm:$0xff]  }
  0xbb   :  { %6151 = vmatpush3.bf16.msra.mxu0 %v5136_v43  ;;  %v5204_v43 = vld [vmem:[%s8914_s3 + $0x348] sm:$0xff]  }
  0xbc   :  { %6153 = vmatprep.subr.bf16.mxu0 %v5145_v44  ;;  %v5148_v44 = vld [vmem:[%s8914_s3 + $0x188] sm:$0xff]  }
  0xbf   :  { %6155 = vmatpush3.bf16.msra.mxu0 %v5137_v47  ;;  %v5157_v47 = vld [vmem:[%s8914_s3 + $0x1d0] sm:$0xff]  }
  0xc0   :  { %6157 = vmatprep.subr.bf16.mxu0 %v5146_v49  ;;  %v5149_v49 = vld [vmem:[%s8914_s3 + $0x190] sm:$0xff]  }
  0xc3   :  { %6159 = vmatpush3.bf16.msra.mxu0 %v5138_v51  ;;  %v5158_v51 = vld [vmem:[%s8914_s3 + $0x1d8] sm:$0xff]  }
  0xc4   :  { %6193 = vmatprep.subr.bf16.mxu0 %v5171_v54  ;;  %v5150_v54 = vld [vmem:[%s8914_s3 + $0x198] sm:$0xff]  }
 0x179   :  { %v297_v56 = vpop.f32.mrb[0].mxu0 }
 0x17a   :  { %v298_v57 = vadd.f32 %v297_v56, %v217_v55  ;;  %v299_v59 = vpop.f32.mrb[1].mxu0  ;;  %v5159_v56 = vld [vmem:[%s8914_s3 + $0x1e0] sm:$0xff]  }
 0x17b   :  { %v300_v60 = vadd.f32 %v299_v59, %v217_v55  ;;  %v5198_v55 = vld [vmem:[%s8914_s3 + $0x318] sm:$0xff]   ;;  %v5151_v59 = vld [vmem:[%s8914_s3 + $0x1a0] sm:$0xff]  }
 0x17c   :  { %v312_v62 = vmul.f32 0.2, %v298_v57  ;;  %vm308_vm2 = vcmp.ge.f32.partialorder %v298_v57, 0.0 }
 0x17d   :  { %vm309_vm8 = vcmp.ge.f32.partialorder %v300_v60, 0.0  ;;  %v313_v63 = vmul.f32 0.2, %v300_v60  ;;  %v303_v0 = vpop.f32.mrb[2].mxu0 }
 0x17e   :  { %v304_v4 = vadd.f32 %v303_v0, %v222_v61  ;;  %v305_v6 = vpop.f32.mrb[3].mxu0  ;;  %v7314_v3 = vsel %vm308_vm2, %v298_v57, %v312_v62  ;;  %v5207_v57 = vld [vmem:[%s8914_s3 + $0x360] sm:$0xff]   ;;  %v5208_v62 = vld [vmem:[%s8914_s3 + $0x368] sm:$0xff]  }
 0x17f   :  { %v7306_v9 = vsel %vm309_vm8, %v300_v60, %v313_v63  ;;  %v306_v10 = vadd.f32 %v305_v6, %v222_v61  ;;  %v5199_v60 = vld [vmem:[%s8914_s3 + $0x320] sm:$0xff]   ;;  %v5160_v61 = vld [vmem:[%s8914_s3 + $0x1e8] sm:$0xff]   ;;  %v5209_v6 = vld [vmem:[%s8914_s3 + $0x370] sm:$0xff]  }
 0x180   :  { %vm310_vm11 = vcmp.ge.f32.partialorder %v304_v4, 0.0  ;;  %v314_v5 = vmul.f32 0.2, %v304_v4  ;;  %448 = vmatprep.mubr.f32.mxu1 %v7306_v9  ;;  %728 = vmatprep.mubr.f32.mxu0 %v7306_v9  ;;  %v5152_v63 = vld [vmem:[%s8914_s3 + $0x1a8] sm:$0xff]  }
 0x181   :  { %vm311_vm3 = vcmp.ge.f32.partialorder %v306_v10, 0.0  ;;  %v315_v1 = vmul.f32 0.2, %v306_v10  ;;  %449 = vmatmul.mubr.f32.vlgmr.msra.gmra.mrb[0].mxu1 %v7314_v3  ;;  %729 = vmatmul.mubr.f32.vlgmr.msra.gmra.mrb[4].mxu0 %v7314_v3  ;;  %v5200_v0 = vld [vmem:[%s8914_s3 + $0x328] sm:$0xff]  }
 0x182   :  { %v7326_v2 = vsel %vm310_vm11, %v304_v4, %v314_v5  ;;  %6099 = vmatpush3.bf16.msra.mxu1 %v5115_v12  ;;  %6195 = vmatpush3.bf16.msra.mxu0 %v5163_v13  ;;  %v5161_v4 = vld [vmem:[%s8914_s3 + $0x1f0] sm:$0xff]   ;;  %v5162_v13 = vld [vmem:[%s8914_s3 + $0x1f8] sm:$0xff]  }
 0x183   :  { %v7328_v8 = vsel %vm311_vm3, %v306_v10, %v315_v1  ;;  %6101 = vmatprep.subr.bf16.mxu1 %v5124_v7  ;;  %6197 = vmatprep.subr.bf16.mxu0 %v5172_v14  ;;  %v5153_v10 = vld [vmem:[%s8914_s3 + $0x1b0] sm:$0xff]   ;;  %v5210_v5 = vld [vmem:[%s8914_s3 + $0x378] sm:$0xff]   ;;  %v5187_v1 = vld [vmem:[%s8914_s3 + $0x2c0] sm:$0xff]   ;;  %vm3468_vm3 = vcmask 253952  }
 0x184   :  { %453 = vmatprep.mubr.f32.mxu1 %v7328_v8  ;;  %733 = vmatprep.mubr.f32.mxu0 %v7328_v8  ;;  %v5201_v12 = vld [vmem:[%s8914_s3 + $0x330] sm:$0xff]   ;;  %v5154_v7 = vld [vmem:[%s8914_s3 + $0x1b8] sm:$0xff]  }
 0x185   :  { %454 = vmatmul.mubr.f32.gmra.mrb[2].mxu1 %v7326_v2  ;;  %734 = vmatmul.mubr.f32.gmra.mrb[6].mxu0 %v7326_v2  ;;  %v5202_v14 = vld [vmem:[%s8914_s3 + $0x338] sm:$0xff]  }
 0x186   :  { %6103 = vmatpush3.bf16.msra.mxu1 %v5116_v52  ;;  %6199 = vmatpush3.bf16.msra.mxu0 %v5164_v15  ;;  %v5235_v52 = vld [vmem:[%s8914_s3 + $0x440] sm:$0xff]  }
 0x187   :  { %588 = vmatprep.mubr.f32.mxu1 %v7306_v9  ;;  %1008 = vmatprep.mubr.f32.mxu0 %v7306_v9  ;;  %v5179_v15 = vld [vmem:[%s8914_s3 + $0x280] sm:$0xff]  }
 0x188   :  { %6105 = vmatprep.subr.bf16.mxu1 %v5125_v16  ;;  %6201 = vmatprep.subr.bf16.mxu0 %v5173_v17  ;;  %v5227_v16 = vld [vmem:[%s8914_s3 + $0x400] sm:$0xff]   ;;  %v5188_v17 = vld [vmem:[%s8914_s3 + $0x2c8] sm:$0xff]  }
 0x18a   :  { %6107 = vmatpush3.bf16.msra.mxu1 %v5117_v19  ;;  %6203 = vmatpush3.bf16.msra.mxu0 %v5165_v20  ;;  %v5236_v19 = vld [vmem:[%s8914_s3 + $0x448] sm:$0xff]  }
 0x18b   :  { %6109 = vmatprep.subr.bf16.mxu1 %v5126_v21  ;;  %6205 = vmatprep.subr.bf16.mxu0 %v5174_v22  ;;  %v5180_v20 = vld [vmem:[%s8914_s3 + $0x288] sm:$0xff]   ;;  %v5189_v22 = vld [vmem:[%s8914_s3 + $0x2d0] sm:$0xff]  }
 0x18c   :  { %v5228_v21 = vld [vmem:[%s8914_s3 + $0x408] sm:$0xff]  }
 0x18e   :  { %6111 = vmatpush3.bf16.msra.mxu1 %v5118_v23  ;;  %6207 = vmatpush3.bf16.msra.mxu0 %v5166_v24  ;;  %v5237_v23 = vld [vmem:[%s8914_s3 + $0x450] sm:$0xff]  }
 0x18f   :  { %6113 = vmatprep.subr.bf16.mxu1 %v5127_v25  ;;  %6209 = vmatprep.subr.bf16.mxu0 %v5175_v26  ;;  %v5181_v24 = vld [vmem:[%s8914_s3 + $0x290] sm:$0xff]   ;;  %v5190_v26 = vld [vmem:[%s8914_s3 + $0x2d8] sm:$0xff]  }
 0x190   :  { %v5229_v25 = vld [vmem:[%s8914_s3 + $0x410] sm:$0xff]  }
 0x192   :  { %6115 = vmatpush3.bf16.msra.mxu1 %v5119_v27  ;;  %6211 = vmatpush3.bf16.msra.mxu0 %v5167_v39  ;;  %v5238_v27 = vld [vmem:[%s8914_s3 + $0x458] sm:$0xff]  }
 0x193   :  { %6117 = vmatprep.subr.bf16.mxu1 %v5128_v28  ;;  %6213 = vmatprep.subr.bf16.mxu0 %v5176_v29  ;;  %v5182_v39 = vld [vmem:[%s8914_s3 + $0x298] sm:$0xff]   ;;  %v5191_v29 = vld [vmem:[%s8914_s3 + $0x2e0] sm:$0xff]  }
 0x194   :  { %v5230_v28 = vld [vmem:[%s8914_s3 + $0x418] sm:$0xff]  }
 0x196   :  { %6119 = vmatpush3.bf16.msra.mxu1 %v5120_v30  ;;  %6215 = vmatpush3.bf16.msra.mxu0 %v5168_v40  ;;  %v5239_v30 = vld [vmem:[%s8914_s3 + $0x460] sm:$0xff]  }
 0x197   :  { %6121 = vmatprep.subr.bf16.mxu1 %v5129_v45  ;;  %6217 = vmatprep.subr.bf16.mxu0 %v5177_v58  ;;  %v5183_v40 = vld [vmem:[%s8914_s3 + $0x2a0] sm:$0xff]   ;;  %v5192_v58 = vld [vmem:[%s8914_s3 + $0x2e8] sm:$0xff]  }
 0x198   :  { %v5231_v45 = vld [vmem:[%s8914_s3 + $0x420] sm:$0xff]  }
 0x19a   :  { %6123 = vmatpush3.bf16.msra.mxu1 %v5121_v31  ;;  %6219 = vmatpush3.bf16.msra.mxu0 %v5169_v32  ;;  %v5240_v31 = vld [vmem:[%s8914_s3 + $0x468] sm:$0xff]  }
 0x19b   :  { %6125 = vmatprep.subr.bf16.mxu1 %v5130_v18  ;;  %6221 = vmatprep.subr.bf16.mxu0 %v5178_v33  ;;  %v5184_v32 = vld [vmem:[%s8914_s3 + $0x2a8] sm:$0xff]   ;;  %v5193_v33 = vld [vmem:[%s8914_s3 + $0x2f0] sm:$0xff]  }
 0x19c   :  { %v5232_v18 = vld [vmem:[%s8914_s3 + $0x428] sm:$0xff]  }
 0x19e   :  { %6127 = vmatpush3.bf16.msra.mxu1 %v5122_v34  ;;  %6223 = vmatpush3.bf16.msra.mxu0 %v5170_v35  ;;  %v5241_v34 = vld [vmem:[%s8914_s3 + $0x470] sm:$0xff]  }
 0x19f   :  { %6161 = vmatprep.subr.bf16.mxu1 %v5155_v36  ;;  %6257 = vmatprep.subr.bf16.mxu0 %v5203_v37  ;;  %v5185_v35 = vld [vmem:[%s8914_s3 + $0x2b0] sm:$0xff]   ;;  %v5194_v37 = vld [vmem:[%s8914_s3 + $0x2f8] sm:$0xff]  }
 0x1a0   :  { %v5233_v36 = vld [vmem:[%s8914_s3 + $0x430] sm:$0xff]  }
 0x1a1   :  { %589 = vmatmul.mubr.f32.vlgmr.msra.gmra.mrb[4].mxu1 %v7314_v3  ;;  %1009 = vmatmul.mubr.f32.vlgmr.msra.gmra.mrb[8].mxu0 %v7314_v3 }
 0x1a2   :  { %593 = vmatprep.mubr.f32.mxu1 %v7328_v8  ;;  %6163 = vmatpush3.bf16.msra.mxu1 %v5147_v38  ;;  %v5242_v38 = vld [vmem:[%s8914_s3 + $0x478] sm:$0xff]  }
 0x1a3   :  { %1013 = vmatprep.mubr.f32.mxu0 %v7328_v8  ;;  %6259 = vmatpush3.bf16.msra.mxu0 %v5195_v41  ;;  %v5186_v41 = vld [vmem:[%s8914_s3 + $0x2b8] sm:$0xff]  }
 0x1a4   :  { %6165 = vmatprep.subr.bf16.mxu1 %v5156_v42  ;;  %6261 = vmatprep.subr.bf16.mxu0 %v5204_v43  ;;  %v5234_v42 = vld [vmem:[%s8914_s3 + $0x438] sm:$0xff]   ;;  %v5219_v43 = vld [vmem:[%s8914_s3 + $0x3c0] sm:$0xff]  }
 0x1a5   :  { %594 = vmatmul.mubr.f32.gmra.mrb[6].mxu1 %v7326_v2  ;;  %1014 = vmatmul.mubr.f32.gmra.mrb[10].mxu0 %v7326_v2 }
 0x1a6   :  { %6167 = vmatpush3.bf16.msra.mxu1 %v5148_v44  ;;  %868 = vmatprep.mubr.f32.mxu1 %v7306_v9  ;;  %v5211_v44 = vld [vmem:[%s8914_s3 + $0x380] sm:$0xff]  }
 0x1a7   :  { %6263 = vmatpush3.bf16.msra.mxu0 %v5196_v46  ;;  %1288 = vmatprep.mubr.f32.mxu0 %v7306_v9  ;;  %v5220_v46 = vld [vmem:[%s8914_s3 + $0x3c8] sm:$0xff]  }
 0x1a8   :  { %6169 = vmatprep.subr.bf16.mxu1 %v5157_v47  ;;  %6265 = vmatprep.subr.bf16.mxu0 %v5205_v48  ;;  %v5212_v47 = vld [vmem:[%s8914_s3 + $0x388] sm:$0xff]   ;;  %v5221_v48 = vld [vmem:[%s8914_s3 + $0x3d0] sm:$0xff]  }
 0x1aa   :  { %6171 = vmatpush3.bf16.msra.mxu1 %v5149_v49  ;;  %v5213_v49 = vld [vmem:[%s8914_s3 + $0x390] sm:$0xff]  }
 0x1ab   :  { %6267 = vmatpush3.bf16.msra.mxu0 %v5197_v50  ;;  %6173 = vmatprep.subr.bf16.mxu1 %v5158_v51  ;;  %v5222_v50 = vld [vmem:[%s8914_s3 + $0x3d8] sm:$0xff]  }
 0x1ac   :  { %6269 = vmatprep.subr.bf16.mxu0 %v5206_v53  ;;  %v5214_v51 = vld [vmem:[%s8914_s3 + $0x398] sm:$0xff]   ;;  %v5215_v53 = vld [vmem:[%s8914_s3 + $0x3a0] sm:$0xff]  }
 0x1ae   :  { %6175 = vmatpush3.bf16.msra.mxu1 %v5150_v54  ;;  %v5224_v54 = vld [vmem:[%s8914_s3 + $0x3e8] sm:$0xff]  }
 0x1af   :  { %6271 = vmatpush3.bf16.msra.mxu0 %v5198_v55  ;;  %6177 = vmatprep.subr.bf16.mxu1 %v5159_v56  ;;  %v5216_v55 = vld [vmem:[%s8914_s3 + $0x3a8] sm:$0xff]   ;;  %v5225_v56 = vld [vmem:[%s8914_s3 + $0x3f0] sm:$0xff]  }
 0x1b0   :  { %6273 = vmatprep.subr.bf16.mxu0 %v5207_v57  ;;  %v5217_v57 = vld [vmem:[%s8914_s3 + $0x3b0] sm:$0xff]  }
 0x1b2   :  { %6179 = vmatpush3.bf16.msra.mxu1 %v5151_v59  ;;  %v5226_v59 = vld [vmem:[%s8914_s3 + $0x3f8] sm:$0xff]  }
 0x1b3   :  { %6275 = vmatpush3.bf16.msra.mxu0 %v5199_v60  ;;  %6181 = vmatprep.subr.bf16.mxu1 %v5160_v61  ;;  %v5218_v60 = vld [vmem:[%s8914_s3 + $0x3b8] sm:$0xff]   ;;  %v6832_v61 = vmov 0.0|0.0  }
 0x1b4   :  { %6277 = vmatprep.subr.bf16.mxu0 %v5208_v62 }
 0x1b6   :  { %6183 = vmatpush3.bf16.msra.mxu1 %v5152_v63 }
 0x1b7   :  { %6279 = vmatpush3.bf16.msra.mxu0 %v5200_v0  ;;  %6185 = vmatprep.subr.bf16.mxu1 %v5161_v4 }
 0x1b8   :  { %6281 = vmatprep.subr.bf16.mxu0 %v5209_v6 }
 0x1ba   :  { %6187 = vmatpush3.bf16.msra.mxu1 %v5153_v10 }
 0x1bb   :  { %6283 = vmatpush3.bf16.msra.mxu0 %v5201_v12  ;;  %6189 = vmatprep.subr.bf16.mxu1 %v5162_v13 }
 0x1bc   :  { %6285 = vmatprep.subr.bf16.mxu0 %v5210_v5 }
 0x1be   :  { %6191 = vmatpush3.bf16.msra.mxu1 %v5154_v7 }
 0x1bf   :  { %6287 = vmatpush3.bf16.msra.mxu0 %v5202_v14  ;;  %6225 = vmatprep.subr.bf16.mxu1 %v5187_v1 }
 0x1c0   :  { %6321 = vmatprep.subr.bf16.mxu0 %v5235_v52 }
 0x1c1   :  { %869 = vmatmul.mubr.f32.vlgmr.msra.gmra.mrb[8].mxu1 %v7314_v3 }
 0x1c2   :  { %1289 = vmatmul.mubr.f32.vlgmr.msra.gmra.mrb[12].mxu0 %v7314_v3  ;;  %873 = vmatprep.mubr.f32.mxu1 %v7328_v8 }
 0x1c3   :  { %6227 = vmatpush3.bf16.msra.mxu1 %v5179_v15  ;;  %1293 = vmatprep.mubr.f32.mxu0 %v7328_v8 }
 0x1c4   :  { %6323 = vmatpush3.bf16.msra.mxu0 %v5227_v16  ;;  %6229 = vmatprep.subr.bf16.mxu1 %v5188_v17 }
 0x1c5   :  { %874 = vmatmul.mubr.f32.gmra.mrb[10].mxu1 %v7326_v2  ;;  %6325 = vmatprep.subr.bf16.mxu0 %v5236_v19 }
 0x1c6   :  { %1294 = vmatmul.mubr.f32.gmra.mrb[14].mxu0 %v7326_v2  ;;  %1148 = vmatprep.mubr.f32.mxu1 %v7306_v9 }
 0x1c7   :  { %6231 = vmatpush3.bf16.msra.mxu1 %v5180_v20  ;;  %1568 = vmatprep.mubr.f32.mxu0 %v7306_v9 }
 0x1c8   :  { %6327 = vmatpush3.bf16.msra.mxu0 %v5228_v21  ;;  %6233 = vmatprep.subr.bf16.mxu1 %v5189_v22 }
 0x1c9   :  { %6329 = vmatprep.subr.bf16.mxu0 %v5237_v23 }
 0x1cb   :  { %6235 = vmatpush3.bf16.msra.mxu1 %v5181_v24 }
 0x1cc   :  { %6331 = vmatpush3.bf16.msra.mxu0 %v5229_v25  ;;  %6237 = vmatprep.subr.bf16.mxu1 %v5190_v26 }
 0x1cd   :  { %6333 = vmatprep.subr.bf16.mxu0 %v5238_v27 }
 0x1cf   :  { %6239 = vmatpush3.bf16.msra.mxu1 %v5182_v39 }
 0x1d0   :  { %6335 = vmatpush3.bf16.msra.mxu0 %v5230_v28  ;;  %6241 = vmatprep.subr.bf16.mxu1 %v5191_v29 }
 0x1d1   :  { %6337 = vmatprep.subr.bf16.mxu0 %v5239_v30 }
 0x1d3   :  { %6243 = vmatpush3.bf16.msra.mxu1 %v5183_v40 }
 0x1d4   :  { %6339 = vmatpush3.bf16.msra.mxu0 %v5231_v45  ;;  %6245 = vmatprep.subr.bf16.mxu1 %v5192_v58 }
 0x1d5   :  { %6341 = vmatprep.subr.bf16.mxu0 %v5240_v31 }
 0x1d7   :  { %6247 = vmatpush3.bf16.msra.mxu1 %v5184_v32 }
 0x1d8   :  { %6343 = vmatpush3.bf16.msra.mxu0 %v5232_v18  ;;  %6249 = vmatprep.subr.bf16.mxu1 %v5193_v33 }
 0x1d9   :  { %6345 = vmatprep.subr.bf16.mxu0 %v5241_v34 }
 0x1db   :  { %6251 = vmatpush3.bf16.msra.mxu1 %v5185_v35 }
 0x1dc   :  { %6347 = vmatpush3.bf16.msra.mxu0 %v5233_v36  ;;  %6253 = vmatprep.subr.bf16.mxu1 %v5194_v37 }
 0x1dd   :  { %6349 = vmatprep.subr.bf16.mxu0 %v5242_v38 }
 0x1df   :  { %6255 = vmatpush3.bf16.msra.mxu1 %v5186_v41 }
 0x1e0   :  { %6351 = vmatpush3.bf16.msra.mxu0 %v5234_v42  ;;  %6289 = vmatprep.subr.bf16.mxu1 %v5219_v43 }
 0x1e2   :  { %1149 = vmatmul.mubr.f32.vlgmr.msra.gmra.mrb[12].mxu1 %v7314_v3 }
 0x1e3   :  { %1569 = vmatmul.mubr.f32.vlgmr.msra.gmra.mrb[16].mxu0 %v7314_v3  ;;  %1153 = vmatprep.mubr.f32.mxu1 %v7328_v8 }
 0x1e4   :  { %6291 = vmatpush3.bf16.msra.mxu1 %v5211_v44  ;;  %1573 = vmatprep.mubr.f32.mxu0 %v7328_v8 }
 0x1e5   :  { %6293 = vmatprep.subr.bf16.mxu1 %v5220_v46 }
 0x1e6   :  { %1154 = vmatmul.mubr.f32.gmra.mrb[14].mxu1 %v7326_v2 }
 0x1e7   :  { %1574 = vmatmul.mubr.f32.gmra.mrb[18].mxu0 %v7326_v2  ;;  %1428 = vmatprep.mubr.f32.mxu1 %v7306_v9  ;;  %v5223_v9 = vld [vmem:[%s8914_s3 + $0x3e0] sm:$0xff]  }
 0x1e8   :  { %6295 = vmatpush3.bf16.msra.mxu1 %v5212_v47 }
 0x1e9   :  { %6297 = vmatprep.subr.bf16.mxu1 %v5221_v48 }
 0x1ec   :  { %6299 = vmatpush3.bf16.msra.mxu1 %v5213_v49 }
 0x1ed   :  { %6301 = vmatprep.subr.bf16.mxu1 %v5222_v50 }
 0x1f0   :  { %6303 = vmatpush3.bf16.msra.mxu1 %v5214_v51 }
 0x1f1   :  { %6305 = vmatprep.subr.bf16.mxu1 %v5223_v9 }
 0x1f4   :  { %6307 = vmatpush3.bf16.msra.mxu1 %v5215_v53 }
 0x1f5   :  { %6309 = vmatprep.subr.bf16.mxu1 %v5224_v54 }
 0x1f8   :  { %6311 = vmatpush3.bf16.msra.mxu1 %v5216_v55 }
 0x1f9   :  { %6313 = vmatprep.subr.bf16.mxu1 %v5225_v56 }
 0x1fc   :  { %6315 = vmatpush3.bf16.msra.mxu1 %v5217_v57 }
 0x1fd   :  { %6317 = vmatprep.subr.bf16.mxu1 %v5226_v59 }
 0x200   :  { %6319 = vmatpush3.bf16.msra.mxu1 %v5218_v60 }
 0x201   :  { %6352 = vmatprep.subr.bf16.mxu1 %v6832_v61 }
 0x203   :  { %1429 = vmatmul.mubr.f32.vlgmr.msra.gmra.mrb[16].mxu1 %v7314_v3  ;;  %v1580_v3 = vld [vmem:[%s8915_s4 + $0x8] sm:$0xff] }
 0x204   :  { %1433 = vmatprep.mubr.f32.mxu1 %v7328_v8  ;;  %v5243_v8 = vld [vmem:[%s8917_s6 + $0x8] sm:$0xff]  }
 0x207   :  { %1434 = vmatmul.mubr.f32.gmra.mrb[18].mxu1 %v7326_v2  ;;  %v4957_v2 = vld [vmem:[%s8917_s6] sm:$0xff]  }
 0x208   :  { %4208 = vmatprep.mubr.msk.f32.mxu1 %vm224_vm0, %v1580_v3  ;;  %6380 = vmatprep.subr.bf16.mxu0 %v4957_v2  ;;  %v5245_v3 = vld [vmem:[%s8917_s6 + $0x18] sm:$0xff]  }
 0x209   :  { %6382 = vmatpush3.bf16.msra.mxu0 %v4957_v2  ;;  %v5265_v2 = vld [vmem:[%s8917_s6 + $0xb8] sm:$0xff]  }
 0x20a   :  { %6384 = vmatprep.subr.bf16.mxu0 %v5243_v8 }
 0x20d   :  { %6386 = vmatpush3.bf16.msra.mxu0 %v5243_v8  ;;  %v5246_v8 = vld [vmem:[%s8917_s6 + $0x20] sm:$0xff]  }
 0x254   :  { %v5310_v62 = vpop.f32.mrb[0].mxu1  ;;  %v5386_v63 = vpop.f32.mrb[4].mxu0 }
 0x255   :  { %v5311_v0 = vpop.f32.mrb[1].mxu1  ;;  %v5387_v4 = vpop.f32.mrb[5].mxu0 }
 0x256   :  { %v5312_v6 = vadd.f32 %v5311_v0, %v5310_v62  ;;  %v5388_v10 = vadd.f32 %v5387_v4, %v5386_v63 }
 0x258   :  { %v5313_v12 = vpop.f32.mrb[2].mxu1  ;;  %v5389_v13 = vpop.f32.mrb[6].mxu0 }
 0x259   :  { %v5314_v5 = vpop.f32.mrb[3].mxu1  ;;  %v5390_v7 = vpop.f32.mrb[7].mxu0 }
 0x25a   :  { %v5315_v14 = vadd.f32 %v5314_v5, %v5313_v12  ;;  %v5391_v1 = vadd.f32 %v5390_v7, %v5389_v13  ;;  %v1582_v12 = vld [vmem:[%s8915_s4 + $0x18] sm:$0xff]  ;;  %v5263_v13 = vld [vmem:[%s8917_s6 + $0xa8] sm:$0xff]   ;;  %v1583_v7 = vld [vmem:[%s8915_s4 + $0x20] sm:$0xff] }
 0x25b   :  { %v1584_v5 = vld [vmem:[%s8915_s4 + $0x28] sm:$0xff] }
 0x25c   :  { %v6353_v52 = vpack.c.bf16 %v5315_v14, %v5312_v6  ;;  %v6359_v15 = vpack.c.bf16 %v5391_v1, %v5388_v10  ;;  %v5262_v6 = vld [vmem:[%s8917_s6 + $0xa0] sm:$0xff]   ;;  %v1586_v14 = vld [vmem:[%s8915_s4 + $0x38] sm:$0xff]  ;;  %v1585_v1 = vld [vmem:[%s8915_s4 + $0x30] sm:$0xff] }
 0x25d   :  { %v1579_v10 = vld [vmem:[%s8915_s4] sm:$0xff] }
 0x25e   :  { %6354 = vmatpush1.bf16.msra.mxu1 %v6353_v52  ;;  %v5244_v52 = vld [vmem:[%s8917_s6 + $0x10] sm:$0xff]  }
 0x25f   :  { %6355 = vmatprep.subr.bf16.mxu1 %v6832_v61  ;;  %6388 = vmatprep.subr.bf16.mxu0 %v5244_v52 }
 0x260   :  { %6390 = vmatpush3.bf16.msra.mxu0 %v5244_v52 }
 0x261   :  { %6392 = vmatprep.subr.bf16.mxu0 %v5245_v3 }
 0x264   :  { %6394 = vmatpush3.bf16.msra.mxu0 %v5245_v3 }
 0x265   :  { %6396 = vmatprep.subr.bf16.mxu0 %v5246_v8 }
 0x274   :  { %v5348_v16 = vpop.f32.mrb[4].mxu1  ;;  %v5462_v17 = vpop.f32.mrb[8].mxu0 }
 0x275   :  { %v5349_v19 = vpop.f32.mrb[5].mxu1  ;;  %v5463_v20 = vpop.f32.mrb[9].mxu0 }
 0x276   :  { %v5350_v21 = vadd.f32 %v5349_v19, %v5348_v16  ;;  %v5464_v22 = vadd.f32 %v5463_v20, %v5462_v17  ;;  %v5270_v16 = vld [vmem:[%s8917_s6 + $0xe0] sm:$0xff]   ;;  %v1594_v17 = vpop.permute.xlu1 %1593 }
 0x278   :  { %v5351_v23 = vpop.f32.mrb[6].mxu1  ;;  %v5465_v24 = vpop.f32.mrb[10].mxu0 }
 0x279   :  { %v5352_v25 = vpop.f32.mrb[7].mxu1  ;;  %v5466_v26 = vpop.f32.mrb[11].mxu0 }
 0x27a   :  { %v5353_v27 = vadd.f32 %v5352_v25, %v5351_v23  ;;  %v5467_v39 = vadd.f32 %v5466_v26, %v5465_v24  ;;  %v1599_v23 = vpop.permute.xlu0 %1598 }
 0x27c   :  { %v6356_v28 = vpack.c.bf16 %v5353_v27, %v5350_v21  ;;  %v6365_v29 = vpack.c.bf16 %v5467_v39, %v5464_v22 }
 0x27e   :  { %6357 = vmatpush1.bf16.msra.mxu1 %v6356_v28  ;;  %v1604_v28 = vpop.permute.xlu1 %1603 }
 0x27f   :  { %6358 = vmatprep.subr.bf16.mxu1 %v6832_v61 }
 0x282   :  { %6360 = vmatpush1.bf16.msra.mxu1 %v6359_v15  ;;  %v5264_v15 = vld [vmem:[%s8917_s6 + $0xb0] sm:$0xff]  }
 0x283   :  { %6361 = vmatprep.subr.bf16.mxu1 %v6832_v61 }
 0x294   :  { %v5424_v30 = vpop.f32.mrb[8].mxu1 }
 0x295   :  { %v5538_v40 = vpop.f32.mrb[12].mxu0  ;;  %v5425_v45 = vpop.f32.mrb[9].mxu1 }
 0x296   :  { %v5426_v58 = vadd.f32 %v5425_v45, %v5424_v30  ;;  %v5539_v31 = vpop.f32.mrb[13].mxu0 }
 0x297   :  { %v5540_v32 = vadd.f32 %v5539_v31, %v5538_v40  ;;  %v5271_v31 = vld [vmem:[%s8917_s6 + $0xe8] sm:$0xff]  }
 0x298   :  { %v5427_v18 = vpop.f32.mrb[10].mxu1 }
 0x299   :  { %v5541_v33 = vpop.f32.mrb[14].mxu0  ;;  %v5428_v34 = vpop.f32.mrb[11].mxu1 }
 0x29a   :  { %v5429_v35 = vadd.f32 %v5428_v34, %v5427_v18  ;;  %v5542_v36 = vpop.f32.mrb[15].mxu0  ;;  %v1609_v18 = vpop.permute.xlu0 %1608 }
 0x29b   :  { %v5543_v37 = vadd.f32 %v5542_v36, %v5541_v33 }
 0x29c   :  { %v6362_v38 = vpack.c.bf16 %v5429_v35, %v5426_v58  ;;  %v5247_v58 = vld [vmem:[%s8917_s6 + $0x28] sm:$0xff]  }
 0x29d   :  { %v6371_v41 = vpack.c.bf16 %v5543_v37, %v5540_v32  ;;  %v5248_v37 = vld [vmem:[%s8917_s6 + $0x30] sm:$0xff]  }
 0x29e   :  { %6363 = vmatpush1.bf16.msra.mxu1 %v6362_v38  ;;  %v5272_v38 = vld [vmem:[%s8917_s6 + $0xf0] sm:$0xff]  }
 0x29f   :  { %6364 = vmatprep.subr.bf16.mxu1 %v6832_v61 }
 0x2a2   :  { %6366 = vmatpush1.bf16.msra.mxu1 %v6365_v29 }
 0x2a3   :  { %6367 = vmatprep.subr.bf16.mxu1 %v6832_v61 }
 0x2b5   :  { %v5500_v42 = vpop.f32.mrb[12].mxu1 }
 0x2b6   :  { %v5614_v43 = vpop.f32.mrb[16].mxu0  ;;  %v5501_v44 = vpop.f32.mrb[13].mxu1 }
 0x2b7   :  { %v5502_v46 = vadd.f32 %v5501_v44, %v5500_v42  ;;  %v5615_v47 = vpop.f32.mrb[17].mxu0  ;;  %v5273_v44 = vld [vmem:[%s8917_s6 + $0xf8] sm:$0xff]  }
 0x2b8   :  { %v5616_v48 = vadd.f32 %v5615_v47, %v5614_v43  ;;  %v5249_v43 = vld [vmem:[%s8917_s6 + $0x38] sm:$0xff]   ;;  %v5251_v47 = vld [vmem:[%s8917_s6 + $0x48] sm:$0xff]  }
 0x2b9   :  { %v5503_v49 = vpop.f32.mrb[14].mxu1 }
 0x2ba   :  { %v5617_v50 = vpop.f32.mrb[18].mxu0  ;;  %v5504_v51 = vpop.f32.mrb[15].mxu1 }
 0x2bb   :  { %v5505_v9 = vadd.f32 %v5504_v51, %v5503_v49  ;;  %v5618_v53 = vpop.f32.mrb[19].mxu0  ;;  %v5253_v49 = vld [vmem:[%s8917_s6 + $0x58] sm:$0xff]   ;;  %v5255_v51 = vld [vmem:[%s8917_s6 + $0x68] sm:$0xff]  }
 0x2bc   :  { %v5619_v54 = vadd.f32 %v5618_v53, %v5617_v50  ;;  %v5254_v50 = vld [vmem:[%s8917_s6 + $0x60] sm:$0xff]   ;;  %v5257_v53 = vld [vmem:[%s8917_s6 + $0x78] sm:$0xff]  }
 0x2bd   :  { %v6368_v55 = vpack.c.bf16 %v5505_v9, %v5502_v46  ;;  %v5250_v46 = vld [vmem:[%s8917_s6 + $0x40] sm:$0xff]   ;;  %v5256_v9 = vld [vmem:[%s8917_s6 + $0x70] sm:$0xff]  }
 0x2be   :  { %v6377_v56 = vpack.c.bf16 %v5619_v54, %v5616_v48  ;;  %v5252_v48 = vld [vmem:[%s8917_s6 + $0x50] sm:$0xff]   ;;  %v5258_v54 = vld [vmem:[%s8917_s6 + $0x80] sm:$0xff]  }
 0x2bf   :  { %6369 = vmatpush1.bf16.msra.mxu1 %v6368_v55  ;;  %v5259_v55 = vld [vmem:[%s8917_s6 + $0x88] sm:$0xff]  }
 0x2c0   :  { %6370 = vmatprep.subr.bf16.mxu1 %v6832_v61 }
 0x2c3   :  { %6372 = vmatpush1.bf16.msra.mxu1 %v6371_v41 }
 0x2c4   :  { %6373 = vmatprep.subr.bf16.mxu1 %v6832_v61 }
 0x2d6   :  { %v5576_v57 = vpop.f32.mrb[16].mxu1 }
 0x2d7   :  { %v5577_v59 = vpop.f32.mrb[17].mxu1 }
 0x2d8   :  { %v5578_v60 = vadd.f32 %v5577_v59, %v5576_v57  ;;  %v5261_v57 = vld [vmem:[%s8917_s6 + $0x98] sm:$0xff]   ;;  %v5266_v59 = vld [vmem:[%s8917_s6 + $0xc0] sm:$0xff]  }
 0x2da   :  { %v5579_v62 = vpop.f32.mrb[18].mxu1 }
 0x2db   :  { %v5580_v63 = vpop.f32.mrb[19].mxu1 }
 0x2dc   :  { %v5581_v0 = vadd.f32 %v5580_v63, %v5579_v62  ;;  %v5268_v62 = vld [vmem:[%s8917_s6 + $0xd0] sm:$0xff]   ;;  %v5269_v63 = vld [vmem:[%s8917_s6 + $0xd8] sm:$0xff]  }
 0x2de   :  { %v6374_v4 = vpack.c.bf16 %v5581_v0, %v5578_v60  ;;  %v5267_v60 = vld [vmem:[%s8917_s6 + $0xc8] sm:$0xff]   ;;  %v5274_v0 = vld [vmem:[%s8917_s6 + $0x100] sm:$0xff]  }
 0x2e0   :  { %6375 = vmatpush1.bf16.msra.mxu1 %v6374_v4  ;;  %v5275_v4 = vld [vmem:[%s8917_s6 + $0x108] sm:$0xff]  }
 0x2e1   :  { %6376 = vmatprep.subr.bf16.mxu1 %v6832_v61  ;;  %v1581_v61 = vld [vmem:[%s8915_s4 + $0x10] sm:$0xff] }
 0x2e4   :  { %6378 = vmatpush1.bf16.msra.mxu1 %v6377_v56  ;;  %v5260_v56 = vld [vmem:[%s8917_s6 + $0x90] sm:$0xff]  }
 0x2e5   :  { %6460 = vmatprep.subr.bf16.mxu1 %v5262_v6 }
 0x2e7   :  { %1688 = vmatmul.mubr.f32.vlgmr.msra.gmra.mrb[20].mxu1 %v1579_v10  ;;  %v5277_v10 = vld [vmem:[%s8917_s6 + $0x118] sm:$0xff]  }
 0x2e8   :  { %4209 = vmatprep.mubr.msk.f32.mxu1 %vm224_vm0, %v1582_v12  ;;  %6462 = vmatpush3.bf16.msra.mxu1 %v5262_v6  ;;  %v5276_v6 = vld [vmem:[%s8917_s6 + $0x110] sm:$0xff]   ;;  %v2651_v12 = vld [vmem:[%s8918_s7 + $0x8] sm:$0xff] }
 0x2e9   :  { %6464 = vmatprep.subr.bf16.mxu1 %v5263_v13 }
 0x2eb   :  { %1693 = vmatmul.mubr.f32.gmra.mrb[22].mxu1 %v1581_v61 }
 0x2ec   :  { %4210 = vmatprep.mubr.msk.f32.mxu1 %vm224_vm0, %v1584_v5  ;;  %6466 = vmatpush3.bf16.msra.mxu1 %v5263_v13  ;;  %v2652_v13 = vld [vmem:[%s8918_s7 + $0x10] sm:$0xff] }
 0x2ed   :  { %6468 = vmatprep.subr.bf16.mxu1 %v5264_v15 }
 0x2ef   :  { %1698 = vmatmul.mubr.f32.gmra.mrb[24].mxu1 %v1583_v7 }
 0x2f0   :  { %4211 = vmatprep.mubr.msk.f32.mxu1 %vm224_vm0, %v1586_v14  ;;  %6470 = vmatpush3.bf16.msra.mxu1 %v5264_v15 }
 0x2f1   :  { %6472 = vmatprep.subr.bf16.mxu1 %v5265_v2 }
 0x2f3   :  { %1703 = vmatmul.mubr.f32.gmra.mrb[26].mxu1 %v1585_v1 }
 0x2f4   :  { %6474 = vmatpush3.bf16.msra.mxu1 %v5265_v2 }
 0x2f5   :  { %6492 = vmatprep.subr.bf16.mxu1 %v5270_v16 }
 0x3ba   :  { %v1689_v19 = vpop.f32.mrb[20].mxu1 }
 0x3bb   :  { %v1690_v20 = vadd.f32 %v1689_v19, %v1594_v17  ;;  %v1691_v21 = vpop.f32.mrb[21].mxu1 }
 0x3bd   :  { %vm1708_vm0 = vcmp.ge.f32.partialorder %v1690_v20, 0.0  ;;  %v1712_v22 = vmul.f32 0.2, %v1690_v20 }
 0x3be   :  { %v1694_v24 = vpop.f32.mrb[22].mxu1 }
 0x3bf   :  { %v7747_v25 = vsel %vm1708_vm0, %v1690_v20, %v1712_v22  ;;  %v1695_v26 = vadd.f32 %v1694_v24, %v1599_v23  ;;  %v1696_v27 = vpop.f32.mrb[23].mxu1 }
 0x3c0   :  { %5812 = vmatprep.mubr.msk.f32.mxu0 %vm1736_vm4, %v7747_v25  ;;  %5922 = vmatprep.mubr.msk.f32.mxu1 %vm1736_vm4, %v7747_v25 }
 0x3c1   :  { %vm1709_vm6 = vcmp.ge.f32.partialorder %v1695_v26, 0.0  ;;  %v1713_v39 = vmul.f32 0.2, %v1695_v26 }
 0x3c2   :  { %v1699_v29 = vpop.f32.mrb[24].mxu1 }
 0x3c3   :  { %v7753_v30 = vsel %vm1709_vm6, %v1695_v26, %v1713_v39  ;;  %v1700_v40 = vadd.f32 %v1699_v29, %v1604_v28  ;;  %v1701_v45 = vpop.f32.mrb[25].mxu1 }
 0x3c4   :  { %5813 = vmatmul.mubr.msk.f32.vlgmr.msra.gmra.mrb[20].mxu0 %vm1736_vm4, %v7753_v30  ;;  %5923 = vmatmul.mubr.msk.f32.vlgmr.msra.gmra.mrb[28].mxu1 %vm1736_vm4, %v7753_v30 }
 0x3c5   :  { %vm1710_vm7 = vcmp.ge.f32.partialorder %v1700_v40, 0.0  ;;  %v1714_v32 = vmul.f32 0.2, %v1700_v40  ;;  %6398 = vmatpush3.bf16.msra.mxu0 %v5246_v8  ;;  %6494 = vmatpush3.bf16.msra.mxu1 %v5270_v16 }
 0x3c6   :  { %v1704_v33 = vpop.f32.mrb[26].mxu1  ;;  %6400 = vmatprep.subr.bf16.mxu0 %v5247_v58  ;;  %6496 = vmatprep.subr.bf16.mxu1 %v5271_v31 }
 0x3c7   :  { %v7765_v34 = vsel %vm1710_vm7, %v1700_v40, %v1714_v32  ;;  %v1705_v35 = vadd.f32 %v1704_v33, %v1609_v18  ;;  %v1706_v36 = vpop.f32.mrb[27].mxu1 }
 0x3c8   :  { %5815 = vmatprep.mubr.msk.f32.mxu0 %vm1736_vm4, %v7765_v34  ;;  %5925 = vmatprep.mubr.msk.f32.mxu1 %vm1736_vm4, %v7765_v34 }
 0x3c9   :  { %vm1711_vm9 = vcmp.ge.f32.partialorder %v1705_v35, 0.0  ;;  %v1715_v41 = vmul.f32 0.2, %v1705_v35  ;;  %6402 = vmatpush3.bf16.msra.mxu0 %v5247_v58  ;;  %6498 = vmatpush3.bf16.msra.mxu1 %v5271_v31 }
 0x3ca   :  { %6404 = vmatprep.subr.bf16.mxu0 %v5248_v37  ;;  %6500 = vmatprep.subr.bf16.mxu1 %v5272_v38 }
 0x3cb   :  { %v7777_v42 = vsel %vm1711_vm9, %v1705_v35, %v1715_v41 }
 0x3cc   :  { %5816 = vmatmul.mubr.msk.f32.gmra.mrb[22].mxu0 %vm1736_vm4, %v7777_v42  ;;  %5926 = vmatmul.mubr.msk.f32.gmra.mrb[30].mxu1 %vm1736_vm4, %v7777_v42 }
 0x3cd   :  { %6406 = vmatpush3.bf16.msra.mxu0 %v5248_v37  ;;  %6502 = vmatpush3.bf16.msra.mxu1 %v5272_v38 }
 0x3ce   :  { %5834 = vmatprep.mubr.msk.f32.mxu0 %vm1736_vm4, %v7747_v25  ;;  %5966 = vmatprep.mubr.msk.f32.mxu1 %vm1736_vm4, %v7747_v25 }
 0x3cf   :  { %6408 = vmatprep.subr.bf16.mxu0 %v5249_v43  ;;  %6504 = vmatprep.subr.bf16.mxu1 %v5273_v44 }
 0x3d1   :  { %6410 = vmatpush3.bf16.msra.mxu0 %v5249_v43  ;;  %6506 = vmatpush3.bf16.msra.mxu1 %v5273_v44 }
 0x3d2   :  { %6412 = vmatprep.subr.bf16.mxu0 %v5250_v46 }
 0x3d4   :  { %5835 = vmatmul.mubr.msk.f32.vlgmr.msra.gmra.mrb[24].mxu0 %vm1736_vm4, %v7753_v30  ;;  %5967 = vmatmul.mubr.msk.f32.vlgmr.msra.gmra.mrb[32].mxu1 %vm1736_vm4, %v7753_v30 }
 0x3d5   :  { %5837 = vmatprep.mubr.msk.f32.mxu0 %vm1736_vm4, %v7765_v34  ;;  %6414 = vmatpush3.bf16.msra.mxu0 %v5250_v46 }
 0x3d6   :  { %5969 = vmatprep.mubr.msk.f32.mxu1 %vm1736_vm4, %v7765_v34  ;;  %6416 = vmatprep.subr.bf16.mxu0 %v5251_v47 }
 0x3d8   :  { %5838 = vmatmul.mubr.msk.f32.gmra.mrb[26].mxu0 %vm1736_vm4, %v7777_v42  ;;  %5970 = vmatmul.mubr.msk.f32.gmra.mrb[34].mxu1 %vm1736_vm4, %v7777_v42 }
 0x3d9   :  { %6418 = vmatpush3.bf16.msra.mxu0 %v5251_v47  ;;  %5856 = vmatprep.mubr.msk.f32.mxu0 %vm1736_vm4, %v7747_v25 }
 0x3da   :  { %6420 = vmatprep.subr.bf16.mxu0 %v5252_v48  ;;  %2811 = vmatprep.mubr.f32.mxu1 %v2651_v12  ;;  %v2658_v12 = vld [vmem:[%s8918_s7 + $0x40] sm:$0xff] }
 0x3dd   :  { %6422 = vmatpush3.bf16.msra.mxu0 %v5252_v48 }
 0x3de   :  { %6424 = vmatprep.subr.bf16.mxu0 %v5253_v49 }
 0x3e1   :  { %6426 = vmatpush3.bf16.msra.mxu0 %v5253_v49 }
 0x3e2   :  { %6428 = vmatprep.subr.bf16.mxu0 %v5254_v50 }
 0x3e4   :  { %5857 = vmatmul.mubr.msk.f32.vlgmr.msra.gmra.mrb[28].mxu0 %vm1736_vm4, %v7753_v30 }
 0x3e5   :  { %5859 = vmatprep.mubr.msk.f32.mxu0 %vm1736_vm4, %v7765_v34  ;;  %6430 = vmatpush3.bf16.msra.mxu0 %v5254_v50 }
 0x3e6   :  { %6432 = vmatprep.subr.bf16.mxu0 %v5255_v51 }
 0x3e8   :  { %5860 = vmatmul.mubr.msk.f32.gmra.mrb[30].mxu0 %vm1736_vm4, %v7777_v42 }
 0x3e9   :  { %6434 = vmatpush3.bf16.msra.mxu0 %v5255_v51  ;;  %5878 = vmatprep.mubr.msk.f32.mxu0 %vm1736_vm4, %v7747_v25 }
 0x3ea   :  { %6436 = vmatprep.subr.bf16.mxu0 %v5256_v9 }
 0x3ed   :  { %6438 = vmatpush3.bf16.msra.mxu0 %v5256_v9 }
 0x3ee   :  { %6440 = vmatprep.subr.bf16.mxu0 %v5257_v53 }
 0x3f1   :  { %6442 = vmatpush3.bf16.msra.mxu0 %v5257_v53 }
 0x3f2   :  { %6444 = vmatprep.subr.bf16.mxu0 %v5258_v54 }
 0x3f4   :  { %5879 = vmatmul.mubr.msk.f32.vlgmr.msra.gmra.mrb[32].mxu0 %vm1736_vm4, %v7753_v30 }
 0x3f5   :  { %5881 = vmatprep.mubr.msk.f32.mxu0 %vm1736_vm4, %v7765_v34  ;;  %6446 = vmatpush3.bf16.msra.mxu0 %v5258_v54 }
 0x3f6   :  { %6448 = vmatprep.subr.bf16.mxu0 %v5259_v55 }
 0x3f8   :  { %5882 = vmatmul.mubr.msk.f32.gmra.mrb[34].mxu0 %vm1736_vm4, %v7777_v42 }
 0x3f9   :  { %6450 = vmatpush3.bf16.msra.mxu0 %v5259_v55  ;;  %5900 = vmatprep.mubr.msk.f32.mxu0 %vm1736_vm4, %v7747_v25  ;;  %v2650_v55 = vld [vmem:[%s8918_s7] sm:$0xff] }
 0x3fa   :  { %6452 = vmatprep.subr.bf16.mxu0 %v5260_v56 }
 0x3fd   :  { %6454 = vmatpush3.bf16.msra.mxu0 %v5260_v56 }
 0x3fe   :  { %6456 = vmatprep.subr.bf16.mxu0 %v5261_v57 }
 0x401   :  { %6458 = vmatpush3.bf16.msra.mxu0 %v5261_v57  ;;  %v2654_v57 = vld [vmem:[%s8918_s7 + $0x20] sm:$0xff] }
 0x402   :  { %6476 = vmatprep.subr.bf16.mxu0 %v5266_v59 }
 0x404   :  { %5901 = vmatmul.mubr.msk.f32.vlgmr.msra.gmra.mrb[36].mxu0 %vm1736_vm4, %v7753_v30 }
 0x405   :  { %5903 = vmatprep.mubr.msk.f32.mxu0 %vm1736_vm4, %v7765_v34  ;;  %6478 = vmatpush3.bf16.msra.mxu0 %v5266_v59 }
 0x406   :  { %6480 = vmatprep.subr.bf16.mxu0 %v5267_v60 }
 0x408   :  { %5904 = vmatmul.mubr.msk.f32.gmra.mrb[38].mxu0 %vm1736_vm4, %v7777_v42 }
 0x409   :  { %6482 = vmatpush3.bf16.msra.mxu0 %v5267_v60  ;;  %5944 = vmatprep.mubr.msk.f32.mxu0 %vm1736_vm4, %v7747_v25 }
 0x40a   :  { %6484 = vmatprep.subr.bf16.mxu0 %v5268_v62 }
 0x40d   :  { %6486 = vmatpush3.bf16.msra.mxu0 %v5268_v62  ;;  %v2653_v62 = vld [vmem:[%s8918_s7 + $0x18] sm:$0xff] }
 0x40e   :  { %6488 = vmatprep.subr.bf16.mxu0 %v5269_v63 }
 0x411   :  { %6490 = vmatpush3.bf16.msra.mxu0 %v5269_v63 }
 0x412   :  { %6508 = vmatprep.subr.bf16.mxu0 %v5274_v0 }
 0x414   :  { %5945 = vmatmul.mubr.msk.f32.vlgmr.msra.gmra.mrb[40].mxu0 %vm1736_vm4, %v7753_v30 }
 0x415   :  { %5947 = vmatprep.mubr.msk.f32.mxu0 %vm1736_vm4, %v7765_v34  ;;  %6510 = vmatpush3.bf16.msra.mxu0 %v5274_v0  ;;  %v2657_v0 = vld [vmem:[%s8918_s7 + $0x38] sm:$0xff] }
 0x416   :  { %6512 = vmatprep.subr.bf16.mxu0 %v5275_v4 }
 0x418   :  { %5948 = vmatmul.mubr.msk.f32.gmra.mrb[42].mxu0 %vm1736_vm4, %v7777_v42 }
 0x419   :  { %6514 = vmatpush3.bf16.msra.mxu0 %v5275_v4  ;;  %5988 = vmatprep.mubr.msk.f32.mxu0 %vm1736_vm4, %v7747_v25  ;;  %v2656_v4 = vld [vmem:[%s8918_s7 + $0x30] sm:$0xff] }
 0x41a   :  { %6516 = vmatprep.subr.bf16.mxu0 %v5276_v6 }
 0x41d   :  { %6518 = vmatpush3.bf16.msra.mxu0 %v5276_v6  ;;  %v2655_v6 = vld [vmem:[%s8918_s7 + $0x28] sm:$0xff] }
 0x41e   :  { %6520 = vmatprep.subr.bf16.mxu0 %v5277_v10 }
 0x421   :  { %6522 = vmatpush3.bf16.msra.mxu0 %v5277_v10  ;;  %v2660_v10 = vld [vmem:[%s8918_s7 + $0x50] sm:$0xff] }
 0x424   :  { %5989 = vmatmul.mubr.msk.f32.vlgmr.msra.gmra.mrb[44].mxu0 %vm1736_vm4, %v7753_v30 }
 0x425   :  { %5991 = vmatprep.mubr.msk.f32.mxu0 %vm1736_vm4, %v7765_v34 }
 0x428   :  { %5992 = vmatmul.mubr.msk.f32.gmra.mrb[46].mxu0 %vm1736_vm4, %v7777_v42  ;;  %vm3906_vm4 = vcmask 0  }
 0x429   :  { %6002 = vmatprep.mubr.msk.f32.mxu0 %vm2722_vm10, %v2652_v13  ;;  %v2659_v13 = vld [vmem:[%s8918_s7 + $0x48] sm:$0xff] }
 0x497   :  { %v5814_v61 = vpop.f32.mrb[20].mxu0  ;;  %v5924_v5 = vpop.f32.mrb[28].mxu1 }
 0x498   :  { %v1815_v7 = vpop.f32.mrb[21].mxu0  ;;  %v2325_v14 = vpop.f32.mrb[29].mxu1 }
 0x499   :  { %v6525_v1 = vpack.c.bf16 %v5814_v61, %v1815_v7  ;;  %v6531_v52 = vpack.c.bf16 %v5924_v5, %v2325_v14  ;;  %v2661_v61 = vld [vmem:[%s8918_s7 + $0x58] sm:$0xff]  ;;  %v2663_v5 = vld [vmem:[%s8918_s7 + $0x68] sm:$0xff]  ;;  %v2664_v7 = vld [vmem:[%s8918_s7 + $0x70] sm:$0xff] }
 0x49a   :  { %v2662_v14 = vld [vmem:[%s8918_s7 + $0x60] sm:$0xff] }
 0x49f   :  { %v5817_v15 = vpop.f32.mrb[22].mxu0  ;;  %v5927_v3 = vpop.f32.mrb[30].mxu1 }
 0x4a0   :  { %v1825_v2 = vpop.f32.mrb[23].mxu0  ;;  %v2335_v8 = vpop.f32.mrb[31].mxu1 }
 0x4a1   :  { %v6529_v16 = vpack.c.bf16 %v5817_v15, %v1825_v2  ;;  %v6535_v17 = vpack.c.bf16 %v5927_v3, %v2335_v8  ;;  %v2665_v15 = vld [vmem:[%s8918_s7 + $0x78] sm:$0xff]  ;;  %v2668_v2 = vld [vmem:[%s8918_s7 + $0x90] sm:$0xff] }
 0x4a2   :  { %v2669_v3 = vld [vmem:[%s8918_s7 + $0x98] sm:$0xff]  ;;  %v2672_v8 = vld [vmem:[%s8918_s7 + $0xb0] sm:$0xff] }
 0x4a7   :  { %v5836_v19 = vpop.f32.mrb[24].mxu0  ;;  %v5968_v20 = vpop.f32.mrb[32].mxu1 }
 0x4a8   :  { %v1917_v21 = vpop.f32.mrb[25].mxu0  ;;  %v2529_v22 = vpop.f32.mrb[33].mxu1 }
 0x4a9   :  { %v6533_v23 = vpack.c.bf16 %v5836_v19, %v1917_v21  ;;  %v6547_v24 = vpack.c.bf16 %v5968_v20, %v2529_v22  ;;  %v2673_v19 = vld [vmem:[%s8918_s7 + $0xb8] sm:$0xff] }
 0x4ab   :  { %v5839_v25 = vpop.f32.mrb[26].mxu0  ;;  %v5971_v26 = vpop.f32.mrb[34].mxu1 }
 0x4ac   :  { %v1927_v27 = vpop.f32.mrb[27].mxu0  ;;  %v2539_v39 = vpop.f32.mrb[35].mxu1 }
 0x4ad   :  { %v6537_v28 = vpack.c.bf16 %v5839_v25, %v1927_v27  ;;  %v6551_v29 = vpack.c.bf16 %v5971_v26, %v2539_v39  ;;  %v2685_v25 = vpop.permute.xlu1 %2684  ;;  %v2690_v27 = vpop.permute.xlu0 %2689 }
 0x4b7   :  { %v5858_v30 = vpop.f32.mrb[28].mxu0 }
 0x4b8   :  { %v2019_v40 = vpop.f32.mrb[29].mxu0 }
 0x4b9   :  { %v6541_v45 = vpack.c.bf16 %v5858_v30, %v2019_v40 }
 0x4bb   :  { %v5861_v58 = vpop.f32.mrb[30].mxu0 }
 0x4bc   :  { %v2029_v31 = vpop.f32.mrb[31].mxu0 }
 0x4bd   :  { %v6545_v32 = vpack.c.bf16 %v5861_v58, %v2029_v31 }
 0x4c7   :  { %v5880_v18 = vpop.f32.mrb[32].mxu0 }
 0x4c8   :  { %v2121_v33 = vpop.f32.mrb[33].mxu0 }
 0x4c9   :  { %v6549_v34 = vpack.c.bf16 %v5880_v18, %v2121_v33  ;;  %v2695_v18 = vpop.permute.xlu1 %2694 }
 0x4cb   :  { %v5883_v35 = vpop.f32.mrb[34].mxu0 }
 0x4cc   :  { %v2131_v36 = vpop.f32.mrb[35].mxu0 }
 0x4cd   :  { %v6553_v37 = vpack.c.bf16 %v5883_v35, %v2131_v36 }
 0x4d7   :  { %v5902_v38 = vpop.f32.mrb[36].mxu0 }
 0x4d8   :  { %v2223_v41 = vpop.f32.mrb[37].mxu0 }
 0x4d9   :  { %v6523_v42 = vpack.c.bf16 %v5902_v38, %v2223_v41 }
 0x4db   :  { %v5905_v43 = vpop.f32.mrb[38].mxu0  ;;  %6524 = vmatprep.subr.bf16.mxu1 %v6523_v42 }
 0x4dc   :  { %v2233_v44 = vpop.f32.mrb[39].mxu0  ;;  %6526 = vmatpush3.bf16.msra.mxu1 %v6525_v1  ;;  %v2667_v1 = vld [vmem:[%s8918_s7 + $0x88] sm:$0xff] }
 0x4dd   :  { %v6527_v46 = vpack.c.bf16 %v5905_v43, %v2233_v44  ;;  %v2700_v44 = vpop.permute.xlu0 %2699 }
 0x4df   :  { %6528 = vmatprep.subr.bf16.mxu1 %v6527_v46 }
 0x4e0   :  { %6530 = vmatpush3.bf16.msra.mxu1 %v6529_v16  ;;  %v2671_v16 = vld [vmem:[%s8918_s7 + $0xa8] sm:$0xff] }
 0x4e1   :  { %6532 = vmatprep.subr.bf16.mxu1 %v6531_v52  ;;  %v2666_v52 = vld [vmem:[%s8918_s7 + $0x80] sm:$0xff] }
 0x4e4   :  { %6534 = vmatpush3.bf16.msra.mxu1 %v6533_v23 }
 0x4e5   :  { %6536 = vmatprep.subr.bf16.mxu1 %v6535_v17  ;;  %v2670_v17 = vld [vmem:[%s8918_s7 + $0xa0] sm:$0xff] }
 0x4e7   :  { %v5946_v47 = vpop.f32.mrb[40].mxu0 }
 0x4e8   :  { %v2427_v48 = vpop.f32.mrb[41].mxu0  ;;  %6538 = vmatpush3.bf16.msra.mxu1 %v6537_v28 }
 0x4e9   :  { %v6539_v49 = vpack.c.bf16 %v5946_v47, %v2427_v48 }
 0x4eb   :  { %v5949_v50 = vpop.f32.mrb[42].mxu0  ;;  %6540 = vmatprep.subr.bf16.mxu1 %v6539_v49 }
 0x4ec   :  { %v2437_v51 = vpop.f32.mrb[43].mxu0  ;;  %6542 = vmatpush3.bf16.msra.mxu1 %v6541_v45 }
 0x4ed   :  { %v6543_v9 = vpack.c.bf16 %v5949_v50, %v2437_v51 }
 0x4ef   :  { %6544 = vmatprep.subr.bf16.mxu1 %v6543_v9 }
 0x4f0   :  { %6546 = vmatpush3.bf16.msra.mxu1 %v6545_v32 }
 0x4f1   :  { %6548 = vmatprep.subr.bf16.mxu1 %v6547_v24 }
 0x4f4   :  { %6550 = vmatpush3.bf16.msra.mxu1 %v6549_v34 }
 0x4f5   :  { %6552 = vmatprep.subr.bf16.mxu1 %v6551_v29 }
 0x4f7   :  { %v5990_v53 = vpop.f32.mrb[44].mxu0 }
 0x4f8   :  { %v2631_v54 = vpop.f32.mrb[45].mxu0  ;;  %6554 = vmatpush3.bf16.msra.mxu1 %v6553_v37 }
 0x4f9   :  { %v6555_v56 = vpack.c.bf16 %v5990_v53, %v2631_v54  ;;  %v2705_v54 = vpop.permute.xlu1 %2704 }
 0x4fb   :  { %v5993_v59 = vpop.f32.mrb[46].mxu0  ;;  %2812 = vmatmul.mubr.f32.vlgmr.msra.gmra.mrb[36].mxu1 %v2650_v55  ;;  %6556 = vmatprep.subr.bf16.mxu0 %v6555_v56 }
 0x4fc   :  { %6563 = vmatprep.subr.bf16.mxu1 %v6555_v56  ;;  %v2641_v60 = vpop.f32.mrb[47].mxu0  ;;  %6558 = vmatpush3.bf16.msra.mxu0 %v6555_v56 }
 0x4fd   :  { %v6559_v63 = vpack.c.bf16 %v5993_v59, %v2641_v60  ;;  %6565 = vmatpush3.bf16.msra.mxu1 %v6555_v56  ;;  %2816 = vmatprep.mubr.f32.mxu1 %v2654_v57  ;;  %v8935_v56 = vmov 1  }
 0x4ff   :  { %2817 = vmatmul.mubr.f32.gmra.mrb[38].mxu1 %v2653_v62  ;;  %6560 = vmatprep.subr.bf16.mxu0 %v6559_v63 }
 0x500   :  { %6564 = vmatprep.subr.bf16.mxu1 %v6559_v63  ;;  %6562 = vmatpush3.bf16.msra.mxu0 %v6559_v63 }
 0x501   :  { %6566 = vmatpush3.bf16.msra.mxu1 %v6559_v63  ;;  %2821 = vmatprep.mubr.f32.mxu1 %v2657_v0  ;;  %v2710_v0 = vpop.permute.xlu0 %2709 }
 0x503   :  { %2822 = vmatmul.mubr.f32.gmra.mrb[40].mxu1 %v2656_v4  ;;  %6003 = vmatmul.mubr.msk.f32.vlgmr.msra.gmra.mrb[48].mxu0 %vm2722_vm10, %v2655_v6 }
 0x504   :  { %2826 = vmatprep.mubr.f32.mxu1 %v2660_v10  ;;  %6005 = vmatprep.mubr.msk.f32.mxu0 %vm2722_vm10, %v2658_v12  ;;  %v8934_v10 = vmov 2  }
 0x507   :  { %2827 = vmatmul.mubr.f32.gmra.mrb[42].mxu1 %v2659_v13  ;;  %6006 = vmatmul.mubr.msk.f32.gmra.mrb[50].mxu0 %vm2722_vm10, %v2661_v61 }
 0x508   :  { %2831 = vmatprep.mubr.f32.mxu1 %v2663_v5  ;;  %6008 = vmatprep.mubr.msk.f32.mxu0 %vm2722_vm10, %v2664_v7 }
 0x50b   :  { %2832 = vmatmul.mubr.f32.gmra.mrb[44].mxu1 %v2662_v14  ;;  %6009 = vmatmul.mubr.msk.f32.gmra.mrb[52].mxu0 %vm2722_vm10, %v2667_v1  ;;  %v8933_v14 = vmov 3  }
 0x50c   :  { %2836 = vmatprep.mubr.f32.mxu1 %v2666_v52  ;;  %v2720_v52 = vpop.permute.xlu0 %2719 }
 0x50f   :  { %2837 = vmatmul.mubr.f32.gmra.mrb[46].mxu1 %v2665_v15  ;;  %v2715_v15 = vpop.permute.xlu1 %2714 }
 0x510   :  { %2841 = vmatprep.mubr.f32.mxu1 %v2669_v3 }
 0x513   :  { %2842 = vmatmul.mubr.f32.gmra.mrb[48].mxu1 %v2668_v2 }
 0x514   :  { %2846 = vmatprep.mubr.f32.mxu1 %v2672_v8 }
 0x517   :  { %2847 = vmatmul.mubr.f32.gmra.mrb[50].mxu1 %v2671_v16 }
 0x518   :  { %6011 = vmatprep.mubr.msk.f32.mxu1 %vm2722_vm10, %v2670_v17 }
 0x51b   :  { %6012 = vmatmul.mubr.msk.f32.vlgmr.msra.gmra.mrb[52].mxu1 %vm2722_vm10, %v2673_v19 }
 0x5ce   :  { %v5760_v20 = vpop.f32.mrb[36].mxu1 }
 0x5cf   :  { %v5761_v21 = vpop.f32.mrb[37].mxu1 }
 0x5d0   :  { %v5762_v22 = vadd.f32 %v5761_v21, %v5760_v20  ;;  %v8932_v20 = vmov 4   ;;  %v8930_v21 = vmov 5  }
 0x5d2   :  { %v5763_v23 = vpop.f32.mrb[38].mxu1  ;;  %v2814_v30 = vadd.f32 %v5762_v22, %v2685_v25  ;;  %v8931_v22 = vmov 6   ;;  %v8928_v25 = vmov 9  }
 0x5d3   :  { %v5764_v24 = vpop.f32.mrb[39].mxu1 }
 0x5d4   :  { %v5765_v26 = vadd.f32 %v5764_v24, %v5763_v23  ;;  %v8929_v23 = vmov 7   ;;  %v8939_v24 = vmov 8  }
 0x5d6   :  { %v5766_v39 = vpop.f32.mrb[40].mxu1  ;;  %v2819_v28 = vadd.f32 %v5765_v26, %v2690_v27  ;;  %v6004_v29 = vpop.f32.mrb[48].mxu0  ;;  %v8942_v26 = vmov 10   ;;  %v8927_v27 = vmov 11  }
 0x5d7   :  { %v5767_v40 = vpop.f32.mrb[41].mxu1  ;;  %v2918_v45 = vpop.f32.mrb[49].mxu0 }
 0x5d8   :  { %v2924_v58 = vadd.f32 %v6004_v29, %v2819_v28  ;;  %v5768_v31 = vadd.f32 %v5767_v40, %v5766_v39  ;;  %v2919_v32 = vadd.f32 %v2918_v45, %v2814_v30  ;;  %v8940_v39 = vmov 12  }
 0x5d9   :  { %v8926_v28 = vmov 13   ;;  %v8937_v29 = vmov 14   ;;  %v8925_v30 = vmov 15  }
 0x5da   :  { %vm2958_vm5 = vcmp.ge.f32.partialorder %v2924_v58, 0.0  ;;  %v2966_v33 = vmul.f32 0.2, %v2924_v58  ;;  %vm2957_vm12 = vcmp.ge.f32.partialorder %v2919_v32, 0.0  ;;  %v2965_v34 = vmul.f32 0.2, %v2919_v32 }
 0x5db   :  { %v5769_v35 = vpop.f32.mrb[42].mxu1  ;;  %v6007_v36 = vpop.f32.mrb[50].mxu0  ;;  %v2824_v37 = vadd.f32 %v5768_v31, %v2695_v18 }
 0x5dc   :  { %v7985_v38 = vsel %vm2958_vm5, %v2924_v58, %v2966_v33  ;;  %v7987_v41 = vsel %vm2957_vm12, %v2919_v32, %v2965_v34  ;;  %v5770_v42 = vpop.f32.mrb[43].mxu1  ;;  %v2928_v43 = vpop.f32.mrb[51].mxu0 }
 0x5dd   :  { %v5771_v46 = vadd.f32 %v5770_v42, %v5769_v35  ;;  %v7989_v47 = vadd.f32 %v2928_v43, %v2824_v37  ;;  %2992 = vperm.xlu0 %6673, %v7985_v38   ;;  %2987 = vperm.xlu1 %6674, %v7987_v41  }
 0x5de   :  { %v5772_v48 = vpop.f32.mrb[44].mxu1  ;;  %v6010_v49 = vpop.f32.mrb[52].mxu0 }
 0x5df   :  { %v2829_v50 = vadd.f32 %v5771_v46, %v2700_v44  ;;  %v5773_v51 = vpop.f32.mrb[45].mxu1  ;;  %v2938_v9 = vpop.f32.mrb[53].mxu0  ;;  %v2967_v45 = vmul.f32 0.2, %v7989_v47  ;;  %vm2959_vm14 = vcmp.ge.f32.partialorder %v7989_v47, 0.0 }
 0x5e0   :  { %v5774_v53 = vadd.f32 %v5773_v51, %v5772_v48 }
 0x5e1   :  { %v7993_v55 = vadd.f32 %v6007_v36, %v2829_v50  ;;  %6676 = vset.pattern.permute.xlu0 %v8935_v56  ;;  %6675 = vset.pattern.permute.xlu1 %v8935_v56  ;;  %v8071_v31 = vsel %vm2959_vm14, %v7989_v47, %v2967_v45 }
 0x5e2   :  { %v5775_v57 = vpop.f32.mrb[46].mxu1  ;;  %3023 = vperm.xlu0 %6676, %v7985_v38   ;;  %3019 = vperm.xlu1 %6675, %v7987_v41   ;;  %v2834_v59 = vadd.f32 %v5774_v53, %v2705_v54 }
 0x5e3   :  { %v5776_v60 = vpop.f32.mrb[47].mxu1  ;;  %v2968_v40 = vmul.f32 0.2, %v7993_v55  ;;  %vm2960_vm13 = vcmp.ge.f32.partialorder %v7993_v55, 0.0 }
 0x5e4   :  { %v5777_v62 = vadd.f32 %v5776_v60, %v5775_v57  ;;  %v7999_v63 = vadd.f32 %v2938_v9, %v2834_v59 }
 0x5e5   :  { %v8068_v58 = vsel %vm2960_vm13, %v7993_v55, %v2968_v40 }
 0x5e6   :  { %v2839_v4 = vadd.f32 %v5777_v62, %v2710_v0  ;;  %v5778_v6 = vpop.f32.mrb[48].mxu1  ;;  %6677 = vset.pattern.permute.xlu0 %v8934_v10  ;;  %6678 = vset.pattern.permute.xlu1 %v8934_v10  ;;  %v2969_v32 = vmul.f32 0.2, %v7999_v63  ;;  %vm2961_vm15 = vcmp.ge.f32.partialorder %v7999_v63, 0.0 }
 0x5e7   :  { %v5779_v12 = vpop.f32.mrb[49].mxu1  ;;  %3048 = vperm.xlu0 %6677, %v7987_v41   ;;  %3052 = vperm.xlu1 %6678, %v7985_v38  }
 0x5e8   :  { %v8005_v13 = vadd.f32 %v6010_v49, %v2839_v4  ;;  %v5780_v61 = vadd.f32 %v5779_v12, %v5778_v6  ;;  %v8108_v18 = vsel %vm2961_vm15, %v7999_v63, %v2969_v32 }
 0x5ea   :  { %v5781_v5 = vpop.f32.mrb[50].mxu1  ;;  %v2844_v8 = vadd.f32 %v5780_v61, %v2715_v15  ;;  %v2970_v37 = vmul.f32 0.2, %v8005_v13  ;;  %vm2962_vm1 = vcmp.ge.f32.partialorder %v8005_v13, 0.0 }
 0x5eb   :  { %v5782_v7 = vpop.f32.mrb[51].mxu1  ;;  %6680 = vset.pattern.permute.xlu0 %v8933_v14  ;;  %6679 = vset.pattern.permute.xlu1 %v8933_v14 }
 0x5ec   :  { %v5783_v1 = vadd.f32 %v5782_v7, %v5781_v5  ;;  %3081 = vperm.xlu0 %6680, %v7985_v38   ;;  %3077 = vperm.xlu1 %6679, %v7987_v41  }
 0x5ee   :  { %v2849_v3 = vadd.f32 %v5783_v1, %v2720_v52  ;;  %v6013_v2 = vpop.f32.mrb[52].mxu1 }
 0x5ef   :  { %v2948_v16 = vpop.f32.mrb[53].mxu1 }
 0x5f0   :  { %v8011_v17 = vadd.f32 %v6013_v2, %v2849_v3  ;;  %v8013_v19 = vadd.f32 %v2948_v16, %v2844_v8  ;;  %6681 = vset.pattern.permute.xlu0 %v8932_v20  ;;  %6682 = vset.pattern.permute.xlu1 %v8932_v20 }
 0x5f1   :  { %3106 = vperm.xlu0 %6681, %v7987_v41   ;;  %3110 = vperm.xlu1 %6682, %v7985_v38  }
 0x5f2   :  { %v2971_v48 = vmul.f32 0.2, %v8013_v19  ;;  %vm2963_vm2 = vcmp.ge.f32.partialorder %v8013_v19, 0.0  ;;  %vm2964_vm8 = vcmp.ge.f32.partialorder %v8011_v17, 0.0 }
 0x5f4   :  { %v8188_v50 = vsel %vm2963_vm2, %v8013_v19, %v2971_v48 }
 0x5f5   :  { %6684 = vset.pattern.permute.xlu0 %v8930_v21  ;;  %6683 = vset.pattern.permute.xlu1 %v8930_v21 }
 0x5f6   :  { %3139 = vperm.xlu0 %6684, %v7985_v38   ;;  %3135 = vperm.xlu1 %6683, %v7987_v41  }
 0x5fa   :  { %6685 = vset.pattern.permute.xlu0 %v8931_v22  ;;  %6686 = vset.pattern.permute.xlu1 %v8931_v22 }
 0x5fb   :  { %3164 = vperm.xlu0 %6685, %v7987_v41   ;;  %3168 = vperm.xlu1 %6686, %v7985_v38  }
 0x5ff   :  { %6688 = vset.pattern.permute.xlu0 %v8929_v23  ;;  %6687 = vset.pattern.permute.xlu1 %v8929_v23 }
 0x600   :  { %3197 = vperm.xlu0 %6688, %v7985_v38   ;;  %3193 = vperm.xlu1 %6687, %v7987_v41  }
 0x604   :  { %6689 = vset.pattern.permute.xlu0 %v8939_v24  ;;  %6690 = vset.pattern.permute.xlu1 %v8939_v24 }
 0x605   :  { %3222 = vperm.xlu0 %6689, %v7987_v41   ;;  %3226 = vperm.xlu1 %6690, %v7985_v38  }
 0x609   :  { %6692 = vset.pattern.permute.xlu0 %v8928_v25  ;;  %6691 = vset.pattern.permute.xlu1 %v8928_v25 }
 0x60a   :  { %3255 = vperm.xlu0 %6692, %v7985_v38   ;;  %3251 = vperm.xlu1 %6691, %v7987_v41  }
 0x60e   :  { %6693 = vset.pattern.permute.xlu0 %v8942_v26  ;;  %6694 = vset.pattern.permute.xlu1 %v8942_v26 }
 0x60f   :  { %3280 = vperm.xlu0 %6693, %v7987_v41   ;;  %3284 = vperm.xlu1 %6694, %v7985_v38  }
 0x613   :  { %6696 = vset.pattern.permute.xlu0 %v8927_v27  ;;  %6695 = vset.pattern.permute.xlu1 %v8927_v27 }
 0x614   :  { %3313 = vperm.xlu0 %6696, %v7985_v38   ;;  %3309 = vperm.xlu1 %6695, %v7987_v41  }
 0x618   :  { %6697 = vset.pattern.permute.xlu0 %v8940_v39  ;;  %6698 = vset.pattern.permute.xlu1 %v8940_v39 }
 0x619   :  { %3338 = vperm.xlu0 %6697, %v7987_v41   ;;  %3342 = vperm.xlu1 %6698, %v7985_v38  }
 0x61d   :  { %6700 = vset.pattern.permute.xlu0 %v8926_v28  ;;  %6699 = vset.pattern.permute.xlu1 %v8926_v28 }
 0x61e   :  { %3371 = vperm.xlu0 %6700, %v7985_v38   ;;  %3367 = vperm.xlu1 %6699, %v7987_v41  }
 0x622   :  { %6701 = vset.pattern.permute.xlu0 %v8937_v29  ;;  %6702 = vset.pattern.permute.xlu1 %v8937_v29 }
 0x623   :  { %3396 = vperm.xlu0 %6701, %v7987_v41   ;;  %3400 = vperm.xlu1 %6702, %v7985_v38  }
 0x627   :  { %6704 = vset.pattern.permute.xlu0 %v8925_v30  ;;  %6703 = vset.pattern.permute.xlu1 %v8925_v30 }
 0x628   :  { %3429 = vperm.xlu0 %6704, %v7985_v38   ;;  %3425 = vperm.xlu1 %6703, %v7987_v41   ;;  %v8147_v41 = vsel %vm2962_vm1, %v8005_v13, %v2970_v37 }
 0x62c   :  { %6721 = vset.pattern.permute.xlu0 %v8936_v11  ;;  %6705 = vset.pattern.permute.xlu1 %v8936_v11 }
 0x62d   :  { %3002 = vperm.xlu0 %6721, %v8068_v58   ;;  %2997 = vperm.xlu1 %6705, %v8071_v31  }
 0x631   :  { %6723 = vset.pattern.permute.xlu0 %v8934_v10  ;;  %6706 = vset.pattern.permute.xlu1 %v8935_v56 }
 0x632   :  { %3060 = vperm.xlu0 %6723, %v8068_v58   ;;  %3027 = vperm.xlu1 %6706, %v8071_v31  }
 0x636   :  { %6725 = vset.pattern.permute.xlu0 %v8932_v20  ;;  %6707 = vset.pattern.permute.xlu1 %v8934_v10 }
 0x637   :  { %3118 = vperm.xlu0 %6725, %v8068_v58   ;;  %3056 = vperm.xlu1 %6707, %v8071_v31  }
 0x63b   :  { %6727 = vset.pattern.permute.xlu0 %v8931_v22  ;;  %6708 = vset.pattern.permute.xlu1 %v8933_v14 }
 0x63c   :  { %3176 = vperm.xlu0 %6727, %v8068_v58   ;;  %3085 = vperm.xlu1 %6708, %v8071_v31  }
 0x640   :  { %6729 = vset.pattern.permute.xlu0 %v8939_v24  ;;  %6709 = vset.pattern.permute.xlu1 %v8932_v20 }
 0x641   :  { %3234 = vperm.xlu0 %6729, %v8068_v58   ;;  %3114 = vperm.xlu1 %6709, %v8071_v31  }
 0x645   :  { %6731 = vset.pattern.permute.xlu0 %v8942_v26  ;;  %6710 = vset.pattern.permute.xlu1 %v8930_v21 }
 0x646   :  { %3292 = vperm.xlu0 %6731, %v8068_v58   ;;  %3143 = vperm.xlu1 %6710, %v8071_v31  }
 0x64a   :  { %6733 = vset.pattern.permute.xlu0 %v8940_v39  ;;  %6711 = vset.pattern.permute.xlu1 %v8931_v22 }
 0x64b   :  { %3350 = vperm.xlu0 %6733, %v8068_v58   ;;  %3172 = vperm.xlu1 %6711, %v8071_v31  }
 0x64f   :  { %6735 = vset.pattern.permute.xlu0 %v8937_v29  ;;  %6712 = vset.pattern.permute.xlu1 %v8929_v23 }
 0x650   :  { %3408 = vperm.xlu0 %6735, %v8068_v58   ;;  %3201 = vperm.xlu1 %6712, %v8071_v31  }
 0x654   :  { %6739 = vset.pattern.permute.xlu0 %v8934_v10  ;;  %6713 = vset.pattern.permute.xlu1 %v8939_v24 }
 0x655   :  { %3537 = vperm.xlu0 %6739, %v8108_v18   ;;  %3230 = vperm.xlu1 %6713, %v8071_v31  }
 0x659   :  { %6743 = vset.pattern.permute.xlu0 %v8931_v22  ;;  %6714 = vset.pattern.permute.xlu1 %v8928_v25 }
 0x65a   :  { %3633 = vperm.xlu0 %6743, %v8108_v18   ;;  %3259 = vperm.xlu1 %6714, %v8071_v31  }
 0x65c   :  { %v8118_v33 = vpop.permute.xlu1 %2987  ;;  %v8190_v51 = vpop.permute.xlu0 %2992 }
 0x65e   :  { %6745 = vset.pattern.permute.xlu0 %v8939_v24  ;;  %6715 = vset.pattern.permute.xlu1 %v8942_v26 }
 0x65f   :  { %3681 = vperm.xlu0 %6745, %v8108_v18   ;;  %3288 = vperm.xlu1 %6715, %v8071_v31  }
 0x661   :  { %v8124_v34 = vpop.permute.xlu1 %3019  ;;  %v8200_v53 = vpop.permute.xlu0 %3023 }
 0x663   :  { %6747 = vset.pattern.permute.xlu0 %v8942_v26  ;;  %6716 = vset.pattern.permute.xlu1 %v8927_v27 }
 0x664   :  { %3729 = vperm.xlu0 %6747, %v8108_v18   ;;  %3317 = vperm.xlu1 %6716, %v8071_v31  }
 0x666   :  { %v8130_v35 = vpop.permute.xlu1 %3052  ;;  %v8210_v55 = vpop.permute.xlu0 %3048 }
 0x668   :  { %6749 = vset.pattern.permute.xlu0 %v8940_v39  ;;  %6717 = vset.pattern.permute.xlu1 %v8940_v39 }
 0x669   :  { %3777 = vperm.xlu0 %6749, %v8108_v18   ;;  %3346 = vperm.xlu1 %6717, %v8071_v31  }
 0x66b   :  { %v8136_v36 = vpop.permute.xlu1 %3077  ;;  %v8218_v59 = vpop.permute.xlu0 %3081 }
 0x66d   :  { %6751 = vset.pattern.permute.xlu0 %v8937_v29  ;;  %6718 = vset.pattern.permute.xlu1 %v8926_v28 }
 0x66e   :  { %3825 = vperm.xlu0 %6751, %v8108_v18   ;;  %3375 = vperm.xlu1 %6718, %v8071_v31  }
 0x670   :  { %v8144_v38 = vpop.permute.xlu1 %3110  ;;  %v8228_v63 = vpop.permute.xlu0 %3106 }
 0x672   :  { %6758 = vset.pattern.permute.xlu0 %v8930_v21  ;;  %6719 = vset.pattern.permute.xlu1 %v8937_v29 }
 0x673   :  { %3613 = vperm.xlu0 %6758, %v8147_v41   ;;  %3404 = vperm.xlu1 %6719, %v8071_v31  }
 0x675   :  { %v8153_v42 = vpop.permute.xlu1 %3135  ;;  %v8235_v4 = vpop.permute.xlu0 %3139 }
 0x677   :  { %6760 = vset.pattern.permute.xlu0 %v8929_v23  ;;  %6720 = vset.pattern.permute.xlu1 %v8925_v30 }
 0x678   :  { %3661 = vperm.xlu0 %6760, %v8147_v41   ;;  %3433 = vperm.xlu1 %6720, %v8071_v31  }
 0x67a   :  { %v8159_v43 = vpop.permute.xlu1 %3168  ;;  %v8242_v12 = vpop.permute.xlu0 %3164 }
 0x67c   :  { %6762 = vset.pattern.permute.xlu0 %v8928_v25  ;;  %6722 = vset.pattern.permute.xlu1 %v8935_v56 }
 0x67d   :  { %3709 = vperm.xlu0 %6762, %v8147_v41   ;;  %3031 = vperm.xlu1 %6722, %v8068_v58  }
 0x67f   :  { %v8165_v44 = vpop.permute.xlu1 %3193  ;;  %v8249_v61 = vpop.permute.xlu0 %3197 }
 0x681   :  { %6764 = vset.pattern.permute.xlu0 %v8927_v27  ;;  %6724 = vset.pattern.permute.xlu1 %v8933_v14 }
 0x682   :  { %3757 = vperm.xlu0 %6764, %v8147_v41   ;;  %3089 = vperm.xlu1 %6724, %v8068_v58  }
 0x684   :  { %v8171_v46 = vpop.permute.xlu1 %3226  ;;  %v8255_v7 = vpop.permute.xlu0 %3222 }
 0x686   :  { %6766 = vset.pattern.permute.xlu0 %v8926_v28  ;;  %6726 = vset.pattern.permute.xlu1 %v8930_v21 }
 0x687   :  { %3805 = vperm.xlu0 %6766, %v8147_v41   ;;  %3147 = vperm.xlu1 %6726, %v8068_v58  }
 0x689   :  { %v8177_v47 = vpop.permute.xlu1 %3251  ;;  %v8263_v15 = vpop.permute.xlu0 %3255 }
 0x68b   :  { %6768 = vset.pattern.permute.xlu0 %v8925_v30  ;;  %6728 = vset.pattern.permute.xlu1 %v8929_v23 }
 0x68c   :  { %3853 = vperm.xlu0 %6768, %v8147_v41   ;;  %3205 = vperm.xlu1 %6728, %v8068_v58  }
 0x68e   :  { %v8185_v49 = vpop.permute.xlu1 %3284  ;;  %v8269_v2 = vpop.permute.xlu0 %3280 }
 0x690   :  { %6775 = vset.pattern.permute.xlu0 %v8931_v22  ;;  %6730 = vset.pattern.permute.xlu1 %v8928_v25 }
 0x691   :  { %3641 = vperm.xlu0 %6775, %v8188_v50   ;;  %3263 = vperm.xlu1 %6730, %v8068_v58  }
 0x693   :  { %v8196_v9 = vpop.permute.xlu1 %3309  ;;  %v8276_v16 = vpop.permute.xlu0 %3313 }
 0x695   :  { %6778 = vset.pattern.permute.xlu0 %v8939_v24  ;;  %6732 = vset.pattern.permute.xlu1 %v8927_v27 }
 0x696   :  { %3689 = vperm.xlu0 %6778, %v8188_v50   ;;  %3321 = vperm.xlu1 %6732, %v8068_v58  }
 0x698   :  { %v8204_v54 = vpop.permute.xlu1 %3342  ;;  %v8283_v40 = vpop.permute.xlu0 %3338 }
 0x69a   :  { %6781 = vset.pattern.permute.xlu0 %v8942_v26  ;;  %6734 = vset.pattern.permute.xlu1 %v8926_v28 }
 0x69b   :  { %3737 = vperm.xlu0 %6781, %v8188_v50   ;;  %3379 = vperm.xlu1 %6734, %v8068_v58  }
 0x69d   :  { %v8212_v57 = vpop.permute.xlu1 %3367 }
 0x69f   :  { %6784 = vset.pattern.permute.xlu0 %v8940_v39  ;;  %6736 = vset.pattern.permute.xlu1 %v8925_v30 }
 0x6a0   :  { %3785 = vperm.xlu0 %6784, %v8188_v50   ;;  %3437 = vperm.xlu1 %6736, %v8068_v58   ;;  %v8289_v58 = vpop.permute.xlu0 %3371 }
 0x6a2   :  { %v8220_v60 = vpop.permute.xlu1 %3400 }
 0x6a4   :  { %6787 = vset.pattern.permute.xlu0 %v8937_v29  ;;  %6737 = vset.pattern.permute.xlu1 %v8936_v11  ;;  %v8357_v29 = vld [vmem:[%s8920_s9 + $0x60] sm:$0xff] }
 0x6a5   :  { %3833 = vperm.xlu0 %6787, %v8188_v50   ;;  %3486 = vperm.xlu1 %6737, %v8108_v18   ;;  %8996 = vst [vmem:[#allocation16_spill] sm:$0xff] %v8357_v29 }
 0x6a7   :  { %v8226_v62 = vpop.permute.xlu1 %3425 }
 0x6a8   :  { %8986 = vst [vmem:[#allocation6_spill] sm:$0xff] %v8226_v62 }
 0x6a9   :  { %6738 = vset.pattern.permute.xlu1 %v8935_v56  ;;  %6790 = vset.pattern.permute.xlu0 %v8925_v30 }
 0x6aa   :  { %3513 = vperm.xlu1 %6738, %v8108_v18  }
 0x6ac   :  { %v8233_v0 = vpop.permute.xlu1 %2997 }
 0x6ae   :  { %6740 = vset.pattern.permute.xlu1 %v8933_v14 }
 0x6af   :  { %3561 = vperm.xlu1 %6740, %v8108_v18  }
 0x6b1   :  { %v8239_v6 = vpop.permute.xlu1 %3027 }
 0x6b3   :  { %6741 = vset.pattern.permute.xlu1 %v8932_v20 }
 0x6b4   :  { %3585 = vperm.xlu1 %6741, %v8108_v18  }
 0x6b6   :  { %v8245_v13 = vpop.permute.xlu1 %3056 }
 0x6b8   :  { %6742 = vset.pattern.permute.xlu1 %v8930_v21 }
 0x6b9   :  { %3609 = vperm.xlu1 %6742, %v8108_v18  }
 0x6bb   :  { %v8251_v5 = vpop.permute.xlu1 %3085 }
 0x6bd   :  { %6744 = vset.pattern.permute.xlu1 %v8929_v23  ;;  %v8324_v23 = vld [vmem:[%s8920_s9 + $0x8] sm:$0xff] }
 0x6be   :  { %3657 = vperm.xlu1 %6744, %v8108_v18   ;;  %8990 = vst [vmem:[#allocation10_spill] sm:$0xff] %v8324_v23 }
 0x6c0   :  { %v8257_v1 = vpop.permute.xlu1 %3114 }
 0x6c2   :  { %6746 = vset.pattern.permute.xlu1 %v8928_v25  ;;  %v8319_v25 = vld [vmem:[%s8920_s9 + $0x20] sm:$0xff] }
 0x6c3   :  { %3705 = vperm.xlu1 %6746, %v8108_v18   ;;  %8989 = vst [vmem:[#allocation9_spill] sm:$0xff] %v8319_v25 }
 0x6c5   :  { %v8261_v52 = vpop.permute.xlu1 %3143 }
 0x6c7   :  { %6748 = vset.pattern.permute.xlu1 %v8927_v27  ;;  %v8314_v27 = vld [vmem:[%s8920_s9 + $0x28] sm:$0xff] }
 0x6c8   :  { %3753 = vperm.xlu1 %6748, %v8108_v18   ;;  %8988 = vst [vmem:[#allocation8_spill] sm:$0xff] %v8314_v27 }
 0x6ca   :  { %v8267_v3 = vpop.permute.xlu1 %3172 }
 0x6cc   :  { %6750 = vset.pattern.permute.xlu1 %v8926_v28 }
 0x6cd   :  { %3801 = vperm.xlu1 %6750, %v8108_v18  }
 0x6cf   :  { %v8273_v8 = vpop.permute.xlu1 %3201 }
 0x6d1   :  { %6752 = vset.pattern.permute.xlu1 %v8925_v30 }
 0x6d2   :  { %3849 = vperm.xlu1 %6752, %v8108_v18   ;;  %v8297_v18 = vpop.permute.xlu0 %3396 }
 0x6d4   :  { %v8279_v19 = vpop.permute.xlu1 %3230 }
 0x6d6   :  { %6753 = vset.pattern.permute.xlu1 %v8936_v11  ;;  %v8303_v48 = vpop.permute.xlu0 %3429  ;;  %v8351_v11 = vld [vmem:[%s8920_s9 + $0x68] sm:$0xff] }
 0x6d7   :  { %3491 = vperm.xlu1 %6753, %v8147_v41   ;;  %8987 = vst [vmem:[#allocation7_spill] sm:$0xff] %v8303_v48  ;;  %8995 = vst [vmem:[#allocation15_spill] sm:$0xff] %v8351_v11 }
 0x6d9   :  { %v8285_v45 = vpop.permute.xlu1 %3259 }
 0x6da   :  { %v3003_v28 = vpop.permute.xlu0 %3002 }
 0x6db   :  { %6754 = vset.pattern.permute.xlu1 %v8935_v56  ;;  %v3034_v56 = vmul.f32 %v8319_v25, %v8124_v34  ;;  %v8375_v25 = vld [vmem:[%s8920_s9 + $0x88] sm:$0xff] }
 0x6dc   :  { %3517 = vperm.xlu1 %6754, %v8147_v41   ;;  %8998 = vst [vmem:[#allocation18_spill] sm:$0xff] %v8375_v25 }
 0x6de   :  { %v8291_v31 = vpop.permute.xlu1 %3288  ;;  %v3061_v39 = vpop.permute.xlu0 %3060 }
 0x6e0   :  { %6755 = vset.pattern.permute.xlu1 %v8934_v10  ;;  %v3035_v10 = vmul.f32 %v8314_v27, %v8200_v53  ;;  %v3006_v53 = vmul.f32 %v8190_v51, %v8324_v23  ;;  %v8370_v27 = vld [vmem:[%s8920_s9 + $0x80] sm:$0xff]  ;;  %v8386_v23 = vld [vmem:[%s8920_s9 + $0xa8] sm:$0xff] }
 0x6e1   :  { %3541 = vperm.xlu1 %6755, %v8147_v41   ;;  %8997 = vst [vmem:[#allocation17_spill] sm:$0xff] %v8370_v27 }
 0x6e3   :  { %v8295_v32 = vpop.permute.xlu1 %3317 }
 0x6e5   :  { %6756 = vset.pattern.permute.xlu1 %v8933_v14  ;;  %v8341_v14 = vld [vmem:[%s8920_s9] sm:$0xff] }
 0x6e6   :  { %3565 = vperm.xlu1 %6756, %v8147_v41   ;;  %8994 = vst [vmem:[#allocation14_spill] sm:$0xff] %v8341_v14  ;;  %v3005_v26 = vmul.f32 %v8118_v33, %v8341_v14  ;;  %v3092_v33 = vmul.f32 %v8357_v29, %v8136_v36  ;;  %v9001_v14 = vmov 10   ;;  %v8407_v36 = vld [vmem:[%s8920_s9 + $0x38] sm:$0xff] }
 0x6e7   :  { %9003 = vst [vmem:[#allocation22_spill] sm:$0xff] %v8407_v36 }
 0x6e8   :  { %v8301_v37 = vpop.permute.xlu1 %3346 }
 0x6ea   :  { %6757 = vset.pattern.permute.xlu1 %v8932_v20  ;;  %v8336_v20 = vld [vmem:[%s8920_s9 + $0x48] sm:$0xff] }
 0x6eb   :  { %3589 = vperm.xlu1 %6757, %v8147_v41   ;;  %8993 = vst [vmem:[#allocation13_spill] sm:$0xff] %v8336_v20  ;;  %v3064_v34 = vmul.f32 %v8336_v20, %v8130_v35  ;;  %v3093_v35 = vmul.f32 %v8351_v11, %v8218_v59  ;;  %v3038_v20 = vadd.f32 %v3034_v56, %v3005_v26  ;;  %v8401_v26 = vld [vmem:[%s8920_s9 + $0x18] sm:$0xff] }
 0x6ec   :  { %v3121_v59 = vmul.f32 %v8370_v27, %v8228_v63  ;;  %v3122_v56 = vmul.f32 %v8375_v25, %v8144_v38  ;;  %9002 = vst [vmem:[#allocation21_spill] sm:$0xff] %v8401_v26  ;;  %v8412_v63 = vld [vmem:[%s8920_s9 + $0xa0] sm:$0xff]  ;;  %v8417_v38 = vld [vmem:[%s8920_s9 + $0x10] sm:$0xff]  ;;  %v8437_v25 = vld [vmem:[%s8920_s9 + $0x58] sm:$0xff]  ;;  %v3151_v27 = vmul.f32 %v8386_v23, %v8235_v4  ;;  %v3008_v29 = vmul.f32 %v3003_v28, %v8401_v26 }
 0x6ed   :  { %v8307_v30 = vpop.permute.xlu1 %3375  ;;  %9004 = vst [vmem:[#allocation23_spill] sm:$0xff] %v8417_v38  ;;  %9006 = vst [vmem:[#allocation25_spill] sm:$0xff] %v8437_v25  ;;  %v3150_v62 = vmul.f32 %v8412_v63, %v8153_v42  ;;  %v3007_v4 = vmul.f32 %v8233_v0, %v8417_v38  ;;  %v8475_v0 = vld [vmem:[%s8920_s9 + $0x90] sm:$0xff] }
 0x6ee   :  { %v8505_v26 = vld [vmem:[%s8920_s9 + $0xb0] sm:$0xff] }
 0x6ef   :  { %6759 = vset.pattern.permute.xlu1 %v8931_v22  ;;  %v8331_v22 = vld [vmem:[%s8920_s9 + $0x40] sm:$0xff] }
 0x6f0   :  { %3637 = vperm.xlu1 %6759, %v8147_v41   ;;  %8992 = vst [vmem:[#allocation12_spill] sm:$0xff] %v8331_v22 }
 0x6f2   :  { %v8326_v21 = vpop.permute.xlu1 %3404 }
 0x6f3   :  { %8991 = vst [vmem:[#allocation11_spill] sm:$0xff] %v8326_v21 }
 0x6f4   :  { %6761 = vset.pattern.permute.xlu1 %v8939_v24  ;;  %v3063_v24 = vmul.f32 %v8331_v22, %v8210_v55  ;;  %v3039_v55 = vadd.f32 %v3035_v10, %v3006_v53  ;;  %v8391_v22 = vld [vmem:[%s8920_s9 + $0x30] sm:$0xff] }
 0x6f5   :  { %3685 = vperm.xlu1 %6761, %v8147_v41   ;;  %9000 = vst [vmem:[#allocation20_spill] sm:$0xff] %v8391_v22  ;;  %v3036_v11 = vmul.f32 %v8391_v22, %v8239_v6  ;;  %v8455_v6 = vld [vmem:[%s8920_s9 + $0xe8] sm:$0xff] }
 0x6f6   :  { %v3068_v10 = vadd.f32 %v3064_v34, %v3039_v55  ;;  %v3067_v53 = vadd.f32 %v3063_v24, %v3038_v20  ;;  %v8422_v34 = vld [vmem:[%s8920_s9 + $0x50] sm:$0xff]  ;;  %v8427_v20 = vld [vmem:[%s8920_s9 + $0xc0] sm:$0xff]  ;;  %v8432_v24 = vld [vmem:[%s8920_s9 + $0xc8] sm:$0xff] }
 0x6f7   :  { %v8377_v51 = vpop.permute.xlu1 %3433  ;;  %9005 = vst [vmem:[#allocation24_spill] sm:$0xff] %v8422_v34  ;;  %v3065_v28 = vmul.f32 %v8422_v34, %v8245_v13  ;;  %v3180_v42 = vmul.f32 %v8432_v24, %v8159_v43  ;;  %v8486_v43 = vld [vmem:[%s8920_s9 + $0x100] sm:$0xff] }
 0x6f8   :  { %8999 = vst [vmem:[#allocation19_spill] sm:$0xff] %v8377_v51  ;;  %v3097_v55 = vadd.f32 %v3093_v35, %v3068_v10  ;;  %v3096_v10 = vadd.f32 %v3092_v33, %v3067_v53  ;;  %v8447_v51 = vld [vmem:[%s8920_s9 + $0x70] sm:$0xff]  ;;  %v9008_v33 = vmov 12   ;;  %v3237_v22 = vmul.f32 %v8486_v43, %v8255_v7  ;;  %v8530_v7 = vld [vmem:[%s8920_s9 + $0x120] sm:$0xff] }
 0x6f9   :  { %6763 = vset.pattern.permute.xlu1 %v9001_v14  ;;  %v3119_v14 = vpop.permute.xlu0 %3118  ;;  %9007 = vst [vmem:[#allocation26_spill] sm:$0xff] %v8447_v51 }
 0x6fa   :  { %3733 = vperm.xlu1 %6763, %v8147_v41   ;;  %v3126_v48 = vadd.f32 %v3122_v56, %v3097_v55  ;;  %v3125_v53 = vadd.f32 %v3121_v59, %v3096_v10  ;;  %v8469_v56 = vld [vmem:[%s8920_s9 + $0xe0] sm:$0xff]  ;;  %v3066_v55 = vmul.f32 %v8437_v25, %v3061_v39  ;;  %v8491_v39 = vld [vmem:[%s8920_s9 + $0x108] sm:$0xff]  ;;  %v3040_v59 = vadd.f32 %v3036_v11, %v3007_v4  ;;  %v8500_v25 = vld [vmem:[%s8920_s9 + $0x98] sm:$0xff] }
 0x6fb   :  { %v3209_v10 = vmul.f32 %v8455_v6, %v8249_v61  ;;  %9009 = vst [vmem:[#allocation27_spill] sm:$0xff] %v8500_v25  ;;  %v3123_v61 = vmul.f32 %v8475_v0, %v8257_v1  ;;  %v3238_v38 = vmul.f32 %v8491_v39, %v8171_v46  ;;  %v8525_v1 = vld [vmem:[%s8920_s9 + $0x128] sm:$0xff]  ;;  %v3124_v46 = vmul.f32 %v8500_v25, %v3119_v14  ;;  %v8550_v14 = vld [vmem:[%s8920_s9 + $0x140] sm:$0xff] }
 0x6fc   :  { %v3032_v35 = vpop.permute.xlu1 %3031  ;;  %v3154_v11 = vadd.f32 %v3150_v62, %v3125_v53  ;;  %v9020_v25 = vmov 1  }
 0x6fd   :  { %v3037_v21 = vmul.f32 %v8407_v36, %v3032_v35  ;;  %v3179_v35 = vmul.f32 %v8427_v20, %v8242_v12  ;;  %v8481_v12 = vld [vmem:[%s8920_s9 + $0x78] sm:$0xff] }
 0x6fe   :  { %6765 = vset.pattern.permute.xlu1 %v9008_v33 }
 0x6ff   :  { %v3041_v13 = vadd.f32 %v3037_v21, %v3008_v29  ;;  %3781 = vperm.xlu1 %6765, %v8147_v41   ;;  %v3094_v21 = vmul.f32 %v8447_v51, %v8251_v5  ;;  %v3155_v29 = vadd.f32 %v3151_v27, %v3126_v48  ;;  %v3208_v5 = vmul.f32 %v8469_v56, %v8165_v44  ;;  %v3177_v48 = vpop.permute.xlu0 %3176  ;;  %v8520_v44 = vld [vmem:[%s8920_s9 + $0xd0] sm:$0xff] }
 0x700   :  { %v3069_v27 = vadd.f32 %v3065_v28, %v3040_v59  ;;  %v3183_v62 = vadd.f32 %v3179_v35, %v3154_v11  ;;  %v3152_v28 = vmul.f32 %v8505_v26, %v8261_v52  ;;  %v8539_v35 = vld [vmem:[%s8920_s9 + $0xb8] sm:$0xff]  ;;  %v8545_v59 = vld [vmem:[%s8920_s9 + $0xf0] sm:$0xff]  ;;  %v3267_v11 = vmul.f32 %v8525_v1, %v8263_v15 }
 0x701   :  { %v3070_v36 = vadd.f32 %v3066_v55, %v3041_v13  ;;  %v3090_v34 = vpop.permute.xlu1 %3089  ;;  %v3184_v51 = vadd.f32 %v3180_v42, %v3155_v29  ;;  %v9010_v55 = vmov 14   ;;  %9011 = vst [vmem:[#allocation28_spill] sm:$0xff] %v8539_v35  ;;  %v2972_v42 = vmul.f32 0.2, %v8011_v17  ;;  %v8560_v52 = vld [vmem:[%s8920_s9 + $0xd8] sm:$0xff] }
 0x702   :  { %v3095_v4 = vmul.f32 %v8481_v12, %v3090_v34  ;;  %v3098_v34 = vadd.f32 %v3094_v21, %v3069_v27  ;;  %9012 = vst [vmem:[#allocation29_spill] sm:$0xff] %v8560_v52  ;;  %v3181_v29 = vmul.f32 %v8520_v44, %v8267_v3  ;;  %v3266_v27 = vmul.f32 %v8530_v7, %v8177_v47  ;;  %v8578_v3 = vld [vmem:[%s8920_s9 + $0x168] sm:$0xff] }
 0x703   :  { %6767 = vset.pattern.permute.xlu1 %v9010_v55  ;;  %v3213_v13 = vadd.f32 %v3209_v10, %v3184_v51  ;;  %v3212_v10 = vadd.f32 %v3208_v5, %v3183_v62  ;;  %v3235_v5 = vpop.permute.xlu0 %3234  ;;  %v3210_v15 = vmul.f32 %v8545_v59, %v8273_v8  ;;  %v8596_v8 = vld [vmem:[%s8920_s9 + $0x130] sm:$0xff] }
 0x704   :  { %v3099_v53 = vadd.f32 %v3095_v4, %v3070_v36  ;;  %3829 = vperm.xlu1 %6767, %v8147_v41   ;;  %v8555_v41 = vld [vmem:[%s8920_s9 + $0x148] sm:$0xff]  ;;  %v3127_v51 = vadd.f32 %v3123_v61, %v3098_v34  ;;  %v8573_v61 = vld [vmem:[%s8920_s9 + $0x110] sm:$0xff]  ;;  %v9013_v34 = vmov 0  }
 0x705   :  { %v3241_v47 = vadd.f32 %v3237_v22, %v3212_v10  ;;  %v8602_v22 = vld [vmem:[%s8920_s9 + $0xf8] sm:$0xff] }
 0x706   :  { %v3128_v36 = vadd.f32 %v3124_v46, %v3099_v53  ;;  %v3148_v21 = vpop.permute.xlu1 %3147  ;;  %v3242_v46 = vadd.f32 %v3238_v38, %v3213_v13  ;;  %v3156_v62 = vadd.f32 %v3152_v28, %v3127_v51  ;;  %v3295_v53 = vmul.f32 %v8550_v14, %v8269_v2  ;;  %v8590_v38 = vld [vmem:[%s8920_s9 + $0x160] sm:$0xff]  ;;  %9014 = vst [vmem:[#allocation30_spill] sm:$0xff] %v8602_v22 }
 0x707   :  { %v3153_v4 = vmul.f32 %v8539_v35, %v3148_v21  ;;  %v3296_v21 = vmul.f32 %v8555_v41, %v8185_v49  ;;  %v3182_v13 = vmul.f32 %v8560_v52, %v3177_v48  ;;  %v8607_v49 = vsel %vm2964_vm8, %v8011_v17, %v2972_v42  ;;  %v8612_v2 = vld [vmem:[%s8920_s9 + $0x180] sm:$0xff]  ;;  %v8617_v48 = vld [vmem:[%s8920_s9 + $0x188] sm:$0xff]  ;;  %v8626_v17 = vld [vmem:[%s8920_s9 + $0x118] sm:$0xff] }
 0x708   :  { %6769 = vset.pattern.permute.xlu1 %v9013_v34  ;;  %v3185_v51 = vadd.f32 %v3181_v29, %v3156_v62  ;;  %v3271_v10 = vadd.f32 %v3267_v11, %v3242_v46  ;;  %9015 = vst [vmem:[#allocation31_spill] sm:$0xff] %v8626_v17  ;;  %v8631_v52 = vld [vmem:[%s8920_s9 + $0x150] sm:$0xff]  ;;  %v3270_v29 = vadd.f32 %v3266_v27, %v3241_v47 }
 0x709   :  { %v3157_v28 = vadd.f32 %v3153_v4, %v3128_v36  ;;  %3496 = vperm.xlu1 %6769, %v8188_v50   ;;  %v3239_v36 = vmul.f32 %v8573_v61, %v8279_v19  ;;  %v3325_v4 = vmul.f32 %v8578_v3, %v8276_v16  ;;  %v3324_v19 = vmul.f32 %v8590_v38, %v8196_v9  ;;  %v8645_v27 = vld [vmem:[%s8920_s9 + $0x170] sm:$0xff] }
 0x70a   :  { %v3268_v11 = vmul.f32 %v8596_v8, %v8285_v45  ;;  %v3214_v46 = vadd.f32 %v3210_v15, %v3185_v51  ;;  %v3300_v62 = vadd.f32 %v3296_v21, %v3271_v10  ;;  %v3299_v9 = vadd.f32 %v3295_v53, %v3270_v29  ;;  %v8651_v45 = vld [vmem:[%s8920_s9 + $0x1a8] sm:$0xff]  ;;  %v3293_v15 = vpop.permute.xlu0 %3292  ;;  %v8662_v21 = vld [vmem:[%s8920_s9 + $0x138] sm:$0xff] }
 0x70b   :  { %v3186_v42 = vadd.f32 %v3182_v13, %v3157_v28  ;;  %v3206_v34 = vpop.permute.xlu1 %3205  ;;  %v3353_v13 = vmul.f32 %v8612_v2, %v8283_v40  ;;  %v3354_v28 = vmul.f32 %v8617_v48, %v8204_v54  ;;  %v8656_v40 = vld [vmem:[%s8920_s9 + $0x1a0] sm:$0xff]  ;;  %v3240_v54 = vmul.f32 %v8626_v17, %v3235_v5  ;;  %9016 = vst [vmem:[#allocation32_spill] sm:$0xff] %v8662_v21 }
 0x70c   :  { %v3211_v16 = vmul.f32 %v8602_v22, %v3206_v34  ;;  %v3243_v53 = vadd.f32 %v3239_v36, %v3214_v46  ;;  %v3297_v51 = vmul.f32 %v8631_v52, %v8291_v31  ;;  %v3329_v10 = vadd.f32 %v3325_v4, %v3300_v62  ;;  %v8669_v34 = vld [vmem:[%s8920_s9 + $0x190] sm:$0xff]  ;;  %v8674_v5 = vld [vmem:[%s8920_s9 + $0x1c0] sm:$0xff]  ;;  %v8684_v31 = vld [vmem:[%s8920_s9 + $0x158] sm:$0xff] }
 0x70d   :  { %3501 = vperm.xlu1 %6769, %v8607_v49   ;;  %9017 = vst [vmem:[#allocation33_spill] sm:$0xff] %v8669_v34  ;;  %9018 = vst [vmem:[#allocation34_spill] sm:$0xff] %v8684_v31  ;;  %v3326_v36 = vmul.f32 %v8645_v27, %v8295_v32  ;;  %v3328_v46 = vadd.f32 %v3324_v19, %v3299_v9  ;;  %v3383_v62 = vmul.f32 %v8651_v45, %v8289_v58  ;;  %v8695_v22 = vld [vmem:[%s8920_s9 + $0x1b0] sm:$0xff]  ;;  %v8702_v19 = vld [vmem:[%s8920_s9 + $0x1e8] sm:$0xff] }
 0x70e   :  { %v3215_v47 = vadd.f32 %v3211_v16, %v3186_v42  ;;  %v8679_v42 = vld [vmem:[%s8920_s9 + $0x1c8] sm:$0xff]  ;;  %v3272_v16 = vadd.f32 %v3268_v11, %v3243_v53  ;;  %v3382_v17 = vmul.f32 %v8656_v40, %v8212_v57  ;;  %9019 = vst [vmem:[#allocation35_spill] sm:$0xff] %v8695_v22  ;;  %v3358_v32 = vadd.f32 %v3354_v28, %v3329_v10  ;;  %v8720_v53 = vld [vmem:[%s8920_s9 + $0x178] sm:$0xff] }
 0x70f   :  { %v3355_v57 = vmul.f32 %v8669_v34, %v8301_v37  ;;  %v3357_v11 = vadd.f32 %v3353_v13, %v3328_v46  ;;  %v3411_v9 = vmul.f32 %v8674_v5, %v8297_v18  ;;  %v3298_v28 = vmul.f32 %v8684_v31, %v3293_v15  ;;  %v8725_v18 = vld [vmem:[%s8920_s9 + $0x1d0] sm:$0xff]  ;;  %v3351_v37 = vpop.permute.xlu0 %3350  ;;  %v9022_v31 = vld [vmem:[#allocation6_spill] sm:$0xff] }
 0x710   :  { %v3244_v4 = vadd.f32 %v3240_v54, %v3215_v47  ;;  %v3264_v29 = vpop.permute.xlu1 %3263  ;;  %v3301_v58 = vadd.f32 %v3297_v51, %v3272_v16  ;;  %v3412_v54 = vmul.f32 %v8679_v42, %v8220_v60  ;;  %v3384_v60 = vmul.f32 %v8695_v22, %v8307_v30  ;;  %v9021_v10 = vld [vmem:[#allocation7_spill] sm:$0xff] }
 0x711   :  { %v3269_v35 = vmul.f32 %v8662_v21, %v3264_v29  ;;  %6770 = vset.pattern.permute.xlu1 %v9020_v25  ;;  %v8714_v25 = vld [vmem:[%s8920_s9 + $0x1e0] sm:$0xff]  ;;  %v3387_v51 = vadd.f32 %v3383_v62, %v3358_v32  ;;  %v3441_v15 = vmul.f32 %v8702_v19, %v9021_v10  ;;  %v3386_v46 = vadd.f32 %v3382_v17, %v3357_v11  ;;  %v9023_v32 = vld [vmem:[#allocation11_spill] sm:$0xff]  ;;  %v8753_v17 = vld [vmem:[%s8920_s9 + $0x1b8] sm:$0xff] }
 0x712   :  { %3521 = vperm.xlu1 %6770, %v8188_v50   ;;  %v3330_v13 = vadd.f32 %v3326_v36, %v3301_v58  ;;  %v3440_v30 = vmul.f32 %v8714_v25, %v9022_v31  ;;  %v3413_v58 = vmul.f32 %v8725_v18, %v9023_v32  ;;  %v9024_v34 = vld [vmem:[#allocation19_spill] sm:$0xff] }
 0x713   :  { %v3273_v47 = vadd.f32 %v3269_v35, %v3244_v4  ;;  %v8734_v35 = vld [vmem:[%s8920_s9 + $0x198] sm:$0xff]  ;;  %v8739_v4 = vld [vmem:[%s8920_s9 + $0x1f0] sm:$0xff]  ;;  %v3416_v10 = vadd.f32 %v3412_v54, %v3387_v51  ;;  %v3415_v22 = vadd.f32 %v3411_v9, %v3386_v46  ;;  %v3409_v54 = vpop.permute.xlu0 %3408  ;;  %v9025_v9 = vmov 2  }
 0x714   :  { %v3359_v62 = vadd.f32 %v3355_v57, %v3330_v13  ;;  %v3356_v21 = vmul.f32 %v8734_v35, %v3351_v37  ;;  %v8758_v57 = vld [vmem:[%s8920_s9 + $0x1d8] sm:$0xff] }
 0x715   :  { %v3302_v29 = vadd.f32 %v3298_v28, %v3273_v47  ;;  %v3322_v16 = vpop.permute.xlu1 %3321  ;;  %v3442_v28 = vmul.f32 %v8739_v4, %v9024_v34  ;;  %v3445_v11 = vadd.f32 %v3441_v15, %v3416_v10  ;;  %v3444_v34 = vadd.f32 %v3440_v30, %v3415_v22  ;;  %v8767_v46 = vld [vmem:[%s8920_s9 + $0x1f8] sm:$0xff] }
 0x716   :  { %v3327_v36 = vmul.f32 %v8720_v53, %v3322_v16  ;;  %3525 = vperm.xlu1 %6770, %v8607_v49   ;;  %v3388_v31 = vadd.f32 %v3384_v60, %v3359_v62  ;;  %v3414_v60 = vmul.f32 %v8758_v57, %v3409_v54 }
 0x718   :  { %v3331_v47 = vadd.f32 %v3327_v36, %v3302_v29  ;;  %v3417_v51 = vadd.f32 %v3413_v58, %v3388_v31  ;;  %v3449_v36 = vsel %vm2722_vm10, %v3445_v11, 0.0 }
 0x71a   :  { %6771 = vset.pattern.permute.xlu1 %v9025_v9  ;;  %v3360_v37 = vadd.f32 %v3356_v21, %v3331_v47  ;;  %v3380_v13 = vpop.permute.xlu1 %3379  ;;  %v3446_v16 = vadd.f32 %v3442_v28, %v3417_v51  ;;  %v3448_v21 = vsel %vm2722_vm10, %v3444_v34, 0.0  ;;  %v9026_v28 = vmov 3   ;;  %v9027_v34 = vld [vmem:[#allocation14_spill] sm:$0xff] }
 0x71b   :  { %v3385_v29 = vmul.f32 %v8753_v17, %v3380_v13  ;;  %3545 = vperm.xlu1 %6771, %v8188_v50   ;;  %v3450_v58 = vadd.f32 %v3449_v36, %v3448_v21  ;;  %v9029_v36 = vld [vmem:[#allocation12_spill] sm:$0xff] }
 0x71c   :  { %v3451_v32 = vsel %vm2722_vm10, %v3446_v16, 0.0  ;;  %v9028_v16 = vld [vmem:[#allocation9_spill] sm:$0xff] }
 0x71d   :  { %v3389_v15 = vadd.f32 %v3385_v29, %v3360_v37  ;;  %v3452_v47 = vadd.f32 %v3451_v32, %v3450_v58  ;;  %v3538_v37 = vpop.permute.xlu0 %3537 }
 0x71e   :  { %v3552_v21 = vmul.f32 %v9029_v36, %v3538_v37 }
 0x71f   :  { %3549 = vperm.xlu1 %6771, %v8607_v49   ;;  %v3418_v22 = vadd.f32 %v3414_v60, %v3389_v15  ;;  %v3438_v30 = vpop.permute.xlu1 %3437 }
 0x720   :  { %v3443_v62 = vmul.f32 %v8767_v46, %v3438_v30  ;;  %v9030_v30 = vmov 4  }
 0x722   :  { %v3447_v10 = vadd.f32 %v3443_v62, %v3418_v22 }
 0x723   :  { %6772 = vset.pattern.permute.xlu1 %v9026_v28 }
 0x724   :  { %v3453_v31 = vsel %vm2722_vm10, %v3447_v10, 0.0  ;;  %3569 = vperm.xlu1 %6772, %v8188_v50   ;;  %v3487_v11 = vpop.permute.xlu1 %3486  ;;  %v9031_v10 = vld [vmem:[#allocation16_spill] sm:$0xff] }
 0x725   :  { %v3454_v54 = vadd.f32 %v3453_v31, %v3452_v47  ;;  %v3504_v29 = vmul.f32 %v3487_v11, %v9027_v34  ;;  %v8787_v31 = vld [vmem:[%s8921_s10] sm:$0x1]  ;;  %s6848_s10 = smov [#allocation3]  }
 0x726   :  { %v9032_v34 = vld [vmem:[#allocation17_spill] sm:$0xff] }
 0x727   :  { %v3455_v9 = vrot.slane %v3454_v54, 4 }
 0x728   :  { %3573 = vperm.xlu1 %6772, %v8607_v49  }
 0x729   :  { %v3514_v13 = vpop.permute.xlu1 %3513  ;;  %v3456_v51 = vadd.f32 %v3455_v9, %v3454_v54 }
 0x72a   :  { %v3528_v60 = vmul.f32 %v9028_v16, %v3514_v13  ;;  %v3634_v13 = vpop.permute.xlu0 %3633 }
 0x72b   :  { %v3457_v15 = vrot.slane %v3456_v51, 2 }
 0x72c   :  { %v3532_v22 = vadd.f32 %v3528_v60, %v3504_v29  ;;  %6773 = vset.pattern.permute.xlu1 %v9030_v30  ;;  %v9033_v29 = vmov 5   ;;  %v8796_v60 = vld [vmem:[%s8922_s11] sm:$0x1]  ;;  %s3914_s11 = sshll.u32 %s6848_s10, 4  ;;  %s3915_s11 = int_to_ptr.vmem [resolvable:$true] %s3914_s11 }
 0x72d   :  { %3593 = vperm.xlu1 %6773, %v8188_v50   ;;  %v3458_v62 = vadd.f32 %v3457_v15, %v3456_v51  ;;  %s6799_s1 = scalar_lea.vmem %s3915_s11, 16  ;;  %s6803_s18 = scalar_lea.vmem %s3915_s11, 32 }
 0x72e   :  { %v3556_v32 = vadd.f32 %v3552_v21, %v3532_v22  ;;  %v3562_v58 = vpop.permute.xlu1 %3561  ;;  %p6800_p0 = scmp.ne.s32.totalorder %s3915_s11, %s6799_s1  ;;  %p6804_p1 = scmp.lt.s32.totalorder %s3915_s11, %s3915_s11 }
 0x72f   :  { %v3576_v28 = vmul.f32 %v9031_v10, %v3562_v58  ;;  %v3459_v47 = vrot.slane %v3458_v62, 1  ;;  %v3648_v58 = vmul.f32 %v8427_v20, %v3634_v13  ;;  %p6805_p2 = scmp.lt.s32.totalorder %s6803_s18, %s6799_s1 }
 0x731   :  { %v3580_v11 = vadd.f32 %v3576_v28, %v3556_v32  ;;  %3597 = vperm.xlu1 %6773, %v8607_v49   ;;  %v3460_v54 = vadd.f32 %v3459_v47, %v3458_v62  ;;  %v3682_v62 = vpop.permute.xlu0 %3681  ;;  %p6806_p3 = por %p6805_p2, %p6804_p1 }
 0x733   :  { %v3586_v9 = vpop.permute.xlu1 %3585  ;;  %v3462_v37 = vadd.f32 %v8787_v31, %v3460_v54  ;;  %v9034_v54 = vmov 6   ;;  %p6807_p4 = pnand %p6806_p3, %p6800_p0 }
 0x734   :  { %v3600_v51 = vmul.f32 %v9032_v34, %v3586_v9  ;;  %v3696_v9 = vmul.f32 %v8486_v43, %v3682_v62  ;;  %v9036_v62 = vmov 8  }
 0x735   :  { %6774 = vset.pattern.permute.xlu1 %v9033_v29  ;;  %vm3463_vm11 = vcmp.ge.f32.partialorder %v3462_v37, 0.0  ;;  %v3464_v16 = vmul.f32 0.2, %v3462_v37 }
 0x736   :  { %v3604_v15 = vadd.f32 %v3600_v51, %v3580_v11  ;;  %3617 = vperm.xlu1 %6774, %v8188_v50  }
 0x737   :  { %v3465_v36 = vsel %vm3463_vm11, %v3462_v37, %v3464_v16  ;;  %v9035_v16 = vmov 7  }
 0x738   :  { %v3610_v21 = vpop.permute.xlu1 %3609  ;;  %v3467_v22 = vmul.f32 %v8796_v60, %v3465_v36 }
 0x739   :  { %v3624_v30 = vmul.f32 %v8412_v63, %v3610_v21  ;;  %v3730_v63 = vpop.permute.xlu0 %3729 }
 0x73a   :  { %3621 = vperm.xlu1 %6774, %v8607_v49   ;;  %v3469_v32 = vsel %vm3468_vm3, %v3467_v22, 0.0  ;;  %v3744_v20 = vmul.f32 %v8550_v14, %v3730_v63 }
 0x73b   :  { %v3628_v10 = vadd.f32 %v3624_v30, %v3604_v15  ;;  %3470 = vadd.xlane.f32.xlu0 %v3469_v32 }
 0x73d   :  { %v3652_v28 = vadd.f32 %v3648_v58, %v3628_v10  ;;  %v3658_v47 = vpop.permute.xlu1 %3657 }
 0x73e   :  { %v3672_v11 = vmul.f32 %v8469_v56, %v3658_v47  ;;  %6776 = vset.pattern.permute.xlu1 %v9034_v54  ;;  %v3778_v56 = vpop.permute.xlu0 %3777  ;;  %v9038_v54 = vmov 10  }
 0x73f   :  { %3645 = vperm.xlu1 %6776, %v8607_v49   ;;  %v3792_v43 = vmul.f32 %v8612_v2, %v3778_v56 }
 0x740   :  { %v3676_v37 = vadd.f32 %v3672_v11, %v3652_v28  ;;  %v9037_v28 = vmov 9  }
 0x742   :  { %v3700_v34 = vadd.f32 %v3696_v9, %v3676_v37  ;;  %v3706_v51 = vpop.permute.xlu1 %3705  ;;  %v3826_v30 = vpop.permute.xlu0 %3825  ;;  %v9039_v9 = vld [vmem:[#allocation10_spill] sm:$0xff]  ;;  %v9040_v37 = vld [vmem:[#allocation8_spill] sm:$0xff] }
 0x743   :  { %v3720_v29 = vmul.f32 %v8530_v7, %v3706_v51  ;;  %6777 = vset.pattern.permute.xlu1 %v9035_v16  ;;  %v3840_v14 = vmul.f32 %v8674_v5, %v3826_v30  ;;  %v9042_v16 = vld [vmem:[#allocation13_spill] sm:$0xff] }
 0x744   :  { %3665 = vperm.xlu1 %6777, %v8188_v50  }
 0x745   :  { %v3724_v13 = vadd.f32 %v3720_v29, %v3700_v34  ;;  %v9041_v29 = vmov 11  }
 0x746   :  { %v3614_v56 = vpop.permute.xlu0 %3613 }
 0x747   :  { %v3748_v15 = vadd.f32 %v3744_v20, %v3724_v13  ;;  %v3754_v36 = vpop.permute.xlu1 %3753 }
 0x748   :  { %v3768_v21 = vmul.f32 %v8590_v38, %v3754_v36  ;;  %3669 = vperm.xlu1 %6777, %v8607_v49   ;;  %v9043_v36 = vld [vmem:[#allocation15_spill] sm:$0xff] }
 0x74a   :  { %v3772_v22 = vadd.f32 %v3768_v21, %v3748_v15  ;;  %v3662_v30 = vpop.permute.xlu0 %3661 }
 0x74c   :  { %6779 = vset.pattern.permute.xlu1 %v9036_v62  ;;  %v3796_v7 = vadd.f32 %v3792_v43, %v3772_v22  ;;  %v3802_v32 = vpop.permute.xlu1 %3801  ;;  %v9044_v62 = vld [vmem:[#allocation18_spill] sm:$0xff] }
 0x74d   :  { %v3816_v58 = vmul.f32 %v8656_v40, %v3802_v32  ;;  %3693 = vperm.xlu1 %6779, %v8607_v49   ;;  %v3625_v32 = vmul.f32 %v8386_v23, %v3614_v56 }
 0x74f   :  { %v3820_v10 = vadd.f32 %v3816_v58, %v3796_v7 }
 0x751   :  { %6780 = vset.pattern.permute.xlu1 %v9037_v28  ;;  %3861 = vperm.xlu0 %6790, %v8607_v49   ;;  %v3844_v38 = vadd.f32 %v3840_v14, %v3820_v10  ;;  %v3850_v47 = vpop.permute.xlu1 %3849  ;;  %v9045_v14 = vmov 13  }
 0x752   :  { %v3864_v2 = vmul.f32 %v8714_v25, %v3850_v47  ;;  %3713 = vperm.xlu1 %6780, %v8188_v50   ;;  %v3710_v47 = vpop.permute.xlu0 %3709 }
 0x753   :  { %v3721_v23 = vmul.f32 %v8525_v1, %v3710_v47 }
 0x754   :  { %v8823_v11 = vadd.f32 %v3864_v2, %v3844_v38 }
 0x756   :  { %3717 = vperm.xlu1 %6780, %v8607_v49   ;;  %v3492_v40 = vpop.permute.xlu1 %3491 }
 0x757   :  { %v3505_v63 = vmul.f32 %v3492_v40, %v9039_v9  ;;  %v3758_v9 = vpop.permute.xlu0 %3757 }
 0x75a   :  { %6782 = vset.pattern.permute.xlu1 %v9038_v54 }
 0x75b   :  { %3741 = vperm.xlu1 %6782, %v8607_v49   ;;  %v3518_v5 = vpop.permute.xlu1 %3517 }
 0x75c   :  { %v3529_v34 = vmul.f32 %v9040_v37, %v3518_v5 }
 0x75e   :  { %v3533_v51 = vadd.f32 %v3529_v34, %v3505_v63 }
 0x75f   :  { %6783 = vset.pattern.permute.xlu1 %v9041_v29 }
 0x760   :  { %3761 = vperm.xlu1 %6783, %v8188_v50   ;;  %v3542_v25 = vpop.permute.xlu1 %3541 }
 0x761   :  { %v3553_v20 = vmul.f32 %v9042_v16, %v3542_v25 }
 0x763   :  { %v3557_v13 = vadd.f32 %v3553_v20, %v3533_v51  ;;  %v3769_v51 = vmul.f32 %v8578_v3, %v3758_v9 }
 0x764   :  { %3765 = vperm.xlu1 %6783, %v8607_v49  }
 0x765   :  { %v3566_v15 = vpop.permute.xlu1 %3565 }
 0x766   :  { %v3577_v21 = vmul.f32 %v9043_v36, %v3566_v15 }
 0x768   :  { %v3581_v43 = vadd.f32 %v3577_v21, %v3557_v13  ;;  %6785 = vset.pattern.permute.xlu1 %v9008_v33  ;;  %v3673_v33 = vmul.f32 %v8455_v6, %v3662_v30  ;;  %v9046_v6 = vmov 15   ;;  %v9047_v30 = vld [vmem:[#allocation23_spill] sm:$0xff] }
 0x769   :  { %3789 = vperm.xlu1 %6785, %v8607_v49  }
 0x76a   :  { %v3590_v22 = vpop.permute.xlu1 %3589 }
 0x76b   :  { %v3601_v7 = vmul.f32 %v9044_v62, %v3590_v22 }
 0x76d   :  { %v3605_v58 = vadd.f32 %v3601_v7, %v3581_v43  ;;  %6786 = vset.pattern.permute.xlu1 %v9045_v14  ;;  %v9048_v7 = vld [vmem:[#allocation20_spill] sm:$0xff] }
 0x76e   :  { %3809 = vperm.xlu1 %6786, %v8188_v50  }
 0x76f   :  { %v3629_v10 = vadd.f32 %v3625_v32, %v3605_v58  ;;  %v3638_v28 = vpop.permute.xlu1 %3637 }
 0x770   :  { %v3649_v38 = vmul.f32 %v8432_v24, %v3638_v28 }
 0x772   :  { %v3653_v2 = vadd.f32 %v3649_v38, %v3629_v10  ;;  %3813 = vperm.xlu1 %6786, %v8607_v49  }
 0x774   :  { %v3677_v40 = vadd.f32 %v3673_v33, %v3653_v2  ;;  %v3686_v54 = vpop.permute.xlu1 %3685  ;;  %v9049_v2 = vld [vmem:[#allocation24_spill] sm:$0xff] }
 0x775   :  { %v3697_v5 = vmul.f32 %v8491_v39, %v3686_v54  ;;  %v3806_v39 = vpop.permute.xlu0 %3805 }
 0x776   :  { %6788 = vset.pattern.permute.xlu1 %v9010_v55  ;;  %v3817_v16 = vmul.f32 %v8651_v45, %v3806_v39 }
 0x777   :  { %v3701_v63 = vadd.f32 %v3697_v5, %v3677_v40  ;;  %3837 = vperm.xlu1 %6788, %v8607_v49   ;;  %v9050_v5 = vld [vmem:[#allocation26_spill] sm:$0xff] }
 0x779   :  { %v3725_v37 = vadd.f32 %v3721_v23, %v3701_v63  ;;  %v3734_v24 = vpop.permute.xlu1 %3733  ;;  %v3854_v49 = vpop.permute.xlu0 %3853 }
 0x77a   :  { %v3745_v34 = vmul.f32 %v8555_v41, %v3734_v24  ;;  %v3865_v15 = vmul.f32 %v8702_v19, %v3854_v49 }
 0x77b   :  { %6789 = vset.pattern.permute.xlu1 %v9046_v6 }
 0x77c   :  { %v3749_v29 = vadd.f32 %v3745_v34, %v3725_v37  ;;  %3857 = vperm.xlu1 %6789, %v8188_v50   ;;  %v3872_v50 = vsel %vm2722_vm10, %v8823_v11, 0.0 }
 0x77d   :  { %v3642_v6 = vpop.permute.xlu0 %3641 }
 0x77e   :  { %v3773_v25 = vadd.f32 %v3769_v51, %v3749_v29  ;;  %v3782_v55 = vpop.permute.xlu1 %3781 }
 0x77f   :  { %v3793_v1 = vmul.f32 %v8617_v48, %v3782_v55 }
 0x781   :  { %v3797_v20 = vadd.f32 %v3793_v1, %v3773_v25  ;;  %v3650_v25 = vmul.f32 %v8520_v44, %v3642_v6  ;;  %v3690_v1 = vpop.permute.xlu0 %3689  ;;  %v9051_v44 = vld [vmem:[#allocation22_spill] sm:$0xff] }
 0x783   :  { %v3821_v13 = vadd.f32 %v3817_v16, %v3797_v20  ;;  %v3830_v56 = vpop.permute.xlu1 %3829 }
 0x784   :  { %v3841_v41 = vmul.f32 %v8679_v42, %v3830_v56 }
 0x785   :  { %v3738_v56 = vpop.permute.xlu0 %3737 }
 0x786   :  { %v3845_v36 = vadd.f32 %v3841_v41, %v3821_v13  ;;  %v3698_v13 = vmul.f32 %v8573_v61, %v3690_v1 }
 0x788   :  { %v3869_v3 = vadd.f32 %v3865_v15, %v3845_v36  ;;  %v3497_v21 = vpop.permute.xlu1 %3496 }
 0x789   :  { %v3506_v62 = vmul.f32 %v3497_v21, %v9047_v30  ;;  %v9053_v30 = vld [vmem:[#allocation25_spill] sm:$0xff] }
 0x78a   :  { %v3873_v43 = vsel %vm2722_vm10, %v3869_v3, 0.0 }
 0x78b   :  { %v8859_v22 = vadd.f32 %v3873_v43, %v3872_v50 }
 0x78c   :  { %v3502_v48 = vpop.permute.xlu1 %3501 }
 0x791   :  { %v3522_v45 = vpop.permute.xlu1 %3521 }
 0x792   :  { %v3530_v32 = vmul.f32 %v9048_v7, %v3522_v45  ;;  %v3786_v7 = vpop.permute.xlu0 %3785 }
 0x794   :  { %v3534_v58 = vadd.f32 %v3530_v32, %v3506_v62 }
 0x795   :  { %v3526_v42 = vpop.permute.xlu1 %3525 }
 0x796   :  { %v3531_v43 = vmul.f32 %v9051_v44, %v3526_v42  ;;  %v9056_v42 = vld [vmem:[#allocation28_spill] sm:$0xff] }
 0x79a   :  { %v3546_v14 = vpop.permute.xlu1 %3545 }
 0x79b   :  { %v3554_v40 = vmul.f32 %v9049_v2, %v3546_v14 }
 0x79d   :  { %v3558_v9 = vadd.f32 %v3554_v40, %v3534_v58 }
 0x79e   :  { %v3550_v19 = vpop.permute.xlu1 %3549 }
 0x79f   :  { %v3555_v62 = vmul.f32 %v9053_v30, %v3550_v19  ;;  %v9057_v19 = vld [vmem:[#allocation29_spill] sm:$0xff] }
 0x7a3   :  { %v3570_v10 = vpop.permute.xlu1 %3569 }
 0x7a4   :  { %v3578_v23 = vmul.f32 %v9050_v5, %v3570_v10 }
 0x7a6   :  { %v3582_v24 = vadd.f32 %v3578_v23, %v3558_v9 }
 0x7a7   :  { %v3574_v28 = vpop.permute.xlu1 %3573 }
 0x7a8   :  { %v3579_v58 = vmul.f32 %v8481_v12, %v3574_v28 }
 0x7ac   :  { %v3594_v38 = vpop.permute.xlu1 %3593 }
 0x7ad   :  { %v3602_v63 = vmul.f32 %v8475_v0, %v3594_v38  ;;  %v9055_v38 = vld [vmem:[#allocation27_spill] sm:$0xff] }
 0x7af   :  { %v3606_v51 = vadd.f32 %v3602_v63, %v3582_v24  ;;  %v9058_v24 = vld [vmem:[#allocation30_spill] sm:$0xff] }
 0x7b0   :  { %v3598_v47 = vpop.permute.xlu1 %3597 }
 0x7b5   :  { %v3618_v33 = vpop.permute.xlu1 %3617 }
 0x7b6   :  { %v3626_v34 = vmul.f32 %v8505_v26, %v3618_v33  ;;  %v3746_v26 = vmul.f32 %v8631_v52, %v3738_v56  ;;  %v3603_v33 = vmul.f32 %v9055_v38, %v3598_v47  ;;  %v3834_v47 = vpop.permute.xlu0 %3833 }
 0x7b7   :  { %v3842_v56 = vmul.f32 %v8725_v18, %v3834_v47 }
 0x7b8   :  { %v3630_v39 = vadd.f32 %v3626_v34, %v3606_v51 }
 0x7b9   :  { %v3622_v11 = vpop.permute.xlu1 %3621 }
 0x7ba   :  { %v3654_v16 = vadd.f32 %v3650_v25, %v3630_v39  ;;  %v3627_v23 = vmul.f32 %v9056_v42, %v3622_v11  ;;  %v9060_v39 = vld [vmem:[#allocation32_spill] sm:$0xff]  ;;  %v9062_v11 = vld [vmem:[#allocation35_spill] sm:$0xff] }
 0x7be   :  { %v3646_v54 = vpop.permute.xlu1 %3645 }
 0x7bf   :  { %v3651_v63 = vmul.f32 %v9057_v19, %v3646_v54 }
 0x7c3   :  { %v3666_v37 = vpop.permute.xlu1 %3665 }
 0x7c4   :  { %v3674_v55 = vmul.f32 %v8545_v59, %v3666_v37  ;;  %v9052_v59 = vld [vmem:[#allocation21_spill] sm:$0xff] }
 0x7c5   :  { %v3507_v45 = vmul.f32 %v3502_v48, %v9052_v59 }
 0x7c6   :  { %v3678_v49 = vadd.f32 %v3674_v55, %v3654_v16  ;;  %v9061_v16 = vld [vmem:[#allocation34_spill] sm:$0xff] }
 0x7c7   :  { %v3670_v29 = vpop.permute.xlu1 %3669  ;;  %v3535_v61 = vadd.f32 %v3531_v43, %v3507_v45 }
 0x7c8   :  { %v3702_v41 = vadd.f32 %v3698_v13, %v3678_v49  ;;  %v3675_v34 = vmul.f32 %v9058_v24, %v3670_v29 }
 0x7c9   :  { %v3559_v52 = vadd.f32 %v3555_v62, %v3535_v61 }
 0x7cb   :  { %v3583_v5 = vadd.f32 %v3579_v58, %v3559_v52 }
 0x7cc   :  { %v3694_v20 = vpop.permute.xlu1 %3693 }
 0x7cd   :  { %v3607_v9 = vadd.f32 %v3603_v33, %v3583_v5 }
 0x7cf   :  { %v3631_v37 = vadd.f32 %v3627_v23, %v3607_v9 }
 0x7d1   :  { %v3714_v0 = vpop.permute.xlu1 %3713  ;;  %v3655_v28 = vadd.f32 %v3651_v63, %v3631_v37 }
 0x7d2   :  { %v3722_v15 = vmul.f32 %v8596_v8, %v3714_v0  ;;  %v9054_v8 = vld [vmem:[#allocation33_spill] sm:$0xff] }
 0x7d3   :  { %v3794_v10 = vmul.f32 %v9054_v8, %v3786_v7  ;;  %v3679_v51 = vadd.f32 %v3675_v34, %v3655_v28 }
 0x7d4   :  { %v3726_v36 = vadd.f32 %v3722_v15, %v3702_v41 }
 0x7d5   :  { %v3718_v3 = vpop.permute.xlu1 %3717 }
 0x7d6   :  { %v3750_v21 = vadd.f32 %v3746_v26, %v3726_v36  ;;  %v3723_v25 = vmul.f32 %v9060_v39, %v3718_v3 }
 0x7da   :  { %v3742_v50 = vpop.permute.xlu1 %3741 }
 0x7db   :  { %v3747_v49 = vmul.f32 %v9061_v16, %v3742_v50 }
 0x7df   :  { %v3762_v32 = vpop.permute.xlu1 %3761 }
 0x7e0   :  { %v3770_v14 = vmul.f32 %v8645_v27, %v3762_v32  ;;  %v9059_v27 = vld [vmem:[#allocation31_spill] sm:$0xff] }
 0x7e1   :  { %v3699_v6 = vmul.f32 %v9059_v27, %v3694_v20 }
 0x7e2   :  { %v3774_v2 = vadd.f32 %v3770_v14, %v3750_v21  ;;  %v3471_v21 = vpop.xlane.xlu0 %3470 }
 0x7e3   :  { %v3766_v40 = vpop.permute.xlu1 %3765  ;;  %v3703_v1 = vadd.f32 %v3699_v6, %v3679_v51 }
 0x7e4   :  { %v3798_v48 = vadd.f32 %v3794_v10, %v3774_v2  ;;  %v3771_v0 = vmul.f32 %v8720_v53, %v3766_v40 }
 0x7e5   :  { %v3727_v54 = vadd.f32 %v3723_v25, %v3703_v1 }
 0x7e6   :  { %v3862_v45 = vpop.permute.xlu0 %3861 }
 0x7e7   :  { %v3751_v15 = vadd.f32 %v3747_v49, %v3727_v54  ;;  %v3867_v53 = vmul.f32 %v8767_v46, %v3862_v45 }
 0x7e8   :  { %v3790_v12 = vpop.permute.xlu1 %3789 }
 0x7e9   :  { %v3795_v20 = vmul.f32 %v8734_v35, %v3790_v12  ;;  %v3775_v36 = vadd.f32 %v3771_v0, %v3751_v15 }
 0x7eb   :  { %v3799_v44 = vadd.f32 %v3795_v20, %v3775_v36 }
 0x7ed   :  { %v3810_v55 = vpop.permute.xlu1 %3809 }
 0x7ee   :  { %v3818_v13 = vmul.f32 %v9062_v11, %v3810_v55 }
 0x7f0   :  { %v3822_v29 = vadd.f32 %v3818_v13, %v3798_v48 }
 0x7f1   :  { %v3814_v41 = vpop.permute.xlu1 %3813 }
 0x7f2   :  { %v3846_v26 = vadd.f32 %v3842_v56, %v3822_v29  ;;  %v3819_v3 = vmul.f32 %v8753_v17, %v3814_v41 }
 0x7f4   :  { %v3823_v59 = vadd.f32 %v3819_v3, %v3799_v44 }
 0x7f6   :  { %v3838_v43 = vpop.permute.xlu1 %3837 }
 0x7f7   :  { %v3843_v50 = vmul.f32 %v8758_v57, %v3838_v43 }
 0x7f9   :  { %v3847_v18 = vadd.f32 %v3843_v50, %v3823_v59 }
 0x7fb   :  { %v3858_v30 = vpop.permute.xlu1 %3857  ;;  %v3871_v7 = vadd.f32 %v3867_v53, %v3847_v18 }
 0x7fc   :  { %v3866_v62 = vmul.f32 %v8739_v4, %v3858_v30 }
 0x7fd   :  { %v3877_v17 = vsel %vm2722_vm10, %v3871_v7, 0.0 }
 0x7fe   :  { %v3870_v32 = vadd.f32 %v3866_v62, %v3846_v26 }
 0x800   :  { %v3875_v35 = vsel %vm2722_vm10, %v3870_v32, 0.0 }
 0x801   :  { %v3876_v61 = vadd.f32 %v3875_v35, %v8859_v22  ;;  %v3472_v22 = vld [vmem:[#allocation2] sm:$0x1] }
 0x802   :  { %v3473_v5 = vadd.f32 %v3472_v22, %v3471_v21 }
 0x803   :  { %v3878_v58 = vadd.f32 %v3877_v17, %v3876_v61 }
 0x804   :  { %v3474_v42 = vsub.f32 0.0, %v3473_v5 }
 0x805   :  { %v3879_v14 = vrot.slane %v3878_v58, 4 }
 0x806   :  { %v3476_v23 = vand.u32 2147483647, %v3474_v42  ;;  %v3475_v25 = vmax.f32 %v3474_v42, 0.0 }
 0x807   :  { %v3880_v8 = vadd.f32 %v3879_v14, %v3878_v58 }
 0x808   :  { %v3477_v48 = vsub.f32 0.0, %v3476_v23 }
 0x809   :  { %v3881_v57 = vrot.slane %v3880_v8, 2 }
 0x80a   :  { %v3478_v9 = vmul.f32 1.442695, %v3477_v48 }
 0x80b   :  { %v3882_v10 = vadd.f32 %v3881_v57, %v3880_v8 }
 0x80c   :  { %6791 = vpow2.f32 %v3478_v9 }
 0x80d   :  { %v3883_v52 = vrot.slane %v3882_v10, 1 }
 0x80f   :  { %v3884_v38 = vadd.f32 %v3883_v52, %v3882_v10 }
 0x811   :  { %v3885_v33 = vadd.f32 %v3884_v38, %v8787_v31 }
 0x813   :  { %vm3886_vm0 = vcmp.ge.f32.partialorder %v3885_v33, 0.0  ;;  %v3887_v46 = vmul.f32 0.2, %v3885_v33 }
 0x815   :  { %v3888_v4 = vsel %vm3886_vm0, %v3885_v33, %v3887_v46 }
 0x816   :  { %v3889_v2 = vmul.f32 %v3888_v4, %v8796_v60  ;;  %v6792_v12 = vpop.eup %6791 }
 0x817   :  { %v3480_v28 = vadd.f32 1.0, %v6792_v12 }
 0x818   :  { %v3890_v40 = vsel %vm3468_vm3, %v3889_v2, 0.0 }
 0x819   :  { %3891 = vadd.xlane.f32.xlu1 %v3890_v40 }
 0x8a6   :  { %v3892_v19 = vpop.xlane.xlu1 %3891 }
 0x8a7   :  { %v3893_v63 = vadd.f32 %v3892_v19, %v3472_v22 }
 0x8a9   :  { %v3894_v37 = vsub.f32 0.0, %v3893_v63 }
 0x8ab   :  { %v3896_v24 = vand.u32 2147483647, %v3894_v37  ;;  %v3895_v47 = vmax.f32 %v3894_v37, 0.0 }
 0x8ad   :  { %v3897_v31 = vsub.f32 0.0, %v3896_v24 }
 0x8af   :  { %v3898_v34 = vmul.f32 1.442695, %v3897_v31 }
 0x8b1   :  { %6793 = vpow2.f32 %v3898_v34 }
 0x8b2   :  { %6795 = vlog2.f32 %v3480_v28 }
 0x8bb   :  { %v6794_v60 = vpop.eup %6793 }
 0x8bc   :  { %v3900_v27 = vadd.f32 1.0, %v6794_v60  ;;  %v6796_v6 = vpop.eup %6795 }
 0x8bd   :  { %v3482_v51 = vmul.f32 0.6931472, %v6796_v6 }
 0x8be   :  { %6797 = vlog2.f32 %v3900_v27 }
 0x8bf   :  { %v3483_v1 = vadd.f32 %v3482_v51, %v3475_v25 }
 0x8c8   :  { %v6798_v39 = vpop.eup %6797 }
 0x8c9   :  { %v3902_v55 = vmul.f32 0.6931472, %v6798_v39 }
 0x8cb   :  { %v3903_v16 = vadd.f32 %v3902_v55, %v3895_v47 }
 0x8cd   :  { %v3904_v49 = vadd.f32 %v3903_v16, %v3483_v1 }
 0x8cf   :  { %v3905_v11 = vmul.f32 0.5, %v3904_v49 }
 0x8d1   :  { %3907 = vst.msk [vmem:[#allocation3] sm:$0x1] %vm3906_vm4, %v3905_v11 }
 0x8d2   :  { %6810 = shalt.err (!%p6807_p4)
}
 0x8d3   :  { %s6811_s7 = scalar_lea.hbm %s8924_s13, 16 }
 0x8d4   :  { %p6812_p5 = scmp.ne.s32.totalorder %s8924_s13, %s6811_s7  ;;  %p6815_p6 = scmp.lt.u32.totalorder %s6811_s7, %s8924_s13 }
 0x8d6   :  { %p6817_p7 = pnand %p6815_p6, %p6812_p5 }
 0x8d8   :  { %6820 = shalt.err (!%p6817_p7)
}
 0x8d9   :  { %3917 = dma.vmem_to_hbm [thread:$0]  %s3915_s11, 16, %s8924_s13, [#allocation4]  }
 0x8da   :  { %6821 = dma.done.wait [#allocation4], 16  }
 0x8db   :  { %6822 = vsyncadd [#allocation4], 4294967280 }
 0x8dc   :  { %3921 = vsyncpa [#allocation4], 1 }

</bundles_post_ra>
